<compile_context>
chip_gen: v6e
topology: v6e:2x2x1
jax: 0.10.0
libtpu: 0.0.40
codegen_flags: <defaults>
</compile_context>

<pallas_src>
from functools import partial

import jax
import jax.numpy as jnp
import numpy as np
from jax.experimental import pallas as pl
from jax.experimental.pallas import tpu as pltpu

EPS = 1e-5
LANE = 128


def _bb_kernel(Ho, Wo, stride, has_proj, bands,
               xin_ref, w1_ref, s1_ref, b1_ref, w2_ref, s2_ref, b2_ref, *rest):
    """Fused conv1(3x3,stride)+bn1+relu -> conv2(3x3)+bn2 -> (+shortcut) -> relu.

    xin_ref : (1, s*s, Hp, Wp, Cin_p)   phase-decomposed zero-padded input (one image)
    w1_ref  : (9*Cin_p, Cout_p)         conv1 weights, tap-major rows
    w2_ref  : (9*Cout_p, Cout_p)        conv2 weights, tap-major rows
    ws/ss/bs (only if has_proj)         1x1 projection weight + folded BN scale/bias
    s*/b*   : (1, Cout_p)               folded (eval-mode) BN scale / bias, f32
    out_ref : (1, Ho*Wo, Cout_p)        output slab for this image
    scratch : h1pad (Ho+2, Wo+2, Cout_p), pk1 (TM, 9*Cin_p), pk2 (TM, 9*Cout_p)
    """
    if has_proj:
        ws_ref, ss_ref, bs_ref, out_ref, h1pad_ref, pk1_ref, pk2_ref = rest
    else:
        out_ref, h1pad_ref, pk1_ref, pk2_ref = rest

    s = stride
    Cin = xin_ref.shape[-1]          # lane-padded
    Cout = w1_ref.shape[-1]          # lane-padded
    cdt = h1pad_ref.dtype

    # Zero the 1-pixel halo. Done per step (not once) because the scratch is per-core
    # under "parallel" megacore sharding of the batch grid axis; cost is ~KiBs.
    zrow = jnp.zeros((1, Wo + 2, Cout), cdt)
    h1pad_ref[0:1, :, :] = zrow
    h1pad_ref[Ho + 1:Ho + 2, :, :] = zrow
    zcol = jnp.zeros((Ho, 1, Cout), cdt)
    h1pad_ref[1:Ho + 1, 0:1, :] = zcol
    h1pad_ref[1:Ho + 1, Wo + 1:Wo + 2, :] = zcol

    # ---- phase A: conv1 (3x3, stride s) + bn1 + relu, one fused K=9*Cin dot per band
    for row0, th in bands:
        tm = th * Wo
        for ky in range(3):
            for kx in range(3):
                t = ky * 3 + kx
                p = (ky % s) * s + (kx % s)      # stride-phase holding this tap
                a, b = ky // s, kx // s          # offset inside that phase
                tap = xin_ref[0, p, a + row0:a + row0 + th, b:b + Wo, :]
                pk1_ref[0:tm, t * Cin:(t + 1) * Cin] = tap.reshape(tm, Cin)
        acc = jnp.dot(pk1_ref[0:tm, :], w1_ref[...],
                      preferred_element_type=jnp.float32)
        h1 = jnp.maximum(acc * s1_ref[...] + b1_ref[...], 0.0)
        h1pad_ref[1 + row0:1 + row0 + th, 1:1 + Wo, :] = (
            h1.reshape(th, Wo, Cout).astype(cdt))

    # shortcut: the strided input is just the "center" slice of the phase tensor
    psc = (1 % s) * s + (1 % s)
    asc = 1 // s

    # ---- phase B: conv2 (3x3, stride 1) + bn2 + shortcut + relu, per band ----------
    for row0, th in bands:
        tm = th * Wo
        for ky in range(3):
            for kx in range(3):
                t = ky * 3 + kx
                tap = h1pad_ref[ky + row0:ky + row0 + th, kx:kx + Wo, :]
                pk2_ref[0:tm, t * Cout:(t + 1) * Cout] = tap.reshape(tm, Cout)
        acc2 = jnp.dot(pk2_ref[0:tm, :], w2_ref[...],
                       preferred_element_type=jnp.float32)
        out = acc2 * s2_ref[...] + b2_ref[...]

        xs = xin_ref[0, psc, asc + row0:asc + row0 + th, asc:asc + Wo, :]
        xs = xs.reshape(tm, Cin)
        if has_proj:
            sc = jnp.dot(xs, ws_ref[...], preferred_element_type=jnp.float32)
            sc = sc * ss_ref[...] + bs_ref[...]
        else:
            sc = xs.astype(jnp.float32)          # identity: stride==1, Cin==Cout
        out_ref[0, row0 * Wo:(row0 + th) * Wo, :] = (
            jnp.maximum(out + sc, 0.0).astype(out_ref.dtype))


def _fold_bn(gamma, beta, mean, var, eps=EPS):
    scale = gamma / jnp.sqrt(var + eps)
    bias = beta - mean * scale
    return scale.astype(jnp.float32), bias.astype(jnp.float32)


def _pad_to(a, axis, size):
    pad = [(0, 0)] * a.ndim
    pad[axis] = (0, size - a.shape[axis])
    return jnp.pad(a, pad)


def _round_up(x, m):
    return ((x + m - 1) // m) * m


def _vmem_budget(est_bytes):
    """Generation-aware scoped-VMEM budget: capacity minus ~16 MiB headroom."""
    cap = 128 << 20
    try:
        info = pltpu.get_tpu_info()
        cap = int(getattr(info, "vmem_capacity_bytes", cap))
    except Exception:
        pass
    ceiling = max(cap - (16 << 20), 32 << 20)
    return int(min(max(est_bytes, 32 << 20), ceiling))


def basic_block_forward(x_nchw, params, stride=1, compute_dtype=jnp.bfloat16,
                        out_dtype=jnp.float32, max_tm=256):
    """x_nchw: (N, Cin, H, W) float32. Returns (N, Cout, Ho, Wo) float32."""
    N, Cin, H, W = x_nchw.shape
    Cout = params["w1"].shape[0]
    s = int(stride)
    assert s in (1, 2), "phase-decomposition path only validated for stride in {1, 2}"
    Ho = (H + 2 - 3) // s + 1
    Wo = (W + 2 - 3) // s + 1
    M = Ho * Wo
    has_proj = "ws" in params
    assert has_proj or (s == 1 and Cin == Cout), "identity shortcut needs stride=1, Cin==Cout"

    Cin_p = _round_up(Cin, LANE)
    Cout_p = _round_up(Cout, LANE)

    # ---- output-row bands (M tiling): keep each matmul's M around <= max_tm rows ----
    th_full = max(1, min(Ho, max_tm // max(Wo, 1)))
    bands, r = [], 0
    while r < Ho:
        th = min(th_full, Ho - r)
        bands.append((r, th))
        r += th
    bands = tuple(bands)
    tm_max = bands[0][1] * Wo

    # ---- NHWC, channel pad to 128 lanes, zero-pad + phase decomposition by stride ---
    # phase (py,px)[u,v] = x_pad[s*u+py, s*v+px]  -> every conv tap is a contiguous
    # slice of one phase; no 9x input replication, no strided in-kernel loads.
    x = jnp.transpose(x_nchw, (0, 2, 3, 1)).astype(compute_dtype)
    x = _pad_to(x, 3, Cin_p)
    Hp = Ho + (2 // s)
    Wp = Wo + (2 // s)
    ph_h, ph_w = s * Hp, s * Wp
    pad_h = max(ph_h - (H + 2), 0)
    pad_w = max(ph_w - (W + 2), 0)
    xp = jnp.pad(x, ((0, 0), (1, 1 + pad_h), (1, 1 + pad_w), (0, 0)))[:, :ph_h, :ph_w, :]
    phases = xp.reshape(N, Hp, s, Wp, s, Cin_p).transpose(0, 2, 4, 1, 3, 5)
    phases = phases.reshape(N, s * s, Hp, Wp, Cin_p)

    # ---- weights: torch OIHW -> tap-major (9*Cpad_in, Cpad_out), bf16 for the MXU ---
    w1 = jnp.transpose(params["w1"], (2, 3, 1, 0)).reshape(9, Cin, Cout)
    w1 = _pad_to(_pad_to(w1, 1, Cin_p), 2, Cout_p).reshape(9 * Cin_p, Cout_p)
    w1 = w1.astype(compute_dtype)
    w2 = jnp.transpose(params["w2"], (2, 3, 1, 0)).reshape(9, Cout, Cout)
    w2 = _pad_to(_pad_to(w2, 1, Cout_p), 2, Cout_p).reshape(9 * Cout_p, Cout_p)
    w2 = w2.astype(compute_dtype)
    s1, b1 = _fold_bn(*params["bn1"])
    s2, b2 = _fold_bn(*params["bn2"])
    s1 = _pad_to(s1.reshape(1, -1), 1, Cout_p)
    b1 = _pad_to(b1.reshape(1, -1), 1, Cout_p)
    s2 = _pad_to(s2.reshape(1, -1), 1, Cout_p)
    b2 = _pad_to(b2.reshape(1, -1), 1, Cout_p)

    inputs = [phases, w1, s1, b1, w2, s2, b2]
    in_specs = [
        pl.BlockSpec((1, s * s, Hp, Wp, Cin_p), lambda n: (n, 0, 0, 0, 0)),
        pl.BlockSpec((9 * Cin_p, Cout_p), lambda n: (0, 0)),
        pl.BlockSpec((1, Cout_p), lambda n: (0, 0)),
        pl.BlockSpec((1, Cout_p), lambda n: (0, 0)),
        pl.BlockSpec((9 * Cout_p, Cout_p), lambda n: (0, 0)),
        pl.BlockSpec((1, Cout_p), lambda n: (0, 0)),
        pl.BlockSpec((1, Cout_p), lambda n: (0, 0)),
    ]
    if has_proj:
        ws = jnp.transpose(params["ws"][:, :, 0, 0], (1, 0))            # (Cin, Cout)
        ws = _pad_to(_pad_to(ws, 0, Cin_p), 1, Cout_p).astype(compute_dtype)
        ss, bs = _fold_bn(*params["bns"])
        ss = _pad_to(ss.reshape(1, -1), 1, Cout_p)
        bs = _pad_to(bs.reshape(1, -1), 1, Cout_p)
        inputs += [ws, ss, bs]
        in_specs += [
            pl.BlockSpec((Cin_p, Cout_p), lambda n: (0, 0)),
            pl.BlockSpec((1, Cout_p), lambda n: (0, 0)),
            pl.BlockSpec((1, Cout_p), lambda n: (0, 0)),
        ]

    cdb = jnp.dtype(compute_dtype).itemsize
    odb = jnp.dtype(out_dtype).itemsize
    weight_bytes = (9 * Cin_p * Cout_p + 9 * Cout_p * Cout_p
                    + (Cin_p * Cout_p if has_proj else 0)) * cdb + 6 * Cout_p * 4
    est = (2 * (s * s * Hp * Wp * Cin_p * cdb + M * Cout_p * odb)    # double-buffered I/O
           + 2 * weight_bytes                                        # (constant blocks)
           + (Ho + 2) * (Wo + 2) * Cout_p * cdb                      # h1pad scratch
           + tm_max * 9 * (Cin_p + Cout_p) * cdb                     # pack scratches
           + (4 << 20))
    vmem_limit = _vmem_budget(est)

    out3 = pl.pallas_call(
        partial(_bb_kernel, Ho, Wo, s, has_proj, bands),
        out_shape=jax.ShapeDtypeStruct((N, M, Cout_p), out_dtype),
        grid=(N,),
        in_specs=in_specs,
        out_specs=pl.BlockSpec((1, M, Cout_p), lambda n: (n, 0, 0)),
        scratch_shapes=[
            pltpu.VMEM((Ho + 2, Wo + 2, Cout_p), compute_dtype),
            pltpu.VMEM((tm_max, 9 * Cin_p), compute_dtype),
            pltpu.VMEM((tm_max, 9 * Cout_p), compute_dtype),
        ],
        compiler_params=pltpu.CompilerParams(
            dimension_semantics=("parallel",),
            vmem_limit_bytes=vmem_limit),
    )(*inputs)

    out = out3[:, :, :Cout].reshape(N, Ho, Wo, Cout)
    return jnp.transpose(out, (0, 3, 1, 2)).astype(jnp.float32)      # NCHW


# ---------------------- pure-JAX reference (for verification) ----------------------
def _ref_forward(x, params, stride):
    def conv(x, w, s, pad):
        return jax.lax.conv_general_dilated(
            x, w, (s, s), [(pad, pad), (pad, pad)],
            dimension_numbers=("NCHW", "OIHW", "NCHW"))

    def bn(x, stats):
        g, b, m, v = stats
        return ((x - m[None, :, None, None]) / jnp.sqrt(v[None, :, None, None] + EPS)
                * g[None, :, None, None] + b[None, :, None, None])

    out = jax.nn.relu(bn(conv(x, params["w1"], stride, 1), params["bn1"]))
    out = bn(conv(out, params["w2"], 1, 1), params["bn2"])
    if "ws" in params:
        sc = bn(conv(x, params["ws"], stride, 0), params["bns"])
    else:
        sc = x
    return jax.nn.relu(out + sc)


def _init_params(key, cin, cout, stride):
    ks = jax.random.split(key, 12)

    def bn_stats(k0, k1, k2, k3, c):
        return (jax.random.uniform(k0, (c,), jnp.float32, 0.5, 1.5),   # gamma
                0.1 * jax.random.normal(k1, (c,), jnp.float32),        # beta
                0.1 * jax.random.normal(k2, (c,), jnp.float32),        # running_mean
                jax.random.uniform(k3, (c,), jnp.float32, 0.5, 1.5))   # running_var

    params = {
        "w1": 0.2 * jax.random.normal(ks[0], (cout, cin, 3, 3), jnp.float32),
        "bn1": bn_stats(ks[1], ks[2], ks[3], ks[4], cout),
        "w2": 0.2 * jax.random.normal(ks[5], (cout, cout, 3, 3), jnp.float32),
        "bn2": bn_stats(ks[6], ks[7], ks[8], ks[9], cout),
    }
    if stride != 1 or cin != cout:
        params["ws"] = 0.2 * jax.random.normal(ks[10], (cout, cin, 1, 1), jnp.float32)
        params["bns"] = bn_stats(ks[11], ks[1], ks[5], ks[0], cout)
    return params


if __name__ == "__main__":
    key = jax.random.PRNGKey(0)
    k_x, k_p, k_x2, k_x3, k_p3 = jax.random.split(key, 5)

    # Tolerance is sized for bf16 MXU inputs (f32 accumulation) vs. an f32 reference.
    TOL = dict(rtol=5e-2, atol=5e-2)

    # Case 1: projection shortcut (stride 2, channel expansion), single M band.
    N, Cin, Cout, H, W, stride = 2, 4, 8, 16, 16, 2
    x = jax.random.normal(k_x, (N, Cin, H, W), jnp.float32)
    params = _init_params(k_p, Cin, Cout, stride)
    out = jax.block_until_ready(basic_block_forward(x, params, stride=stride))
    ref = jax.block_until_ready(_ref_forward(x, params, stride))
    np.testing.assert_allclose(np.asarray(out), np.asarray(ref), **TOL)

    # Case 2: identity shortcut (stride 1, same channels) -> no projection matmul.
    x2 = jax.random.normal(k_x2, (2, 8, 16, 16), jnp.float32)
    params2 = _init_params(k_p, 8, 8, 1)
    out2 = jax.block_until_ready(basic_block_forward(x2, params2, stride=1))
    ref2 = jax.block_until_ready(_ref_forward(x2, params2, 1))
    np.testing.assert_allclose(np.asarray(out2), np.asarray(ref2), **TOL)

    # Case 3: stride-1 projection (channel change) on a 24x24 map -> exercises the
    # multi-band M tiling (bands of 10/10/4 output rows with max_tm=256).
    x3 = jax.random.normal(k_x3, (2, 4, 24, 24), jnp.float32)
    params3 = _init_params(k_p3, 4, 8, 1)
    out3 = jax.block_until_ready(basic_block_forward(x3, params3, stride=1))
    ref3 = jax.block_until_ready(_ref_forward(x3, params3, 1))
    np.testing.assert_allclose(np.asarray(out3), np.asarray(ref3), **TOL)

    print("KERNEL_OK")
</pallas_src>

<mosaic_0001>
module attributes {stable_mosaic.version = 11 : i64} {
  func.func @_bb_kernel(%arg0: i32, %arg1: memref<1x4x9x9x128xbf16, #tpu.memory_space<vmem>>, %arg2: memref<1152x128xbf16, #tpu.memory_space<vmem>>, %arg3: memref<1x128xf32, #tpu.memory_space<vmem>>, %arg4: memref<1x128xf32, #tpu.memory_space<vmem>>, %arg5: memref<1152x128xbf16, #tpu.memory_space<vmem>>, %arg6: memref<1x128xf32, #tpu.memory_space<vmem>>, %arg7: memref<1x128xf32, #tpu.memory_space<vmem>>, %arg8: memref<128x128xbf16, #tpu.memory_space<vmem>>, %arg9: memref<1x128xf32, #tpu.memory_space<vmem>>, %arg10: memref<1x128xf32, #tpu.memory_space<vmem>>, %arg11: memref<1x64x128xf32, #tpu.memory_space<vmem>>, %arg12: memref<10x10x128xbf16, #tpu.memory_space<vmem>>, %arg13: memref<64x1152xbf16, #tpu.memory_space<vmem>>, %arg14: memref<64x1152xbf16, #tpu.memory_space<vmem>>) attributes {dimension_semantics = [#tpu.dimension_semantics<parallel>], iteration_bounds = array<i64: 2>, scalar_prefetch = 0 : i64, scratch_operands = 3 : i64, tpu.core_type = #tpu.core_type<tc>, window_params = [{transform_indices = @transform_0, window_bounds = array<i64: 1, 4, 9, 9, 128>}, {pipeline_mode = #tpu.pipeline_mode<synchronous>, transform_indices = @transform_1, window_bounds = array<i64: 1152, 128>}, {pipeline_mode = #tpu.pipeline_mode<synchronous>, transform_indices = @transform_2, window_bounds = array<i64: 1, 128>}, {pipeline_mode = #tpu.pipeline_mode<synchronous>, transform_indices = @transform_3, window_bounds = array<i64: 1, 128>}, {pipeline_mode = #tpu.pipeline_mode<synchronous>, transform_indices = @transform_4, window_bounds = array<i64: 1152, 128>}, {pipeline_mode = #tpu.pipeline_mode<synchronous>, transform_indices = @transform_5, window_bounds = array<i64: 1, 128>}, {pipeline_mode = #tpu.pipeline_mode<synchronous>, transform_indices = @transform_6, window_bounds = array<i64: 1, 128>}, {pipeline_mode = #tpu.pipeline_mode<synchronous>, transform_indices = @transform_7, window_bounds = array<i64: 128, 128>}, {pipeline_mode = #tpu.pipeline_mode<synchronous>, transform_indices = @transform_8, window_bounds = array<i64: 1, 128>}, {pipeline_mode = #tpu.pipeline_mode<synchronous>, transform_indices = @transform_9, window_bounds = array<i64: 1, 128>}, {transform_indices = @transform_10, window_bounds = array<i64: 1, 64, 128>}]} {
    %cst = arith.constant 0.000000e+00 : bf16
    %0 = vector.broadcast %cst : bf16 to vector<1x10x128xbf16>
    %c0 = arith.constant 0 : index
    %c0_0 = arith.constant 0 : index
    %c0_1 = arith.constant 0 : index
    %1 = vector.load %arg12[%c0, %c0_0, %c0_1] : memref<10x10x128xbf16, #tpu.memory_space<vmem>>, vector<1x10x128xbf16>
    tpu.vector_store %arg12[%c0, %c0_0, %c0_1], %0 {strides = array<i32>} : memref<10x10x128xbf16, #tpu.memory_space<vmem>>, vector<1x10x128xbf16>,
    %c9 = arith.constant 9 : index
    %c0_2 = arith.constant 0 : index
    %c0_3 = arith.constant 0 : index
    %2 = vector.load %arg12[%c9, %c0_2, %c0_3] : memref<10x10x128xbf16, #tpu.memory_space<vmem>>, vector<1x10x128xbf16>
    tpu.vector_store %arg12[%c9, %c0_2, %c0_3], %0 {strides = array<i32>} : memref<10x10x128xbf16, #tpu.memory_space<vmem>>, vector<1x10x128xbf16>,
    %cst_4 = arith.constant 0.000000e+00 : bf16
    %3 = vector.broadcast %cst_4 : bf16 to vector<8x1x128xbf16>
    %c1 = arith.constant 1 : index
    %c0_5 = arith.constant 0 : index
    %c0_6 = arith.constant 0 : index
    %4 = vector.load %arg12[%c1, %c0_5, %c0_6] : memref<10x10x128xbf16, #tpu.memory_space<vmem>>, vector<8x1x128xbf16>
    tpu.vector_store %arg12[%c1, %c0_5, %c0_6], %3 {strides = array<i32>} : memref<10x10x128xbf16, #tpu.memory_space<vmem>>, vector<8x1x128xbf16>,
    %c1_7 = arith.constant 1 : index
    %c9_8 = arith.constant 9 : index
    %c0_9 = arith.constant 0 : index
    %5 = vector.load %arg12[%c1_7, %c9_8, %c0_9] : memref<10x10x128xbf16, #tpu.memory_space<vmem>>, vector<8x1x128xbf16>
    tpu.vector_store %arg12[%c1_7, %c9_8, %c0_9], %3 {strides = array<i32>} : memref<10x10x128xbf16, #tpu.memory_space<vmem>>, vector<8x1x128xbf16>,
    %c0_10 = arith.constant 0 : index
    %c0_11 = arith.constant 0 : index
    %c0_12 = arith.constant 0 : index
    %c0_13 = arith.constant 0 : index
    %c0_14 = arith.constant 0 : index
    %6 = vector.load %arg1[%c0_10, %c0_11, %c0_12, %c0_13, %c0_14] : memref<1x4x9x9x128xbf16, #tpu.memory_space<vmem>>, vector<1x1x8x8x128xbf16>
    %7 = vector.shape_cast %6 : vector<1x1x8x8x128xbf16> to vector<8x8x128xbf16>
    %8 = vector.shape_cast %7 : vector<8x8x128xbf16> to vector<64x128xbf16>
    %c0_15 = arith.constant 0 : index
    %c0_16 = arith.constant 0 : index
    %9 = vector.load %arg13[%c0_15, %c0_16] : memref<64x1152xbf16, #tpu.memory_space<vmem>>, vector<64x128xbf16>
    tpu.vector_store %arg13[%c0_15, %c0_16], %8 {strides = array<i32>} : memref<64x1152xbf16, #tpu.memory_space<vmem>>, vector<64x128xbf16>,
    %c0_17 = arith.constant 0 : index
    %c1_18 = arith.constant 1 : index
    %c0_19 = arith.constant 0 : index
    %c0_20 = arith.constant 0 : index
    %c0_21 = arith.constant 0 : index
    %10 = vector.load %arg1[%c0_17, %c1_18, %c0_19, %c0_20, %c0_21] : memref<1x4x9x9x128xbf16, #tpu.memory_space<vmem>>, vector<1x1x8x8x128xbf16>
    %11 = vector.shape_cast %10 : vector<1x1x8x8x128xbf16> to vector<8x8x128xbf16>
    %12 = vector.shape_cast %11 : vector<8x8x128xbf16> to vector<64x128xbf16>
    %c0_22 = arith.constant 0 : index
    %c128 = arith.constant 128 : index
    %13 = vector.load %arg13[%c0_22, %c128] : memref<64x1152xbf16, #tpu.memory_space<vmem>>, vector<64x128xbf16>
    tpu.vector_store %arg13[%c0_22, %c128], %12 {strides = array<i32>} : memref<64x1152xbf16, #tpu.memory_space<vmem>>, vector<64x128xbf16>,
    %c0_23 = arith.constant 0 : index
    %c0_24 = arith.constant 0 : index
    %c0_25 = arith.constant 0 : index
    %c1_26 = arith.constant 1 : index
    %c0_27 = arith.constant 0 : index
    %14 = vector.load %arg1[%c0_23, %c0_24, %c0_25, %c1_26, %c0_27] : memref<1x4x9x9x128xbf16, #tpu.memory_space<vmem>>, vector<1x1x8x8x128xbf16>
    %15 = vector.shape_cast %14 : vector<1x1x8x8x128xbf16> to vector<8x8x128xbf16>
    %16 = vector.shape_cast %15 : vector<8x8x128xbf16> to vector<64x128xbf16>
    %c0_28 = arith.constant 0 : index
    %c256 = arith.constant 256 : index
    %17 = vector.load %arg13[%c0_28, %c256] : memref<64x1152xbf16, #tpu.memory_space<vmem>>, vector<64x128xbf16>
    tpu.vector_store %arg13[%c0_28, %c256], %16 {strides = array<i32>} : memref<64x1152xbf16, #tpu.memory_space<vmem>>, vector<64x128xbf16>,
    %c0_29 = arith.constant 0 : index
    %c2 = arith.constant 2 : index
    %c0_30 = arith.constant 0 : index
    %c0_31 = arith.constant 0 : index
    %c0_32 = arith.constant 0 : index
    %18 = vector.load %arg1[%c0_29, %c2, %c0_30, %c0_31, %c0_32] : memref<1x4x9x9x128xbf16, #tpu.memory_space<vmem>>, vector<1x1x8x8x128xbf16>
    %19 = vector.shape_cast %18 : vector<1x1x8x8x128xbf16> to vector<8x8x128xbf16>
    %20 = vector.shape_cast %19 : vector<8x8x128xbf16> to vector<64x128xbf16>
    %c0_33 = arith.constant 0 : index
    %c384 = arith.constant 384 : index
    %21 = vector.load %arg13[%c0_33, %c384] : memref<64x1152xbf16, #tpu.memory_space<vmem>>, vector<64x128xbf16>
    tpu.vector_store %arg13[%c0_33, %c384], %20 {strides = array<i32>} : memref<64x1152xbf16, #tpu.memory_space<vmem>>, vector<64x128xbf16>,
    %c0_34 = arith.constant 0 : index
    %c3 = arith.constant 3 : index
    %c0_35 = arith.constant 0 : index
    %c0_36 = arith.constant 0 : index
    %c0_37 = arith.constant 0 : index
    %22 = vector.load %arg1[%c0_34, %c3, %c0_35, %c0_36, %c0_37] : memref<1x4x9x9x128xbf16, #tpu.memory_space<vmem>>, vector<1x1x8x8x128xbf16>
    %23 = vector.shape_cast %22 : vector<1x1x8x8x128xbf16> to vector<8x8x128xbf16>
    %24 = vector.shape_cast %23 : vector<8x8x128xbf16> to vector<64x128xbf16>
    %c0_38 = arith.constant 0 : index
    %c512 = arith.constant 512 : index
    %25 = vector.load %arg13[%c0_38, %c512] : memref<64x1152xbf16, #tpu.memory_space<vmem>>, vector<64x128xbf16>
    tpu.vector_store %arg13[%c0_38, %c512], %24 {strides = array<i32>} : memref<64x1152xbf16, #tpu.memory_space<vmem>>, vector<64x128xbf16>,
    %c0_39 = arith.constant 0 : index
    %c2_40 = arith.constant 2 : index
    %c0_41 = arith.constant 0 : index
    %c1_42 = arith.constant 1 : index
    %c0_43 = arith.constant 0 : index
    %26 = vector.load %arg1[%c0_39, %c2_40, %c0_41, %c1_42, %c0_43] : memref<1x4x9x9x128xbf16, #tpu.memory_space<vmem>>, vector<1x1x8x8x128xbf16>
    %27 = vector.shape_cast %26 : vector<1x1x8x8x128xbf16> to vector<8x8x128xbf16>
    %28 = vector.shape_cast %27 : vector<8x8x128xbf16> to vector<64x128xbf16>
    %c0_44 = arith.constant 0 : index
    %c640 = arith.constant 640 : index
    %29 = vector.load %arg13[%c0_44, %c640] : memref<64x1152xbf16, #tpu.memory_space<vmem>>, vector<64x128xbf16>
    tpu.vector_store %arg13[%c0_44, %c640], %28 {strides = array<i32>} : memref<64x1152xbf16, #tpu.memory_space<vmem>>, vector<64x128xbf16>,
    %c0_45 = arith.constant 0 : index
    %c0_46 = arith.constant 0 : index
    %c1_47 = arith.constant 1 : index
    %c0_48 = arith.constant 0 : index
    %c0_49 = arith.constant 0 : index
    %30 = vector.load %arg1[%c0_45, %c0_46, %c1_47, %c0_48, %c0_49] : memref<1x4x9x9x128xbf16, #tpu.memory_space<vmem>>, vector<1x1x8x8x128xbf16>
    %31 = vector.shape_cast %30 : vector<1x1x8x8x128xbf16> to vector<8x8x128xbf16>
    %32 = vector.shape_cast %31 : vector<8x8x128xbf16> to vector<64x128xbf16>
    %c0_50 = arith.constant 0 : index
    %c768 = arith.constant 768 : index
    %33 = vector.load %arg13[%c0_50, %c768] : memref<64x1152xbf16, #tpu.memory_space<vmem>>, vector<64x128xbf16>
    tpu.vector_store %arg13[%c0_50, %c768], %32 {strides = array<i32>} : memref<64x1152xbf16, #tpu.memory_space<vmem>>, vector<64x128xbf16>,
    %c0_51 = arith.constant 0 : index
    %c1_52 = arith.constant 1 : index
    %c1_53 = arith.constant 1 : index
    %c0_54 = arith.constant 0 : index
    %c0_55 = arith.constant 0 : index
    %34 = vector.load %arg1[%c0_51, %c1_52, %c1_53, %c0_54, %c0_55] : memref<1x4x9x9x128xbf16, #tpu.memory_space<vmem>>, vector<1x1x8x8x128xbf16>
    %35 = vector.shape_cast %34 : vector<1x1x8x8x128xbf16> to vector<8x8x128xbf16>
    %36 = vector.shape_cast %35 : vector<8x8x128xbf16> to vector<64x128xbf16>
    %c0_56 = arith.constant 0 : index
    %c896 = arith.constant 896 : index
    %37 = vector.load %arg13[%c0_56, %c896] : memref<64x1152xbf16, #tpu.memory_space<vmem>>, vector<64x128xbf16>
    tpu.vector_store %arg13[%c0_56, %c896], %36 {strides = array<i32>} : memref<64x1152xbf16, #tpu.memory_space<vmem>>, vector<64x128xbf16>,
    %c0_57 = arith.constant 0 : index
    %c0_58 = arith.constant 0 : index
    %c1_59 = arith.constant 1 : index
    %c1_60 = arith.constant 1 : index
    %c0_61 = arith.constant 0 : index
    %38 = vector.load %arg1[%c0_57, %c0_58, %c1_59, %c1_60, %c0_61] : memref<1x4x9x9x128xbf16, #tpu.memory_space<vmem>>, vector<1x1x8x8x128xbf16>
    %39 = vector.shape_cast %38 : vector<1x1x8x8x128xbf16> to vector<8x8x128xbf16>
    %40 = vector.shape_cast %39 : vector<8x8x128xbf16> to vector<64x128xbf16>
    %c0_62 = arith.constant 0 : index
    %c1024 = arith.constant 1024 : index
    %41 = vector.load %arg13[%c0_62, %c1024] : memref<64x1152xbf16, #tpu.memory_space<vmem>>, vector<64x128xbf16>
    tpu.vector_store %arg13[%c0_62, %c1024], %40 {strides = array<i32>} : memref<64x1152xbf16, #tpu.memory_space<vmem>>, vector<64x128xbf16>,
    %c0_63 = arith.constant 0 : index
    %c0_64 = arith.constant 0 : index
    %42 = vector.load %arg13[%c0_63, %c0_64] : memref<64x1152xbf16, #tpu.memory_space<vmem>>, vector<64x1152xbf16>
    %c0_65 = arith.constant 0 : index
    %c0_66 = arith.constant 0 : index
    %43 = vector.load %arg2[%c0_65, %c0_66] : memref<1152x128xbf16, #tpu.memory_space<vmem>>, vector<1152x128xbf16>
    %cst_67 = arith.constant dense<0.000000e+00> : vector<64x128xf32>
    %44 = tpu.matmul %42, %43, %cst_67 {dimension_numbers = #tpu.dot_dimension_numbers<[1], [0], [0], [1], [0, 0, 1, 1], [], []>} : vector<64x1152xbf16>, vector<1152x128xbf16>, vector<64x128xf32> -> vector<64x128xf32>
    %c0_68 = arith.constant 0 : index
    %c0_69 = arith.constant 0 : index
    %45 = vector.load %arg3[%c0_68, %c0_69] : memref<1x128xf32, #tpu.memory_space<vmem>>, vector<1x128xf32>
    %46 = vector.broadcast %45 : vector<1x128xf32> to vector<64x128xf32>
    %47 = arith.mulf %44, %46 : vector<64x128xf32>
    %c0_70 = arith.constant 0 : index
    %c0_71 = arith.constant 0 : index
    %48 = vector.load %arg4[%c0_70, %c0_71] : memref<1x128xf32, #tpu.memory_space<vmem>>, vector<1x128xf32>
    %49 = vector.broadcast %48 : vector<1x128xf32> to vector<64x128xf32>
    %50 = arith.addf %47, %49 : vector<64x128xf32>
    %cst_72 = arith.constant 0.000000e+00 : f32
    %51 = vector.broadcast %cst_72 : f32 to vector<64x128xf32>
    %52 = arith.maximumf %50, %51 : vector<64x128xf32>
    %53 = vector.shape_cast %52 : vector<64x128xf32> to vector<8x8x128xf32>
    %54 = arith.truncf %53 : vector<8x8x128xf32> to vector<8x8x128xbf16>
    %c1_73 = arith.constant 1 : index
    %c1_74 = arith.constant 1 : index
    %c0_75 = arith.constant 0 : index
    %55 = vector.load %arg12[%c1_73, %c1_74, %c0_75] : memref<10x10x128xbf16, #tpu.memory_space<vmem>>, vector<8x8x128xbf16>
    tpu.vector_store %arg12[%c1_73, %c1_74, %c0_75], %54 {strides = array<i32>} : memref<10x10x128xbf16, #tpu.memory_space<vmem>>, vector<8x8x128xbf16>,
    %c0_76 = arith.constant 0 : index
    %c0_77 = arith.constant 0 : index
    %c0_78 = arith.constant 0 : index
    %56 = vector.load %arg12[%c0_76, %c0_77, %c0_78] : memref<10x10x128xbf16, #tpu.memory_space<vmem>>, vector<8x8x128xbf16>
    %57 = vector.shape_cast %56 : vector<8x8x128xbf16> to vector<64x128xbf16>
    %c0_79 = arith.constant 0 : index
    %c0_80 = arith.constant 0 : index
    %58 = vector.load %arg14[%c0_79, %c0_80] : memref<64x1152xbf16, #tpu.memory_space<vmem>>, vector<64x128xbf16>
    tpu.vector_store %arg14[%c0_79, %c0_80], %57 {strides = array<i32>} : memref<64x1152xbf16, #tpu.memory_space<vmem>>, vector<64x128xbf16>,
    %c0_81 = arith.constant 0 : index
    %c1_82 = arith.constant 1 : index
    %c0_83 = arith.constant 0 : index
    %59 = vector.load %arg12[%c0_81, %c1_82, %c0_83] : memref<10x10x128xbf16, #tpu.memory_space<vmem>>, vector<8x8x128xbf16>
    %60 = vector.shape_cast %59 : vector<8x8x128xbf16> to vector<64x128xbf16>
    %c0_84 = arith.constant 0 : index
    %c128_85 = arith.constant 128 : index
    %61 = vector.load %arg14[%c0_84, %c128_85] : memref<64x1152xbf16, #tpu.memory_space<vmem>>, vector<64x128xbf16>
    tpu.vector_store %arg14[%c0_84, %c128_85], %60 {strides = array<i32>} : memref<64x1152xbf16, #tpu.memory_space<vmem>>, vector<64x128xbf16>,
    %c0_86 = arith.constant 0 : index
    %c2_87 = arith.constant 2 : index
    %c0_88 = arith.constant 0 : index
    %62 = vector.load %arg12[%c0_86, %c2_87, %c0_88] : memref<10x10x128xbf16, #tpu.memory_space<vmem>>, vector<8x8x128xbf16>
    %63 = vector.shape_cast %62 : vector<8x8x128xbf16> to vector<64x128xbf16>
    %c0_89 = arith.constant 0 : index
    %c256_90 = arith.constant 256 : index
    %64 = vector.load %arg14[%c0_89, %c256_90] : memref<64x1152xbf16, #tpu.memory_space<vmem>>, vector<64x128xbf16>
    tpu.vector_store %arg14[%c0_89, %c256_90], %63 {strides = array<i32>} : memref<64x1152xbf16, #tpu.memory_space<vmem>>, vector<64x128xbf16>,
    %c1_91 = arith.constant 1 : index
    %c0_92 = arith.constant 0 : index
    %c0_93 = arith.constant 0 : index
    %65 = vector.load %arg12[%c1_91, %c0_92, %c0_93] : memref<10x10x128xbf16, #tpu.memory_space<vmem>>, vector<8x8x128xbf16>
    %66 = vector.shape_cast %65 : vector<8x8x128xbf16> to vector<64x128xbf16>
    %c0_94 = arith.constant 0 : index
    %c384_95 = arith.constant 384 : index
    %67 = vector.load %arg14[%c0_94, %c384_95] : memref<64x1152xbf16, #tpu.memory_space<vmem>>, vector<64x128xbf16>
    tpu.vector_store %arg14[%c0_94, %c384_95], %66 {strides = array<i32>} : memref<64x1152xbf16, #tpu.memory_space<vmem>>, vector<64x128xbf16>,
    %c1_96 = arith.constant 1 : index
    %c1_97 = arith.constant 1 : index
    %c0_98 = arith.constant 0 : index
    %68 = vector.load %arg12[%c1_96, %c1_97, %c0_98] : memref<10x10x128xbf16, #tpu.memory_space<vmem>>, vector<8x8x128xbf16>
    %69 = vector.shape_cast %68 : vector<8x8x128xbf16> to vector<64x128xbf16>
    %c0_99 = arith.constant 0 : index
    %c512_100 = arith.constant 512 : index
    %70 = vector.load %arg14[%c0_99, %c512_100] : memref<64x1152xbf16, #tpu.memory_space<vmem>>, vector<64x128xbf16>
    tpu.vector_store %arg14[%c0_99, %c512_100], %69 {strides = array<i32>} : memref<64x1152xbf16, #tpu.memory_space<vmem>>, vector<64x128xbf16>,
    %c1_101 = arith.constant 1 : index
    %c2_102 = arith.constant 2 : index
    %c0_103 = arith.constant 0 : index
    %71 = vector.load %arg12[%c1_101, %c2_102, %c0_103] : memref<10x10x128xbf16, #tpu.memory_space<vmem>>, vector<8x8x128xbf16>
    %72 = vector.shape_cast %71 : vector<8x8x128xbf16> to vector<64x128xbf16>
    %c0_104 = arith.constant 0 : index
    %c640_105 = arith.constant 640 : index
    %73 = vector.load %arg14[%c0_104, %c640_105] : memref<64x1152xbf16, #tpu.memory_space<vmem>>, vector<64x128xbf16>
    tpu.vector_store %arg14[%c0_104, %c640_105], %72 {strides = array<i32>} : memref<64x1152xbf16, #tpu.memory_space<vmem>>, vector<64x128xbf16>,
    %c2_106 = arith.constant 2 : index
    %c0_107 = arith.constant 0 : index
    %c0_108 = arith.constant 0 : index
    %74 = vector.load %arg12[%c2_106, %c0_107, %c0_108] : memref<10x10x128xbf16, #tpu.memory_space<vmem>>, vector<8x8x128xbf16>
    %75 = vector.shape_cast %74 : vector<8x8x128xbf16> to vector<64x128xbf16>
    %c0_109 = arith.constant 0 : index
    %c768_110 = arith.constant 768 : index
    %76 = vector.load %arg14[%c0_109, %c768_110] : memref<64x1152xbf16, #tpu.memory_space<vmem>>, vector<64x128xbf16>
    tpu.vector_store %arg14[%c0_109, %c768_110], %75 {strides = array<i32>} : memref<64x1152xbf16, #tpu.memory_space<vmem>>, vector<64x128xbf16>,
    %c2_111 = arith.constant 2 : index
    %c1_112 = arith.constant 1 : index
    %c0_113 = arith.constant 0 : index
    %77 = vector.load %arg12[%c2_111, %c1_112, %c0_113] : memref<10x10x128xbf16, #tpu.memory_space<vmem>>, vector<8x8x128xbf16>
    %78 = vector.shape_cast %77 : vector<8x8x128xbf16> to vector<64x128xbf16>
    %c0_114 = arith.constant 0 : index
    %c896_115 = arith.constant 896 : index
    %79 = vector.load %arg14[%c0_114, %c896_115] : memref<64x1152xbf16, #tpu.memory_space<vmem>>, vector<64x128xbf16>
    tpu.vector_store %arg14[%c0_114, %c896_115], %78 {strides = array<i32>} : memref<64x1152xbf16, #tpu.memory_space<vmem>>, vector<64x128xbf16>,
    %c2_116 = arith.constant 2 : index
    %c2_117 = arith.constant 2 : index
    %c0_118 = arith.constant 0 : index
    %80 = vector.load %arg12[%c2_116, %c2_117, %c0_118] : memref<10x10x128xbf16, #tpu.memory_space<vmem>>, vector<8x8x128xbf16>
    %81 = vector.shape_cast %80 : vector<8x8x128xbf16> to vector<64x128xbf16>
    %c0_119 = arith.constant 0 : index
    %c1024_120 = arith.constant 1024 : index
    %82 = vector.load %arg14[%c0_119, %c1024_120] : memref<64x1152xbf16, #tpu.memory_space<vmem>>, vector<64x128xbf16>
    tpu.vector_store %arg14[%c0_119, %c1024_120], %81 {strides = array<i32>} : memref<64x1152xbf16, #tpu.memory_space<vmem>>, vector<64x128xbf16>,
    %c0_121 = arith.constant 0 : index
    %c0_122 = arith.constant 0 : index
    %83 = vector.load %arg14[%c0_121, %c0_122] : memref<64x1152xbf16, #tpu.memory_space<vmem>>, vector<64x1152xbf16>
    %c0_123 = arith.constant 0 : index
    %c0_124 = arith.constant 0 : index
    %84 = vector.load %arg5[%c0_123, %c0_124] : memref<1152x128xbf16, #tpu.memory_space<vmem>>, vector<1152x128xbf16>
    %cst_125 = arith.constant dense<0.000000e+00> : vector<64x128xf32>
    %85 = tpu.matmul %83, %84, %cst_125 {dimension_numbers = #tpu.dot_dimension_numbers<[1], [0], [0], [1], [0, 0, 1, 1], [], []>} : vector<64x1152xbf16>, vector<1152x128xbf16>, vector<64x128xf32> -> vector<64x128xf32>
    %c0_126 = arith.constant 0 : index
    %c0_127 = arith.constant 0 : index
    %86 = vector.load %arg6[%c0_126, %c0_127] : memref<1x128xf32, #tpu.memory_space<vmem>>, vector<1x128xf32>
    %87 = vector.broadcast %86 : vector<1x128xf32> to vector<64x128xf32>
    %88 = arith.mulf %85, %87 : vector<64x128xf32>
    %c0_128 = arith.constant 0 : index
    %c0_129 = arith.constant 0 : index
    %89 = vector.load %arg7[%c0_128, %c0_129] : memref<1x128xf32, #tpu.memory_space<vmem>>, vector<1x128xf32>
    %90 = vector.broadcast %89 : vector<1x128xf32> to vector<64x128xf32>
    %91 = arith.addf %88, %90 : vector<64x128xf32>
    %c0_130 = arith.constant 0 : index
    %c3_131 = arith.constant 3 : index
    %c0_132 = arith.constant 0 : index
    %c0_133 = arith.constant 0 : index
    %c0_134 = arith.constant 0 : index
    %92 = vector.load %arg1[%c0_130, %c3_131, %c0_132, %c0_133, %c0_134] : memref<1x4x9x9x128xbf16, #tpu.memory_space<vmem>>, vector<1x1x8x8x128xbf16>
    %93 = vector.shape_cast %92 : vector<1x1x8x8x128xbf16> to vector<8x8x128xbf16>
    %94 = vector.shape_cast %93 : vector<8x8x128xbf16> to vector<64x128xbf16>
    %c0_135 = arith.constant 0 : index
    %c0_136 = arith.constant 0 : index
    %95 = vector.load %arg8[%c0_135, %c0_136] : memref<128x128xbf16, #tpu.memory_space<vmem>>, vector<128x128xbf16>
    %cst_137 = arith.constant dense<0.000000e+00> : vector<64x128xf32>
    %96 = tpu.matmul %94, %95, %cst_137 {dimension_numbers = #tpu.dot_dimension_numbers<[1], [0], [0], [1], [0, 0, 1, 1], [], []>} : vector<64x128xbf16>, vector<128x128xbf16>, vector<64x128xf32> -> vector<64x128xf32>
    %c0_138 = arith.constant 0 : index
    %c0_139 = arith.constant 0 : index
    %97 = vector.load %arg9[%c0_138, %c0_139] : memref<1x128xf32, #tpu.memory_space<vmem>>, vector<1x128xf32>
    %98 = vector.broadcast %97 : vector<1x128xf32> to vector<64x128xf32>
    %99 = arith.mulf %96, %98 : vector<64x128xf32>
    %c0_140 = arith.constant 0 : index
    %c0_141 = arith.constant 0 : index
    %100 = vector.load %arg10[%c0_140, %c0_141] : memref<1x128xf32, #tpu.memory_space<vmem>>, vector<1x128xf32>
    %101 = vector.broadcast %100 : vector<1x128xf32> to vector<64x128xf32>
    %102 = arith.addf %99, %101 : vector<64x128xf32>
    %103 = arith.addf %91, %102 : vector<64x128xf32>
    %cst_142 = arith.constant 0.000000e+00 : f32
    %104 = vector.broadcast %cst_142 : f32 to vector<64x128xf32>
    %105 = arith.maximumf %103, %104 : vector<64x128xf32>
    %c0_143 = arith.constant 0 : index
    %c0_144 = arith.constant 0 : index
    %c0_145 = arith.constant 0 : index
    %106 = vector.load %arg11[%c0_143, %c0_144, %c0_145] : memref<1x64x128xf32, #tpu.memory_space<vmem>>, vector<1x64x128xf32>
    %107 = vector.shape_cast %106 : vector<1x64x128xf32> to vector<64x128xf32>
    %108 = vector.shape_cast %105 : vector<64x128xf32> to vector<1x64x128xf32>
    tpu.vector_store %arg11[%c0_143, %c0_144, %c0_145], %108 {strides = array<i32>} : memref<1x64x128xf32, #tpu.memory_space<vmem>>, vector<1x64x128xf32>,
    return
  }
  func.func @transform_0(%arg0: i32) -> (i32, i32, i32, i32, i32) {
    %c0_i32 = arith.constant 0 : i32
    %c0_i32_0 = arith.constant 0 : i32
    %c0_i32_1 = arith.constant 0 : i32
    %c0_i32_2 = arith.constant 0 : i32
    %c0_i32_3 = arith.constant 0 : i32
    return %arg0, %c0_i32, %c0_i32_0, %c0_i32_1, %c0_i32_2 : i32, i32, i32, i32, i32
  }
  func.func @transform_1(%arg0: i32) -> (i32, i32) {
    %c0_i32 = arith.constant 0 : i32
    %c0_i32_0 = arith.constant 0 : i32
    %c0_i32_1 = arith.constant 0 : i32
    return %c0_i32, %c0_i32_0 : i32, i32
  }
  func.func @transform_2(%arg0: i32) -> (i32, i32) {
    %c0_i32 = arith.constant 0 : i32
    %c0_i32_0 = arith.constant 0 : i32
    %c0_i32_1 = arith.constant 0 : i32
    return %c0_i32, %c0_i32_0 : i32, i32
  }
  func.func @transform_3(%arg0: i32) -> (i32, i32) {
    %c0_i32 = arith.constant 0 : i32
    %c0_i32_0 = arith.constant 0 : i32
    %c0_i32_1 = arith.constant 0 : i32
    return %c0_i32, %c0_i32_0 : i32, i32
  }
  func.func @transform_4(%arg0: i32) -> (i32, i32) {
    %c0_i32 = arith.constant 0 : i32
    %c0_i32_0 = arith.constant 0 : i32
    %c0_i32_1 = arith.constant 0 : i32
    return %c0_i32, %c0_i32_0 : i32, i32
  }
  func.func @transform_5(%arg0: i32) -> (i32, i32) {
    %c0_i32 = arith.constant 0 : i32
    %c0_i32_0 = arith.constant 0 : i32
    %c0_i32_1 = arith.constant 0 : i32
    return %c0_i32, %c0_i32_0 : i32, i32
  }
  func.func @transform_6(%arg0: i32) -> (i32, i32) {
    %c0_i32 = arith.constant 0 : i32
    %c0_i32_0 = arith.constant 0 : i32
    %c0_i32_1 = arith.constant 0 : i32
    return %c0_i32, %c0_i32_0 : i32, i32
  }
  func.func @transform_7(%arg0: i32) -> (i32, i32) {
    %c0_i32 = arith.constant 0 : i32
    %c0_i32_0 = arith.constant 0 : i32
    %c0_i32_1 = arith.constant 0 : i32
    return %c0_i32, %c0_i32_0 : i32, i32
  }
  func.func @transform_8(%arg0: i32) -> (i32, i32) {
    %c0_i32 = arith.constant 0 : i32
    %c0_i32_0 = arith.constant 0 : i32
    %c0_i32_1 = arith.constant 0 : i32
    return %c0_i32, %c0_i32_0 : i32, i32
  }
  func.func @transform_9(%arg0: i32) -> (i32, i32) {
    %c0_i32 = arith.constant 0 : i32
    %c0_i32_0 = arith.constant 0 : i32
    %c0_i32_1 = arith.constant 0 : i32
    return %c0_i32, %c0_i32_0 : i32, i32
  }
  func.func @transform_10(%arg0: i32) -> (i32, i32, i32) {
    %c0_i32 = arith.constant 0 : i32
    %c0_i32_0 = arith.constant 0 : i32
    %c0_i32_1 = arith.constant 0 : i32
    return %arg0, %c0_i32, %c0_i32_0 : i32, i32, i32
  }
}

</mosaic_0001>

<bundles_post_ra>
// kernel: tpu_custom_call.1
= control target key start
LH: loop header
LB: loop body
LE: loop exit
PB: predicated region body
PF: predicated region fallthrough
CT: control target
= control target key end

     0   :  { %15 = vsyncpa [#allocation6], 0  ;;  %s6839_s0 = inlined_call_operand.vmem [shape: bf16[2,4,9,9,128], index: 0, kind: input, shape index: {}]   ;;  %s6840_s1 = inlined_call_operand.vmem [shape: bf16[1152,128], index: 1, kind: input, shape index: {}]   ;;  %s6841_s2 = inlined_call_operand.vmem [shape: f32[1,128], index: 2, kind: input, shape index: {}]   ;;  %s6842_s3 = inlined_call_operand.vmem [shape: f32[1,128], index: 3, kind: input, shape index: {}]   ;;  %s6843_s4 = inlined_call_operand.hbm [shape: bf16[1152,128], index: 4, kind: input, shape index: {}]   ;;  %s6844_s5 = inlined_call_operand.vmem [shape: f32[1,128], index: 5, kind: input, shape index: {}]   ;;  %s6845_s6 = inlined_call_operand.vmem [shape: f32[1,128], index: 6, kind: input, shape index: {}]   ;;  %s6846_s7 = inlined_call_operand.vmem [shape: bf16[128,128], index: 7, kind: input, shape index: {}]   ;;  %s6847_s8 = inlined_call_operand.vmem [shape: f32[1,128], index: 8, kind: input, shape index: {}]   ;;  %s6848_s9 = inlined_call_operand.vmem [shape: f32[1,128], index: 9, kind: input, shape index: {}]   ;;  %s6849_s10 = inlined_call_operand.hbm [shape: f32[2,64,128], index: 10, kind: output, shape index: {}]  }
   0x1   :  { %16 = vsyncpa [#allocation7], 0 }
   0x2   :  { %18 = vsyncpa [#allocation7 + $0x1], 0  ;;  %s5749_s13 = smov 0   ;;  %s5751_s14 = smov 0  }
   0x3   :  { %s5753_s15 = smov 0   ;;  %s5755_s16 = smov 0  }
   0x4 LB: > { %s5770_s17 = sadd.s32 4294967295, %s5685_s16   ;;  %s4476_s18 = sadd.s32 4294967294, %s5685_s16   ;;  %s5685_s16 = sphi %s5755_s16, %s6885_s16   ;;  %s5681_s15 = sphi %s5753_s15, %s6884_s15   ;;  %s5677_s14 = sphi %s5751_s14, %s6883_s14   ;;  %s5673_s13 = sphi %s5749_s13, %s6882_s13  }
   0x5   : > { %s5774_s19 = sadd.s32 1, %s5685_s16   ;;  %s246_s20 = sadd.s32 1, %s5681_s15 }
   0x6   : > { %s243_s21 = ssub.s32 %s5685_s16, %s5774_s19  ;;  %p256_p0 = scmp.ne.s32.totalorder %s5681_s15, %s5677_s14 }
   0x7   : > { %p244_p1 = scmp.eq.s32.totalorder %s243_s21, 0  ;;  %p257_p2 = scmp.eq.s32.totalorder %s5770_s17, 1 }
   0x8   : > { %p262_p3 = scmp.ne.s32.totalorder %s5677_s14, %s5673_s13  ;;  %p263_p4 = scmp.eq.s32.totalorder %s4476_s18, 1 }
   0x9   : > { %s5785_s22 = scalar_select %p244_p1, %s5681_s15, %s246_s20  }
   0xa   : > { %p5787_p5 = por %p257_p2, %p256_p0  ;;  %p5791_p6 = por %p263_p4, %p262_p3 }
   0xb   : > { %p4477_p7 = scmp.ge.s32.totalorder %s5685_s16, 1  ;;  %p270_p8 = scmp.lt.s32.totalorder %s5685_s16, 3 }
   0xc   : > { %s6855_s24 = scalar_select %p5791_p6, 1, 0 }
   0xd   : > { %p5303_p9 = scmp.eq.s32.totalorder %s5770_s17, 0  ;;  %p5798_p10 = pnand %p4477_p7, %p270_p8 }
   0xe   : > { %s5687_s26 = smov [#allocation5]  }
   0xf   : > { %s291_s27 = sshll.u32 %s5687_s26, 4  ;;  %p5295_p11 = pneg %p5798_p10  ;;  %s292_s27 = int_to_ptr.vmem [resolvable:$true] %s291_s27 }
  0x10   : > { %s5606_s28 = scalar_lea.vmem %s292_s27, 9216  ;;  %p5614_p3 = scmp.lt.s32.totalorder %s292_s27, %s292_s27 }
  0x11   : > { %p5296_p12 = pnand %p5303_p9, %p5295_p11  ;;  %p5607_p0 = scmp.ne.s32.totalorder %s292_s27, %s5606_s28 }
  0x12   : > { %p5615_p4 = scmp.lt.s32.totalorder %s5606_s28, %s5606_s28 }
  0x13   : > { %p5597_p13 = pneg %p5296_p12 }
  0x14   : > { %p5616_p6 = por %p5615_p4, %p5614_p3 }
  0x15   : > { %p5609_p1 = pnand %p5607_p0, %p5597_p13 }
  0x17   : > { %p5610_p2 = pneg %p5609_p1 }
  0x19   : > { %p5617_p7 = pnand %p5616_p6, %p5610_p2 }
  0x1b   : > { %5620 = shalt.err (!%p5617_p7)
}
  0x1c   : > { %s5688_s29 = smov 64   ;;  %s5689_s30 = smov 4  }
  0x1d   : > { %5298 = dma.hbm_to_vmem [thread:$0]  (!%p5296_p12), %s6843_s4, 9216, %s292_s27, [#allocation6], %s5688_s29, %s5688_s29, %s5689_s30  }
  0x1e   : > { %330 = sbr.rel (%p5798_p10) target bundleno = 750 (0x2ee), region = 60 }
  0x23   : > { %5664 = dma.done.wait (%p5303_p9), [#allocation6], 9216  }
  0x24   : > { %5666 = vsyncadd (%p5303_p9), [#allocation6], 4294958080  ;;  %v5344_v0 = vld [vmem:[%s6840_s1 + $0x78] sm:$0xff]   ;;  %v5348_v4 = vld [vmem:[%s6840_s1 + $0x70] sm:$0xff]   ;;  %p368_p6 = scmp.lt.s32.totalorder %s5770_s17, 1  ;;  %v6857_v50 = vmov 0 }
  0x25   : > { %v5345_v1 = vld [vmem:[%s6840_s1 + $0xf8] sm:$0xff]   ;;  %4844 = vmatprep.subr.bf16.mxu0 %v5344_v0  ;;  %v5349_v5 = vld [vmem:[%s6840_s1 + $0xf0] sm:$0xff]   ;;  %v5352_v8 = vld [vmem:[%s6840_s1 + $0x68] sm:$0xff]   ;;  %vm482_vm0 = vsmask.f32 3328  ;;  %vm380_vm3 = vcmask 1040384  }
  0x26   : > { %v5346_v2 = vld [vmem:[%s6840_s1 + $0x38] sm:$0xff]   ;;  %4884 = vmatprep.subr.bf16.mxu1 %v5345_v1  ;;  %v5350_v6 = vld [vmem:[%s6840_s1 + $0x30] sm:$0xff]   ;;  %v5353_v9 = vld [vmem:[%s6840_s1 + $0xe8] sm:$0xff]   ;;  %s369_s21 = scalar_select %p368_p6, %s5770_s17, 1  ;;  %vm483_vm1 = vsmask.f32 7440 }
  0x27   : > { %v5347_v3 = vld [vmem:[%s6840_s1 + $0xb8] sm:$0xff]   ;;  %4845 = vmatpush3.bf16.msra.mxu0 %v5346_v2  ;;  %v5351_v7 = vld [vmem:[%s6840_s1 + $0xb0] sm:$0xff]   ;;  %v5354_v10 = vld [vmem:[%s6840_s1 + $0x28] sm:$0xff]   ;;  %vm381_vm4 = vsmask.f32 256  ;;  %vm2486_vm8 = vcmask 1042432  }
  0x28   : > { %4885 = vmatpush3.bf16.msra.mxu1 %v5347_v3  ;;  %4846 = vmatprep.subr.bf16.mxu0 %v5348_v4  ;;  %v5355_v11 = vld [vmem:[%s6840_s1 + $0xa8] sm:$0xff]   ;;  %v5356_v12 = vld [vmem:[%s6840_s1 + $0x60] sm:$0xff]   ;;  %v5360_v16 = vld [vmem:[%s6840_s1 + $0x58] sm:$0xff]   ;;  %s5288_s18 = smul.u32 288, %s369_s21  ;;  %vm407_vm6 = vsmask.f32 7938 }
  0x29   : > { %4886 = vmatprep.subr.bf16.mxu1 %v5349_v5  ;;  %v5357_v13 = vld [vmem:[%s6840_s1 + $0xe0] sm:$0xff]   ;;  %v5361_v17 = vld [vmem:[%s6840_s1 + $0xd8] sm:$0xff]   ;;  %v5364_v20 = vld [vmem:[%s6840_s1 + $0x50] sm:$0xff]   ;;  %vm2487_vm9 = vcmask 1046532   ;;  %vm2244_vm11 = vcmask 1043456   ;;  %s365_s12 = sand.u32 1, %s5677_s14  }
  0x2a   : > { %v5358_v14 = vld [vmem:[%s6840_s1 + $0x20] sm:$0xff]   ;;  %v5362_v18 = vld [vmem:[%s6840_s1 + $0x18] sm:$0xff]   ;;  %v5365_v21 = vld [vmem:[%s6840_s1 + $0xd0] sm:$0xff]   ;;  %s5913_s20 = scalar_lea.vmem %s6839_s0, %s5288_s18  ;;  %s4482_s26 = sshll.u32 %s365_s12, 6 }
  0x2b   : > { %4847 = vmatpush3.bf16.msra.mxu0 %v5350_v6  ;;  %v5359_v15 = vld [vmem:[%s6840_s1 + $0xa0] sm:$0xff]   ;;  %v5363_v19 = vld [vmem:[%s6840_s1 + $0x98] sm:$0xff]   ;;  %v5366_v22 = vld [vmem:[%s6840_s1 + $0x10] sm:$0xff]   ;;  %s6735_s28 = scalar_lea.vmem [#allocation8], %s4482_s26  ;;  %s6799_s30 = scalar_lea.sflag [#allocation7], %s365_s12 }
  0x2c   : > { %4887 = vmatpush3.bf16.msra.mxu1 %v5351_v7  ;;  %4848 = vmatprep.subr.bf16.mxu0 %v5352_v8  ;;  %v5367_v23 = vld [vmem:[%s6840_s1 + $0x90] sm:$0xff]   ;;  %v5368_v24 = vld [vmem:[%s6840_s1 + $0x48] sm:$0xff]   ;;  %v5372_v28 = vld [vmem:[%s6840_s1 + $0x40] sm:$0xff]   ;;  %s4402_s18 = sshll.u32 %s6735_s28, 4  ;;  %s5691_s21 = smov [#allocation8]   ;;  %s6793_s18 = int_to_ptr.vmem [resolvable:$true] %s4402_s18 }
  0x2d   : > { %4888 = vmatprep.subr.bf16.mxu1 %v5353_v9  ;;  %v5369_v25 = vld [vmem:[%s6840_s1 + $0xc8] sm:$0xff]   ;;  %v5373_v29 = vld [vmem:[%s6840_s1 + $0xc0] sm:$0xff]   ;;  %v4485_v35 = vld [vmem:[%s5913_s20 + $0x50] sm:$0xf]  ;;  %s5625_s11 = sshll.u32 %s5691_s21, 4  ;;  %s5626_s11 = int_to_ptr.vmem [resolvable:$false] %s5625_s11 }
  0x2e   : > { %v5370_v26 = vld [vmem:[%s6840_s1 + $0x8] sm:$0xff]   ;;  %v5374_v30 = vld [vmem:[%s6840_s1] sm:$0xff]   ;;  %459 = vst [vmem:[#allocation3 + $0x28] sm:$0xf] %v4485_v35  ;;  %v4492_v46 = vld [vmem:[%s5913_s20 + $0x90] sm:$0xf]  ;;  %p5628_p11 = scmp.lt.s32.totalorder %s6793_s18, %s5626_s11 }
  0x2f   : > { %4849 = vmatpush3.bf16.msra.mxu0 %v5354_v10  ;;  %v5371_v27 = vld [vmem:[%s6840_s1 + $0x88] sm:$0xff]   ;;  %v5375_v31 = vld [vmem:[%s6840_s1 + $0x80] sm:$0xff]   ;;  %v4493_v49 = vld [vmem:[%s5913_s20 + $0x98] sm:$0xf]  ;;  %622 = vst [vmem:[#allocation3 + $0xc] sm:$0xf] %v4492_v46 }
  0x30   : > { %4889 = vmatpush3.bf16.msra.mxu1 %v5355_v11  ;;  %4850 = vmatprep.subr.bf16.mxu0 %v5356_v12  ;;  %v433_v32 = vld [vmem:[%s5913_s20] sm:$0xf]  ;;  %v434_v33 = vld [vmem:[%s5913_s20 + $0x8] sm:$0xf]  ;;  %v467_v37 = vld [vmem:[%s5913_s20 + $0x4] sm:$0x1] }
  0x31   : > { %4890 = vmatprep.subr.bf16.mxu1 %v5357_v13  ;;  %v4484_v34 = vld [vmem:[%s5913_s20 + $0x48] sm:$0xf]  ;;  %441 = vst [vmem:[#allocation3] sm:$0xf] %v433_v32  ;;  %442 = vst [vmem:[#allocation3 + $0x24] sm:$0xf] %v434_v33 }
  0x32   : > { %458 = vst [vmem:[#allocation3 + $0x4] sm:$0xf] %v4484_v34  ;;  %v466_v36 = vld [vmem:[%s5913_s20] sm:$0xf]  ;;  %v468_v38 = vld [vmem:[%s5913_s20 + $0x8] sm:$0xf]  ;;  %vm5930_vm2 = vmor %vm482_vm0, %vm483_vm1 }
  0x33   : > { %4851 = vmatpush3.bf16.msra.mxu0 %v5358_v14  ;;  %v469_v39 = vld [vmem:[%s5913_s20 + $0xc] sm:$0x1]  ;;  %v486_v40 = vshrl.u32 %v466_v36, 16  ;;  %v489_v41 = vshll.u32 %v466_v36, 16  ;;  %v495_v42 = vshll.u32 %v467_v37, 16  ;;  %v500_v43 = vshrl.u32 %v468_v38, 16  ;;  %vm6192_vm5 = vmand %vm380_vm3, %vm381_vm4 }
  0x34   : > { %4891 = vmatpush3.bf16.msra.mxu1 %v5359_v15  ;;  %4852 = vmatprep.subr.bf16.mxu0 %v5360_v16  ;;  %v503_v44 = vshll.u32 %v468_v38, 16  ;;  %v509_v45 = vshll.u32 %v469_v39, 16  ;;  %v6858_v50 = vsel %vm5930_vm2, 4294967295, %v6857_v50  ;;  %623 = vst [vmem:[#allocation3 + $0x30] sm:$0xf] %v4493_v49  ;;  %v5382_v55 = vld [vmem:[%s6840_s1 + $0x178] sm:$0xff]   ;;  %vm6199_vm7 = vmand %vm380_vm3, %vm407_vm6 }
  0x35   : > { %4892 = vmatprep.subr.bf16.mxu1 %v5361_v17  ;;  %v488_v47 = vrot.slane %v486_v40, 4  ;;  %v491_v48 = vrot.slane %v489_v41, 5  ;;  %6859 = vst [vmem:[#allocation11_spill] sm:$0xff] %v6858_v50  ;;  %v502_v51 = vrot.slane %v500_v43, 4  ;;  %v497_v54 = vrot.slane %v495_v42, 5  ;;  %v5383_v58 = vld [vmem:[%s6840_s1 + $0x138] sm:$0xff]   ;;  %vm6245_vm10 = vmor %vm2486_vm8, %vm2487_vm9 }
  0x36   : > { %v505_v52 = vrot.slane %v503_v44, 5  ;;  %v511_v57 = vrot.slane %v509_v45, 5  ;;  %v5384_v60 = vld [vmem:[%s6840_s1 + $0x1f8] sm:$0xff]   ;;  %v5386_v2 = vld [vmem:[%s6840_s1 + $0x170] sm:$0xff]   ;;  %v4487_v7 = vld [vmem:[%s5913_s20 + $0x60] sm:$0xf] }
  0x37   : > { %4853 = vmatpush3.bf16.msra.mxu0 %v5362_v18  ;;  %v492_v53 = vor.u32 %v491_v48, %v488_v47  ;;  %v5387_v3 = vld [vmem:[%s6840_s1 + $0x130] sm:$0xff]   ;;  %v436_v5 = vld [vmem:[%s5913_s20 + $0x18] sm:$0xf]  ;;  %461 = vst [vmem:[#allocation3 + $0x70] sm:$0xf] %v4487_v7  ;;  %v5396_v40 = vld [vmem:[%s6840_s1 + $0x128] sm:$0xff]  }
  0x38   : > { %4893 = vmatpush3.bf16.msra.mxu1 %v5363_v19  ;;  %4854 = vmatprep.subr.bf16.mxu0 %v5364_v20  ;;  %v506_v56 = vor.u32 %v505_v52, %v502_v51  ;;  %v5376_v61 = vld [vmem:[#allocation3] ss:$36 sps:$4 sm:$0xff]   ;;  %v4486_v6 = vld [vmem:[%s5913_s20 + $0x58] sm:$0xf]  ;;  %444 = vst [vmem:[#allocation3 + $0x6c] sm:$0xf] %v436_v5  ;;  %vm6394_vm12 = vmand %vm2244_vm11, %vm407_vm6 }
  0x39   : > { %4894 = vmatprep.subr.bf16.mxu1 %v5365_v21  ;;  %v493_v59 = vrot.slane %v492_v53, 4  ;;  %v5378_v62 = vld [vmem:[#allocation3 + $0x4] ss:$36 sps:$4 sm:$0xff]   ;;  %v435_v4 = vld [vmem:[%s5913_s20 + $0x10] sm:$0xf]  ;;  %v5397_v42 = vld [vmem:[%s6840_s1 + $0x1e8] sm:$0xff]  }
  0x3a   : > { %v507_v63 = vrot.slane %v506_v56, 4  ;;  %1801 = vmatprep.mubr.bf16.mxu0 %v5378_v62  ;;  %443 = vst [vmem:[#allocation3 + $0x48] sm:$0xf] %v435_v4  ;;  %460 = vst [vmem:[#allocation3 + $0x4c] sm:$0xf] %v4486_v6  ;;  %v5385_v16 = vld [vmem:[%s6840_s1 + $0x1b8] sm:$0xff]  }
  0x3b   : > { %4855 = vmatpush3.bf16.msra.mxu0 %v5366_v22  ;;  %v498_v0 = vsel %vm5930_vm2, %v493_v59, %v497_v54  ;;  %v470_v8 = vld [vmem:[%s5913_s20 + $0x10] sm:$0xf]  ;;  %v471_v9 = vld [vmem:[%s5913_s20 + $0x14] sm:$0x1]  ;;  %v472_v10 = vld [vmem:[%s5913_s20 + $0x18] sm:$0xf] }
  0x3c   : > { %4895 = vmatpush3.bf16.msra.mxu1 %v5367_v23  ;;  %4856 = vmatprep.subr.bf16.mxu0 %v5368_v24  ;;  %v512_v1 = vsel %vm5930_vm2, %v507_v63, %v511_v57  ;;  %605 = vst [vmem:[#allocation3 + $0x8] sm:$0xf] %v498_v0  ;;  %v473_v11 = vld [vmem:[%s5913_s20 + $0x1c] sm:$0x1]  ;;  %v514_v12 = vshrl.u32 %v470_v8, 16  ;;  %v517_v13 = vshll.u32 %v470_v8, 16 }
  0x3d   : > { %4896 = vmatprep.subr.bf16.mxu1 %v5369_v25  ;;  %606 = vst [vmem:[#allocation3 + $0x2c] sm:$0xf] %v512_v1  ;;  %v523_v14 = vshll.u32 %v471_v9, 16  ;;  %v528_v15 = vshrl.u32 %v472_v10, 16  ;;  %v531_v17 = vshll.u32 %v472_v10, 16  ;;  %v537_v18 = vshll.u32 %v473_v11, 16 }
  0x3e   : > { %v4494_v19 = vld [vmem:[%s5913_s20 + $0xa0] sm:$0xf]  ;;  %v4495_v20 = vld [vmem:[%s5913_s20 + $0xa8] sm:$0xf]  ;;  %v5388_v21 = vld [vmem:[%s6840_s1 + $0x1f0] sm:$0xff]   ;;  %v516_v22 = vrot.slane %v514_v12, 4 }
  0x3f   : > { %4857 = vmatpush3.bf16.msra.mxu0 %v5370_v26  ;;  %v519_v23 = vrot.slane %v517_v13, 5  ;;  %v525_v24 = vrot.slane %v523_v14, 5  ;;  %v530_v25 = vrot.slane %v528_v15, 4  ;;  %624 = vst [vmem:[#allocation3 + $0x54] sm:$0xf] %v4494_v19  ;;  %v5393_v33 = vld [vmem:[%s6840_s1 + $0x1b0] sm:$0xff]  }
  0x40   : > { %4897 = vmatpush3.bf16.msra.mxu1 %v5371_v27  ;;  %4858 = vmatprep.subr.bf16.mxu0 %v5372_v28  ;;  %625 = vst [vmem:[#allocation3 + $0x78] sm:$0xf] %v4495_v20  ;;  %v5381_v27 = vld [vmem:[#allocation3 + $0xc] ss:$36 sps:$4 sm:$0xff]   ;;  %v533_v28 = vrot.slane %v531_v17, 5  ;;  %v5398_v44 = vld [vmem:[%s6840_s1 + $0x1a8] sm:$0xff]  }
  0x41   : > { %4898 = vmatprep.subr.bf16.mxu1 %v5373_v29  ;;  %v520_v29 = vor.u32 %v519_v23, %v516_v22  ;;  %1866 = vmatprep.mubr.bf16.mxu1 %v5381_v27  ;;  %v979_v34 = vld [vmem:[#allocation3 + $0x48] sm:$0xff]  ;;  %v5399_v45 = vld [vmem:[%s6840_s1 + $0x160] sm:$0xff]   ;;  %v438_v49 = vld [vmem:[%s5913_s20 + $0x28] sm:$0xf]  ;;  %s5627_s26 = scalar_lea.vmem %s5626_s11, 2048 }
  0x42   : > { %v534_v32 = vor.u32 %v533_v28, %v530_v25  ;;  %v984_v35 = vld [vmem:[#allocation3 + $0x6c] sm:$0xff]  ;;  %v4488_v51 = vld [vmem:[%s5913_s20 + $0x68] sm:$0xf]  ;;  %v4489_v52 = vld [vmem:[%s5913_s20 + $0x70] sm:$0xf] }
  0x43   : > { %4859 = vmatpush3.bf16.msra.mxu0 %v5374_v30  ;;  %v539_v30 = vrot.slane %v537_v18, 5  ;;  %v5389_v36 = vld [vmem:[#allocation3 + $0x4c] ss:$36 sps:$4 sm:$0xff]   ;;  %v521_v37 = vrot.slane %v520_v29, 4  ;;  %v4565_v39 = vcombine.low %v979_v34, %v984_v35  ;;  %446 = vst [vmem:[#allocation3 + $0xb4] sm:$0xf] %v438_v49 }
  0x44   : > { %4899 = vmatpush3.bf16.msra.mxu1 %v5375_v31  ;;  %4924 = vmatprep.subr.bf16.mxu0 %v5382_v55  ;;  %v5379_v26 = vld [vmem:[#allocation3 + $0x8] ss:$36 sps:$4 sm:$0xff]   ;;  %v5395_v31 = vld [vmem:[%s6840_s1 + $0x168] sm:$0xff]   ;;  %v535_v38 = vrot.slane %v534_v32, 4  ;;  %v5400_v46 = vld [vmem:[%s6840_s1 + $0x120] sm:$0xff]  }
  0x45   : > { %4964 = vmatprep.subr.bf16.mxu1 %v5384_v60  ;;  %v526_v41 = vsel %vm5930_vm2, %v521_v37, %v525_v24  ;;  %v5401_v47 = vld [vmem:[%s6840_s1 + $0x1e0] sm:$0xff]   ;;  %462 = vst [vmem:[#allocation3 + $0x94] sm:$0xf] %v4488_v51  ;;  %463 = vst [vmem:[#allocation3 + $0xb8] sm:$0xf] %v4489_v52  ;;  %v5408_v10 = vld [vmem:[%s6840_s1 + $0x158] sm:$0xff]  }
  0x46   : > { %1802 = vmatmul.mubr.bf16.vlgmr.msra.gmra.mxu0 %v5376_v61  ;;  %v540_v43 = vsel %vm5930_vm2, %v535_v38, %v539_v30  ;;  %607 = vst [vmem:[#allocation3 + $0x50] sm:$0xf] %v526_v41  ;;  %v437_v48 = vld [vmem:[%s5913_s20 + $0x20] sm:$0xf]  ;;  %v475_v54 = vld [vmem:[%s5913_s20 + $0x24] sm:$0x1] }
  0x47   : > { %4925 = vmatpush3.bf16.msra.mxu0 %v5383_v58  ;;  %1867 = vmatmul.mubr.bf16.vlgmr.msra.gmra.mxu1 %v5379_v26  ;;  %608 = vst [vmem:[#allocation3 + $0x74] sm:$0xf] %v540_v43  ;;  %445 = vst [vmem:[#allocation3 + $0x90] sm:$0xf] %v437_v48  ;;  %v474_v53 = vld [vmem:[%s5913_s20 + $0x20] sm:$0xf] }
  0x48   : > { %4926 = vmatprep.subr.bf16.mxu0 %v5386_v2  ;;  %4965 = vmatpush3.bf16.msra.mxu1 %v5385_v16  ;;  %v476_v55 = vld [vmem:[%s5913_s20 + $0x28] sm:$0xf]  ;;  %v477_v56 = vld [vmem:[%s5913_s20 + $0x2c] sm:$0x1]  ;;  %v542_v57 = vshrl.u32 %v474_v53, 16  ;;  %v545_v58 = vshll.u32 %v474_v53, 16 }
  0x49   : > { %4966 = vmatprep.subr.bf16.mxu1 %v5388_v21  ;;  %1809 = vmatprep.mubr.bf16.mxu0 %v5389_v36  ;;  %v551_v59 = vshll.u32 %v475_v54, 16  ;;  %v556_v60 = vshrl.u32 %v476_v55, 16  ;;  %v559_v61 = vshll.u32 %v476_v55, 16  ;;  %v565_v62 = vshll.u32 %v477_v56, 16  ;;  %v4496_v63 = vld [vmem:[%s5913_s20 + $0xb0] sm:$0xf] }
  0x4a   : > { %v5406_v0 = vld [vmem:[%s6840_s1 + $0x1a0] sm:$0xff]   ;;  %626 = vst [vmem:[#allocation3 + $0x9c] sm:$0xf] %v4496_v63  ;;  %v547_v4 = vrot.slane %v545_v58, 5  ;;  %v4497_v8 = vld [vmem:[%s5913_s20 + $0xb8] sm:$0xf] }
  0x4b   : > { %4927 = vmatpush3.bf16.msra.mxu0 %v5387_v3  ;;  %v5391_v1 = vld [vmem:[#allocation3 + $0x54] ss:$36 sps:$4 sm:$0xff]   ;;  %v544_v3 = vrot.slane %v542_v57, 4  ;;  %v553_v5 = vrot.slane %v551_v59, 5  ;;  %v558_v6 = vrot.slane %v556_v60, 4  ;;  %v561_v7 = vrot.slane %v559_v61, 5 }
  0x4c   : > { %4928 = vmatprep.subr.bf16.mxu0 %v5395_v31  ;;  %4967 = vmatpush3.bf16.msra.mxu1 %v5393_v33  ;;  %v567_v9 = vrot.slane %v565_v62, 5  ;;  %627 = vst [vmem:[#allocation3 + $0xc0] sm:$0xf] %v4497_v8  ;;  %v994_v14 = vld [vmem:[#allocation3 + $0xb4] sm:$0xff]  ;;  %v5409_v19 = vld [vmem:[%s6840_s1 + $0x118] sm:$0xff]   ;;  %v5412_v24 = vld [vmem:[%s6840_s1 + $0x150] sm:$0xff]  }
  0x4d   : > { %4968 = vmatprep.subr.bf16.mxu1 %v5397_v42  ;;  %1874 = vmatprep.mubr.bf16.mxu1 %v5391_v1  ;;  %v548_v11 = vor.u32 %v547_v4, %v544_v3  ;;  %v562_v12 = vor.u32 %v561_v7, %v558_v6  ;;  %v5402_v15 = vld [vmem:[#allocation3 + $0x94] ss:$36 sps:$4 sm:$0xff]   ;;  %v5410_v20 = vld [vmem:[%s6840_s1 + $0x1d8] sm:$0xff]   ;;  %v5413_v25 = vld [vmem:[%s6840_s1 + $0x110] sm:$0xff]  }
  0x4e   : > { %1810 = vmatmul.mubr.bf16.gmra.mxu0 %v4565_v39  ;;  %v5394_v2 = vld [vmem:[#allocation3 + $0x50] ss:$36 sps:$4 sm:$0xff]   ;;  %v5411_v23 = vld [vmem:[%s6840_s1 + $0x198] sm:$0xff]   ;;  %v5414_v26 = vld [vmem:[%s6840_s1 + $0x1d0] sm:$0xff]  }
  0x4f   : > { %4929 = vmatpush3.bf16.msra.mxu0 %v5396_v40  ;;  %1875 = vmatmul.mubr.bf16.gmra.mxu1 %v5394_v2  ;;  %v989_v13 = vld [vmem:[#allocation3 + $0x90] sm:$0xff]  ;;  %v549_v16 = vrot.slane %v548_v11, 4  ;;  %v563_v17 = vrot.slane %v562_v12, 4  ;;  %v439_v27 = vld [vmem:[%s5913_s20 + $0x30] sm:$0xf]  ;;  %v5421_v55 = vld [vmem:[%s6840_s1 + $0x148] sm:$0xff]  }
  0x50   : > { %4930 = vmatprep.subr.bf16.mxu0 %v5399_v45  ;;  %4969 = vmatpush3.bf16.msra.mxu1 %v5398_v44  ;;  %v4574_v18 = vcombine.low %v989_v13, %v994_v14  ;;  %v440_v28 = vld [vmem:[%s5913_s20 + $0x38] sm:$0xf]  ;;  %447 = vst [vmem:[#allocation3 + $0xd8] sm:$0xf] %v439_v27  ;;  %v4491_v30 = vld [vmem:[%s5913_s20 + $0x80] sm:$0xf] }
  0x51   : > { %4970 = vmatprep.subr.bf16.mxu1 %v5401_v47  ;;  %1817 = vmatprep.mubr.bf16.mxu0 %v5402_v15  ;;  %v554_v21 = vsel %vm5930_vm2, %v549_v16, %v553_v5  ;;  %v568_v22 = vsel %vm5930_vm2, %v563_v17, %v567_v9  ;;  %v4490_v29 = vld [vmem:[%s5913_s20 + $0x78] sm:$0xf]  ;;  %448 = vst [vmem:[#allocation3 + $0xfc] sm:$0xf] %v440_v28  ;;  %465 = vst [vmem:[#allocation3 + $0x100] sm:$0xf] %v4491_v30 }
  0x52   : > { %609 = vst [vmem:[#allocation3 + $0x98] sm:$0xf] %v554_v21  ;;  %610 = vst [vmem:[#allocation3 + $0xbc] sm:$0xf] %v568_v22  ;;  %v478_v31 = vld [vmem:[%s5913_s20 + $0x30] sm:$0xf] }
  0x53   : > { %4931 = vmatpush3.bf16.msra.mxu0 %v5400_v46  ;;  %464 = vst [vmem:[#allocation3 + $0xdc] sm:$0xf] %v4490_v29  ;;  %v479_v32 = vld [vmem:[%s5913_s20 + $0x34] sm:$0x1]  ;;  %v480_v33 = vld [vmem:[%s5913_s20 + $0x38] sm:$0xf] }
  0x54   : > { %4971 = vmatpush3.bf16.msra.mxu1 %v5406_v0  ;;  %4932 = vmatprep.subr.bf16.mxu0 %v5408_v10  ;;  %v481_v34 = vld [vmem:[%s5913_s20 + $0x3c] sm:$0x1]  ;;  %v570_v35 = vshrl.u32 %v478_v31, 16  ;;  %v573_v36 = vshll.u32 %v478_v31, 16  ;;  %v579_v37 = vshll.u32 %v479_v32, 16  ;;  %v584_v38 = vshrl.u32 %v480_v33, 16 }
  0x55   : > { %4972 = vmatprep.subr.bf16.mxu1 %v5410_v20  ;;  %v587_v39 = vshll.u32 %v480_v33, 16  ;;  %v593_v40 = vshll.u32 %v481_v34, 16  ;;  %v4498_v41 = vld [vmem:[%s5913_s20 + $0xc0] sm:$0xf]  ;;  %v4499_v42 = vld [vmem:[%s5913_s20 + $0xc8] sm:$0xf] }
  0x56   : > { %1818 = vmatmul.mubr.bf16.gmra.mxu0 %v4574_v18  ;;  %v5404_v43 = vld [vmem:[#allocation3 + $0x9c] ss:$36 sps:$4 sm:$0xff]   ;;  %v572_v44 = vrot.slane %v570_v35, 4  ;;  %v575_v45 = vrot.slane %v573_v36, 5  ;;  %628 = vst [vmem:[#allocation3 + $0xe4] sm:$0xf] %v4498_v41 }
  0x57   : > { %4933 = vmatpush3.bf16.msra.mxu0 %v5409_v19  ;;  %629 = vst [vmem:[#allocation3 + $0x108] sm:$0xf] %v4499_v42  ;;  %v586_v47 = vrot.slane %v584_v38, 4  ;;  %v589_v48 = vrot.slane %v587_v39, 5  ;;  %1882 = vmatprep.mubr.bf16.mxu1 %v5404_v43  ;;  %v581_v51 = vrot.slane %v579_v37, 5  ;;  %v5419_v52 = vld [vmem:[%s6840_s1 + $0x190] sm:$0xff]  }
  0x58   : > { %4973 = vmatpush3.bf16.msra.mxu1 %v5411_v23  ;;  %4934 = vmatprep.subr.bf16.mxu0 %v5412_v24  ;;  %v576_v49 = vor.u32 %v575_v45, %v572_v44  ;;  %v595_v54 = vrot.slane %v593_v40, 5  ;;  %v1004_v57 = vld [vmem:[#allocation3 + $0xfc] sm:$0xff]  ;;  %v5425_v3 = vld [vmem:[%s6840_s1 + $0x140] sm:$0xff]   ;;  %v4500_v6 = vld [vmem:[%s5913_s20 + $0xd8] sm:$0xf] }
  0x59   : > { %4974 = vmatprep.subr.bf16.mxu1 %v5414_v26  ;;  %v5407_v46 = vld [vmem:[#allocation3 + $0x98] ss:$36 sps:$4 sm:$0xff]   ;;  %v590_v53 = vor.u32 %v589_v48, %v586_v47  ;;  %v5426_v4 = vld [vmem:[%s6840_s1 + $0x100] sm:$0xff]   ;;  %v4508_v8 = vld [vmem:[%s5913_s20 + $0x90] sm:$0xf] }
  0x5a   : > { %1883 = vmatmul.mubr.bf16.gmra.mxu1 %v5407_v46  ;;  %v999_v56 = vld [vmem:[#allocation3 + $0xd8] sm:$0xff]  ;;  %v577_v59 = vrot.slane %v576_v49, 4  ;;  %v5427_v5 = vld [vmem:[%s6840_s1 + $0x1c0] sm:$0xff]   ;;  %639 = vst [vmem:[#allocation3 + $0x10] sm:$0xf] %v4500_v6  ;;  %v664_v12 = vshrl.u32 %v4508_v8, 16 }
  0x5b   : > { %4935 = vmatpush3.bf16.msra.mxu0 %v5413_v25  ;;  %v5415_v58 = vld [vmem:[#allocation3 + $0xdc] ss:$36 sps:$4 sm:$0xff]   ;;  %v591_v60 = vrot.slane %v590_v53, 4  ;;  %v4583_v61 = vcombine.low %v999_v56, %v1004_v57  ;;  %v4501_v7 = vld [vmem:[%s5913_s20 + $0xe0] sm:$0xf]  ;;  %v667_v13 = vshll.u32 %v4508_v8, 16 }
  0x5c   : > { %4975 = vmatpush3.bf16.msra.mxu1 %v5419_v52  ;;  %4936 = vmatprep.subr.bf16.mxu0 %v5421_v55  ;;  %v5422_v62 = vld [vmem:[%s6840_s1 + $0x108] sm:$0xff]   ;;  %v582_v63 = vsel %vm5930_vm2, %v577_v59, %v581_v51  ;;  %640 = vst [vmem:[#allocation3 + $0x34] sm:$0xf] %v4501_v7  ;;  %v4509_v9 = vld [vmem:[%s5913_s20 + $0x94] sm:$0x1]  ;;  %v5431_v18 = vld [vmem:[%s6840_s1 + $0x180] sm:$0xff]  }
  0x5d   : > { %1825 = vmatprep.mubr.bf16.mxu0 %v5415_v58  ;;  %v5423_v0 = vld [vmem:[%s6840_s1 + $0x1c8] sm:$0xff]   ;;  %v596_v1 = vsel %vm5930_vm2, %v591_v60, %v595_v54  ;;  %611 = vst [vmem:[#allocation3 + $0xe0] sm:$0xf] %v582_v63  ;;  %v4510_v10 = vld [vmem:[%s5913_s20 + $0x98] sm:$0xf]  ;;  %v673_v14 = vshll.u32 %v4509_v9, 16 }
  0x5e   : > { %1826 = vmatmul.mubr.bf16.gmra.mxu0 %v4583_v61  ;;  %v5424_v2 = vld [vmem:[%s6840_s1 + $0x188] sm:$0xff]   ;;  %612 = vst [vmem:[#allocation3 + $0x104] sm:$0xf] %v596_v1  ;;  %4976 = vmatprep.subr.bf16.mxu1 %v5423_v0  ;;  %v4511_v11 = vld [vmem:[%s5913_s20 + $0x9c] sm:$0x1]  ;;  %v678_v15 = vshrl.u32 %v4510_v10, 16 }
  0x5f   : > { %4937 = vmatpush3.bf16.msra.mxu0 %v5422_v62  ;;  %v681_v16 = vshll.u32 %v4510_v10, 16  ;;  %v687_v17 = vshll.u32 %v4511_v11, 16  ;;  %v5417_v19 = vld [vmem:[#allocation3 + $0xe4] ss:$36 sps:$4 sm:$0xff]   ;;  %v666_v21 = vrot.slane %v664_v12, 4  ;;  %v669_v22 = vrot.slane %v667_v13, 5 }
  0x60   : > { %4977 = vmatpush3.bf16.msra.mxu1 %v5424_v2  ;;  %4938 = vmatprep.subr.bf16.mxu0 %v5425_v3  ;;  %v675_v23 = vrot.slane %v673_v14, 5  ;;  %v680_v24 = vrot.slane %v678_v15, 4  ;;  %v6085_v27 = vld [vmem:[%s6840_s1 + $0x238] sm:$0xff]   ;;  %v4524_v28 = vld [vmem:[%s5913_s20 + $0x8] sm:$0xf]  ;;  %v5436_v6 = vld [vmem:[%s6840_s1 + $0x230] sm:$0xff]  }
  0x61   : > { %4978 = vmatprep.subr.bf16.mxu1 %v5427_v5  ;;  %v683_v25 = vrot.slane %v681_v16, 5  ;;  %1890 = vmatprep.mubr.bf16.mxu1 %v5417_v19  ;;  %v689_v26 = vrot.slane %v687_v17, 5  ;;  %v670_v29 = vor.u32 %v669_v22, %v666_v21  ;;  %v4525_v31 = vld [vmem:[%s5913_s20 + $0x10] sm:$0xf]  ;;  %800 = vst [vmem:[#allocation3 + $0x18] sm:$0xf] %v4524_v28 }
  0x62   : > { %v4532_v32 = vld [vmem:[%s5913_s20 + $0x50] sm:$0xf]  ;;  %v4533_v33 = vld [vmem:[%s5913_s20 + $0x58] sm:$0xf]  ;;  %801 = vst [vmem:[#allocation3 + $0x3c] sm:$0xf] %v4525_v31 }
  0x63   : > { %4939 = vmatpush3.bf16.msra.mxu0 %v5426_v4  ;;  %v684_v30 = vor.u32 %v683_v25, %v680_v24  ;;  %817 = vst [vmem:[#allocation3 + $0x1c] sm:$0xf] %v4532_v32  ;;  %818 = vst [vmem:[#allocation3 + $0x40] sm:$0xf] %v4533_v33  ;;  %v671_v34 = vrot.slane %v670_v29, 4 }
  0x64   : > { %4979 = vmatpush3.bf16.msra.mxu1 %v5431_v18  ;;  %5200 = vmatprep.subr.bf16.mxu0 %v6085_v27  ;;  %v4502_v36 = vld [vmem:[%s5913_s20 + $0xe8] sm:$0xf]  ;;  %v4503_v37 = vld [vmem:[%s5913_s20 + $0xf0] sm:$0xf]  ;;  %v4512_v38 = vld [vmem:[%s5913_s20 + $0xa0] sm:$0xf] }
  0x65   : > { %v5420_v20 = vld [vmem:[#allocation3 + $0xe0] ss:$36 sps:$4 sm:$0xff]   ;;  %v685_v35 = vrot.slane %v684_v30, 4  ;;  %641 = vst [vmem:[#allocation3 + $0x58] sm:$0xf] %v4502_v36  ;;  %v676_v41 = vsel %vm5930_vm2, %v671_v34, %v675_v23  ;;  %v692_v44 = vshrl.u32 %v4512_v38, 16 }
  0x66   : > { %1891 = vmatmul.mubr.bf16.gmra.mxu1 %v5420_v20  ;;  %642 = vst [vmem:[#allocation3 + $0x7c] sm:$0xf] %v4503_v37  ;;  %v4513_v39 = vld [vmem:[%s5913_s20 + $0xa4] sm:$0x1]  ;;  %v4514_v40 = vld [vmem:[%s5913_s20 + $0xa8] sm:$0xf] }
  0x67   : > { %v690_v42 = vsel %vm5930_vm2, %v685_v35, %v689_v26  ;;  %v4515_v43 = vld [vmem:[%s5913_s20 + $0xac] sm:$0x1]  ;;  %v695_v45 = vshll.u32 %v4512_v38, 16  ;;  %783 = vst [vmem:[#allocation3 + $0x14] sm:$0xf] %v676_v41  ;;  %v701_v46 = vshll.u32 %v4513_v39, 16 }
  0x68   : > { %784 = vst [vmem:[#allocation3 + $0x38] sm:$0xf] %v690_v42  ;;  %v706_v47 = vshrl.u32 %v4514_v40, 16  ;;  %v709_v48 = vshll.u32 %v4514_v40, 16  ;;  %v715_v49 = vshll.u32 %v4515_v43, 16  ;;  %v694_v51 = vrot.slane %v692_v44, 4 }
  0x69   : > { %v697_v52 = vrot.slane %v695_v45, 5  ;;  %v4526_v53 = vld [vmem:[%s5913_s20 + $0x18] sm:$0xf]  ;;  %v4527_v56 = vld [vmem:[%s5913_s20 + $0x20] sm:$0xf]  ;;  %v703_v59 = vrot.slane %v701_v46, 5 }
  0x6a   : > { %v708_v54 = vrot.slane %v706_v47, 4  ;;  %v711_v55 = vrot.slane %v709_v48, 5  ;;  %802 = vst [vmem:[#allocation3 + $0x60] sm:$0xf] %v4526_v53  ;;  %v5433_v57 = vld [vmem:[#allocation3 + $0x18] ss:$36 sps:$4 sm:$0xff]  }
  0x6b   : > { %v698_v58 = vor.u32 %v697_v52, %v694_v51  ;;  %v717_v60 = vrot.slane %v715_v49, 5  ;;  %803 = vst [vmem:[#allocation3 + $0x84] sm:$0xf] %v4527_v56  ;;  %v5435_v61 = vld [vmem:[#allocation3 + $0x1c] ss:$36 sps:$4 sm:$0xff]   ;;  %v5444_v39 = vld [vmem:[%s6840_s1 + $0x220] sm:$0xff]  }
  0x6c   : > { %v712_v62 = vor.u32 %v711_v55, %v708_v54  ;;  %v4534_v63 = vld [vmem:[%s5913_s20 + $0x60] sm:$0xf]  ;;  %v4535_v0 = vld [vmem:[%s5913_s20 + $0x68] sm:$0xf]  ;;  %1996 = vmatprep.mubr.bf16.mxu1 %v5435_v61  ;;  %v4504_v3 = vld [vmem:[%s5913_s20 + $0xf8] sm:$0xf] }
  0x6d   : > { %v699_v1 = vrot.slane %v698_v58, 4  ;;  %819 = vst [vmem:[#allocation3 + $0x64] sm:$0xf] %v4534_v63  ;;  %820 = vst [vmem:[#allocation3 + $0x88] sm:$0xf] %v4535_v0  ;;  %v5440_v20 = vld [vmem:[%s6840_s1 + $0x228] sm:$0xff]  }
  0x6e   : > { %v713_v2 = vrot.slane %v712_v62, 4  ;;  %v4505_v4 = vld [vmem:[%s5913_s20 + $0x100] sm:$0xf]  ;;  %1997 = vmatmul.mubr.bf16.vlgmr.msra.gmra.mxu1 %v5433_v57  ;;  %643 = vst [vmem:[#allocation3 + $0xa0] sm:$0xf] %v4504_v3  ;;  %v5448_v55 = vld [vmem:[%s6840_s1 + $0x218] sm:$0xff]  }
  0x6f   : > { %v5428_v5 = vld [vmem:[#allocation3 + $0x10] ss:$36 sps:$4 sm:$0xff]   ;;  %v704_v7 = vsel %vm5930_vm2, %v699_v1, %v703_v59  ;;  %644 = vst [vmem:[#allocation3 + $0xc4] sm:$0xf] %v4505_v4  ;;  %v4516_v10 = vld [vmem:[%s5913_s20 + $0xb0] sm:$0xf] }
  0x70   : > { %v5430_v8 = vld [vmem:[#allocation3 + $0x14] ss:$36 sps:$4 sm:$0xff]   ;;  %v718_v9 = vsel %vm5930_vm2, %v713_v2, %v717_v60  ;;  %785 = vst [vmem:[#allocation3 + $0x5c] sm:$0xf] %v704_v7  ;;  %v4517_v11 = vld [vmem:[%s5913_s20 + $0xb4] sm:$0x1] }
  0x71   : > { %786 = vst [vmem:[#allocation3 + $0x80] sm:$0xf] %v718_v9  ;;  %v4518_v12 = vld [vmem:[%s5913_s20 + $0xb8] sm:$0xf]  ;;  %v4519_v13 = vld [vmem:[%s5913_s20 + $0xbc] sm:$0x1]  ;;  %1931 = vmatprep.mubr.bf16.mxu0 %v5430_v8 }
  0x72   : > { %v720_v14 = vshrl.u32 %v4516_v10, 16  ;;  %v723_v15 = vshll.u32 %v4516_v10, 16  ;;  %v729_v16 = vshll.u32 %v4517_v11, 16  ;;  %v734_v17 = vshrl.u32 %v4518_v12, 16  ;;  %1932 = vmatmul.mubr.bf16.vlgmr.msra.gmra.mxu0 %v5428_v5  ;;  %v4528_v23 = vld [vmem:[%s5913_s20 + $0x28] sm:$0xf] }
  0x73   : > { %v737_v18 = vshll.u32 %v4518_v12, 16  ;;  %v743_v19 = vshll.u32 %v4519_v13, 16  ;;  %5201 = vmatpush3.bf16.msra.mxu0 %v6085_v27  ;;  %804 = vst [vmem:[#allocation3 + $0xa8] sm:$0xf] %v4528_v23  ;;  %v5443_v28 = vld [vmem:[#allocation3 + $0x60] ss:$36 sps:$4 sm:$0xff]  }
  0x74   : > { %v722_v21 = vrot.slane %v720_v14, 4  ;;  %v725_v22 = vrot.slane %v723_v15, 5  ;;  %v5441_v24 = vld [vmem:[#allocation3 + $0x64] ss:$36 sps:$4 sm:$0xff]   ;;  %v731_v25 = vrot.slane %v729_v16, 5  ;;  %v736_v26 = vrot.slane %v734_v17, 4  ;;  %5202 = vmatprep.subr.bf16.mxu0 %v5436_v6 }
  0x75   : > { %v739_v30 = vrot.slane %v737_v18, 5  ;;  %v745_v31 = vrot.slane %v743_v19, 5  ;;  %v4529_v32 = vld [vmem:[%s5913_s20 + $0x30] sm:$0xf]  ;;  %2004 = vmatprep.mubr.bf16.mxu1 %v5441_v24  ;;  %v4537_v34 = vld [vmem:[%s5913_s20 + $0x78] sm:$0xf] }
  0x76   : > { %v726_v29 = vor.u32 %v725_v22, %v722_v21  ;;  %805 = vst [vmem:[#allocation3 + $0xcc] sm:$0xf] %v4529_v32  ;;  %v4536_v33 = vld [vmem:[%s5913_s20 + $0x70] sm:$0xf]  ;;  %2005 = vmatmul.mubr.bf16.gmra.mxu1 %v5443_v28  ;;  %822 = vst [vmem:[#allocation3 + $0xd0] sm:$0xf] %v4537_v34 }
  0x77   : > { %v740_v27 = vor.u32 %v739_v30, %v736_v26  ;;  %821 = vst [vmem:[#allocation3 + $0xac] sm:$0xf] %v4536_v33  ;;  %v4506_v36 = vld [vmem:[%s5913_s20 + $0x108] sm:$0xf]  ;;  %5203 = vmatpush3.bf16.msra.mxu0 %v5436_v6  ;;  %v4507_v42 = vld [vmem:[%s5913_s20 + $0x110] sm:$0xf] }
  0x78   : > { %v727_v35 = vrot.slane %v726_v29, 4  ;;  %v5437_v37 = vld [vmem:[#allocation3 + $0x5c] ss:$36 sps:$4 sm:$0xff]   ;;  %645 = vst [vmem:[#allocation3 + $0xe8] sm:$0xf] %v4506_v36  ;;  %5204 = vmatprep.subr.bf16.mxu0 %v5440_v20 }
  0x79   : > { %v5439_v38 = vld [vmem:[#allocation3 + $0x58] ss:$36 sps:$4 sm:$0xff]   ;;  %v741_v41 = vrot.slane %v740_v27, 4  ;;  %v4520_v43 = vld [vmem:[%s5913_s20 + $0xc0] sm:$0xf]  ;;  %1939 = vmatprep.mubr.bf16.mxu0 %v5437_v37  ;;  %v5452_v63 = vld [vmem:[%s6840_s1 + $0x210] sm:$0xff]  }
  0x7a   : > { %v732_v40 = vsel %vm5930_vm2, %v727_v35, %v731_v25  ;;  %646 = vst [vmem:[#allocation3 + $0x10c] sm:$0xf] %v4507_v42  ;;  %v4521_v44 = vld [vmem:[%s5913_s20 + $0xc4] sm:$0x1]  ;;  %v4522_v45 = vld [vmem:[%s5913_s20 + $0xc8] sm:$0xf]  ;;  %1940 = vmatmul.mubr.bf16.gmra.mxu0 %v5439_v38 }
  0x7b   : > { %787 = vst [vmem:[#allocation3 + $0xa4] sm:$0xf] %v732_v40  ;;  %v4523_v46 = vld [vmem:[%s5913_s20 + $0xcc] sm:$0x1]  ;;  %v746_v47 = vsel %vm5930_vm2, %v741_v41, %v745_v31  ;;  %v748_v48 = vshrl.u32 %v4520_v43, 16  ;;  %v751_v49 = vshll.u32 %v4520_v43, 16  ;;  %5205 = vmatpush3.bf16.msra.mxu0 %v5440_v20 }
  0x7c   : > { %v757_v51 = vshll.u32 %v4521_v44, 16  ;;  %788 = vst [vmem:[#allocation3 + $0xc8] sm:$0xf] %v746_v47  ;;  %v762_v52 = vshrl.u32 %v4522_v45, 16  ;;  %v765_v53 = vshll.u32 %v4522_v45, 16  ;;  %v771_v54 = vshll.u32 %v4523_v46, 16  ;;  %5206 = vmatprep.subr.bf16.mxu0 %v5444_v39 }
  0x7d   : > { %v750_v56 = vrot.slane %v748_v48, 4  ;;  %v753_v57 = vrot.slane %v751_v49, 5  ;;  %v4530_v58 = vld [vmem:[%s5913_s20 + $0x38] sm:$0xf]  ;;  %v4531_v3 = vld [vmem:[%s5913_s20 + $0x40] sm:$0xf] }
  0x7e   : > { %v5449_v59 = vld [vmem:[#allocation3 + $0xac] ss:$36 sps:$4 sm:$0xff]   ;;  %v764_v60 = vrot.slane %v762_v52, 4  ;;  %v767_v61 = vrot.slane %v765_v53, 5  ;;  %806 = vst [vmem:[#allocation3 + $0xf0] sm:$0xf] %v4530_v58 }
  0x7f   : > { %v5451_v62 = vld [vmem:[#allocation3 + $0xa8] ss:$36 sps:$4 sm:$0xff]   ;;  %v754_v0 = vor.u32 %v753_v57, %v750_v56  ;;  %v759_v1 = vrot.slane %v757_v51, 5  ;;  %v773_v2 = vrot.slane %v771_v54, 5  ;;  %5207 = vmatpush3.bf16.msra.mxu0 %v5444_v39  ;;  %2012 = vmatprep.mubr.bf16.mxu1 %v5449_v59  ;;  %807 = vst [vmem:[#allocation3 + $0x114] sm:$0xf] %v4531_v3 }
  0x80   : > { %v768_v4 = vor.u32 %v767_v61, %v764_v60  ;;  %v4538_v5 = vld [vmem:[%s5913_s20 + $0x80] sm:$0xf]  ;;  %v4539_v6 = vld [vmem:[%s5913_s20 + $0x88] sm:$0xf]  ;;  %5208 = vmatprep.subr.bf16.mxu0 %v5448_v55  ;;  %2013 = vmatmul.mubr.bf16.gmra.mxu1 %v5451_v62  ;;  %v4541_v10 = vld [vmem:[%s5913_s20 + $0xc] sm:$0x1] }
  0x81   : > { %v755_v7 = vrot.slane %v754_v0, 4  ;;  %823 = vst [vmem:[#allocation3 + $0xf4] sm:$0xf] %v4538_v5  ;;  %824 = vst [vmem:[#allocation3 + $0x118] sm:$0xf] %v4539_v6  ;;  %v851_v20 = vshll.u32 %v4541_v10, 16 }
  0x82   : > { %v4540_v8 = vld [vmem:[%s5913_s20 + $0x8] sm:$0xf]  ;;  %v769_v9 = vrot.slane %v768_v4, 4  ;;  %v4542_v11 = vld [vmem:[%s5913_s20 + $0x10] sm:$0xf]  ;;  %v5460_v40 = vld [vmem:[%s6840_s1 + $0x200] sm:$0xff]  }
  0x83   : > { %v842_v12 = vshrl.u32 %v4540_v8, 16  ;;  %v5445_v13 = vld [vmem:[#allocation3 + $0xa4] ss:$36 sps:$4 sm:$0xff]   ;;  %v760_v15 = vsel %vm5930_vm2, %v755_v7, %v759_v1  ;;  %v845_v16 = vshll.u32 %v4540_v8, 16  ;;  %5209 = vmatpush3.bf16.msra.mxu0 %v5448_v55  ;;  %v856_v21 = vshrl.u32 %v4542_v11, 16  ;;  %v5456_v22 = vld [vmem:[%s6840_s1 + $0x208] sm:$0xff]  }
  0x84   : > { %v5447_v14 = vld [vmem:[#allocation3 + $0xa0] ss:$36 sps:$4 sm:$0xff]   ;;  %v774_v17 = vsel %vm5930_vm2, %v769_v9, %v773_v2  ;;  %789 = vst [vmem:[#allocation3 + $0xec] sm:$0xf] %v760_v15  ;;  %1947 = vmatprep.mubr.bf16.mxu0 %v5445_v13  ;;  %5210 = vmatprep.subr.bf16.mxu0 %v5452_v63  ;;  %v859_v24 = vshll.u32 %v4542_v11, 16  ;;  %v853_v28 = vrot.slane %v851_v20, 5 }
  0x85   : > { %v4543_v18 = vld [vmem:[%s5913_s20 + $0x14] sm:$0x1]  ;;  %v844_v19 = vrot.slane %v842_v12, 4  ;;  %790 = vst [vmem:[#allocation3 + $0x110] sm:$0xf] %v774_v17  ;;  %v847_v23 = vrot.slane %v845_v16, 5  ;;  %1948 = vmatmul.mubr.bf16.gmra.mxu0 %v5447_v14 }
  0x86   : > { %v865_v25 = vshll.u32 %v4543_v18, 16  ;;  %v4544_v26 = vld [vmem:[%s5913_s20 + $0x18] sm:$0xf]  ;;  %v858_v29 = vrot.slane %v856_v21, 4  ;;  %v4545_v30 = vld [vmem:[%s5913_s20 + $0x1c] sm:$0x1] }
  0x87   : > { %v4546_v31 = vld [vmem:[%s5913_s20 + $0x20] sm:$0xf]  ;;  %v848_v32 = vor.u32 %v847_v23, %v844_v19  ;;  %v861_v33 = vrot.slane %v859_v24, 5  ;;  %v4547_v35 = vld [vmem:[%s5913_s20 + $0x24] sm:$0x1]  ;;  %v870_v27 = vshrl.u32 %v4544_v26, 16  ;;  %5211 = vmatpush3.bf16.msra.mxu0 %v5452_v63 }
  0x88   : > { %v867_v34 = vrot.slane %v865_v25, 5  ;;  %v5457_v36 = vld [vmem:[#allocation3 + $0xf4] ss:$36 sps:$4 sm:$0xff]   ;;  %v873_v37 = vshll.u32 %v4544_v26, 16  ;;  %v879_v38 = vshll.u32 %v4545_v30, 16  ;;  %5212 = vmatprep.subr.bf16.mxu0 %v5456_v22  ;;  %v884_v44 = vshrl.u32 %v4546_v31, 16 }
  0x89   : > { %v5459_v39 = vld [vmem:[#allocation3 + $0xf0] ss:$36 sps:$4 sm:$0xff]   ;;  %v849_v41 = vrot.slane %v848_v32, 4  ;;  %v862_v42 = vor.u32 %v861_v33, %v858_v29  ;;  %v872_v43 = vrot.slane %v870_v27, 4  ;;  %2020 = vmatprep.mubr.bf16.mxu1 %v5457_v36  ;;  %v887_v47 = vshll.u32 %v4546_v31, 16 }
  0x8a   : > { %v875_v45 = vrot.slane %v873_v37, 5  ;;  %v881_v46 = vrot.slane %v879_v38, 5  ;;  %v893_v48 = vshll.u32 %v4547_v35, 16  ;;  %v4548_v49 = vld [vmem:[%s5913_s20 + $0x28] sm:$0xf]  ;;  %2021 = vmatmul.mubr.bf16.gmra.mxu1 %v5459_v39  ;;  %v886_v53 = vrot.slane %v884_v44, 4 }
  0x8b   : > { %v854_v51 = vsel %vm5930_vm2, %v849_v41, %v853_v28  ;;  %v863_v52 = vrot.slane %v862_v42, 4  ;;  %v4549_v54 = vld [vmem:[%s5913_s20 + $0x2c] sm:$0x1]  ;;  %v898_v55 = vshrl.u32 %v4548_v49, 16  ;;  %v5455_v57 = vld [vmem:[#allocation3 + $0xe8] ss:$36 sps:$4 sm:$0xff]   ;;  %5213 = vmatpush3.bf16.msra.mxu0 %v5456_v22 }
  0x8c   : > { %v5453_v56 = vld [vmem:[#allocation3 + $0xec] ss:$36 sps:$4 sm:$0xff]   ;;  %961 = vst [vmem:[#allocation3 + $0x20] sm:$0xf] %v854_v51  ;;  %v876_v58 = vor.u32 %v875_v45, %v872_v43  ;;  %v889_v59 = vrot.slane %v887_v47, 5  ;;  %5214 = vmatprep.subr.bf16.mxu0 %v5460_v40  ;;  %v895_v61 = vrot.slane %v893_v48, 5 }
  0x8d   : > { %v868_v60 = vsel %vm5930_vm2, %v863_v52, %v867_v34  ;;  %v4550_v62 = vld [vmem:[%s5913_s20 + $0x30] sm:$0xf]  ;;  %v4551_v63 = vld [vmem:[%s5913_s20 + $0x34] sm:$0x1]  ;;  %v900_v0 = vrot.slane %v898_v55, 4  ;;  %1955 = vmatprep.mubr.bf16.mxu0 %v5453_v56  ;;  %v901_v3 = vshll.u32 %v4548_v49, 16 }
  0x8e   : > { %962 = vst [vmem:[#allocation3 + $0x44] sm:$0xf] %v868_v60  ;;  %v877_v1 = vrot.slane %v876_v58, 4  ;;  %v890_v2 = vor.u32 %v889_v59, %v886_v53  ;;  %v907_v4 = vshll.u32 %v4549_v54, 16  ;;  %v4552_v5 = vld [vmem:[%s5913_s20 + $0x38] sm:$0xf]  ;;  %1956 = vmatmul.mubr.bf16.gmra.mxu0 %v5455_v57 }
  0x8f   : > { %v912_v6 = vshrl.u32 %v4550_v62, 16  ;;  %v915_v7 = vshll.u32 %v4550_v62, 16  ;;  %v921_v8 = vshll.u32 %v4551_v63, 16  ;;  %v4553_v9 = vld [vmem:[%s5913_s20 + $0x3c] sm:$0x1]  ;;  %v926_v10 = vshrl.u32 %v4552_v5, 16  ;;  %5215 = vmatpush3.bf16.msra.mxu0 %v5460_v40 }
  0x90   : > { %v882_v11 = vsel %vm5930_vm2, %v877_v1, %v881_v46  ;;  %v891_v12 = vrot.slane %v890_v2, 4  ;;  %v903_v13 = vrot.slane %v901_v3, 5  ;;  %v4554_v14 = vld [vmem:[%s5913_s20 + $0x40] sm:$0xf]  ;;  %v909_v15 = vrot.slane %v907_v4, 5  ;;  %v5465_v59 = vld [vmem:[#allocation5 + $0xf8] sm:$0xff]  }
  0x91   : > { %963 = vst [vmem:[#allocation3 + $0x68] sm:$0xf] %v882_v11  ;;  %v914_v16 = vrot.slane %v912_v6, 4  ;;  %v917_v17 = vrot.slane %v915_v7, 5  ;;  %v4555_v18 = vld [vmem:[%s5913_s20 + $0x44] sm:$0x1]  ;;  %5056 = vmatprep.subr.bf16.mxu0 %v5465_v59 }
  0x92   : > { %v928_v19 = vrot.slane %v926_v10, 4  ;;  %v896_v20 = vsel %vm5930_vm2, %v891_v12, %v895_v61  ;;  %v904_v21 = vor.u32 %v903_v13, %v900_v0  ;;  %v929_v22 = vshll.u32 %v4552_v5, 16  ;;  %v389_v48 = vld [vmem:[#allocation2 + $0x18] sm:$0x1]  ;;  %v415_v51 = vld [vmem:[#allocation2 + $0x1c] sm:$0x1] }
  0x93   : > { %v935_v23 = vshll.u32 %v4553_v9, 16  ;;  %964 = vst [vmem:[#allocation3 + $0x8c] sm:$0xf] %v896_v20  ;;  %v918_v24 = vor.u32 %v917_v17, %v914_v16  ;;  %v923_v25 = vrot.slane %v921_v8, 5  ;;  %v940_v26 = vshrl.u32 %v4554_v14, 16  ;;  %v5466_v3 = vld [vmem:[#allocation5 + $0xb8] sm:$0xff]  }
  0x94   : > { %v943_v28 = vshll.u32 %v4554_v14, 16  ;;  %v905_v29 = vrot.slane %v904_v21, 4  ;;  %v931_v30 = vrot.slane %v929_v22, 5  ;;  %v949_v31 = vshll.u32 %v4555_v18, 16  ;;  %v383_v55 = vld [vmem:[#allocation2 + $0x8] sm:$0x1] }
  0x95   : > { %v5461_v32 = vld [vmem:[#allocation3 + $0x20] ss:$36 sps:$4 sm:$0xff]   ;;  %v919_v33 = vrot.slane %v918_v24, 4  ;;  %v942_v34 = vrot.slane %v940_v26, 4  ;;  %v937_v36 = vrot.slane %v935_v23, 5  ;;  %v6860_v49 = vmov 0 }
  0x96   : > { %v910_v35 = vsel %vm5930_vm2, %v905_v29, %v909_v15  ;;  %v932_v27 = vor.u32 %v931_v30, %v928_v19  ;;  %v945_v37 = vrot.slane %v943_v28, 5  ;;  %5216 = vmatprep.mubr.bf16.mxu0 %v5461_v32  ;;  %v951_v41 = vrot.slane %v949_v31, 5  ;;  %v409_v56 = vld [vmem:[#allocation2 + $0xc] sm:$0x1]  ;;  %v392_v60 = vld [vmem:[#allocation2 + $0x20] sm:$0x1] }
  0x97   : > { %v924_v38 = vsel %vm5930_vm2, %v919_v33, %v923_v25  ;;  %965 = vst [vmem:[#allocation3 + $0xb0] sm:$0xf] %v910_v35  ;;  %v6861_v49 = vsel %vm6192_vm5, 4294967295, %v6860_v49  ;;  %v390_v52 = vsel %vm6192_vm5, 0, %v389_v48  ;;  %v416_v54 = vsel %vm6199_vm7, 0, %v415_v51  ;;  %v5467_v9 = vld [vmem:[#allocation5 + $0x78] sm:$0xff]  }
  0x98   : > { %966 = vst [vmem:[#allocation3 + $0xd4] sm:$0xf] %v924_v38  ;;  %v933_v39 = vrot.slane %v932_v27, 4  ;;  %v946_v40 = vor.u32 %v945_v37, %v942_v34  ;;  %6862 = vst [vmem:[#allocation12_spill] sm:$0xff] %v6861_v49  ;;  %v384_v57 = vsel %vm6192_vm5, 0, %v383_v55  ;;  %v410_v58 = vsel %vm6199_vm7, 0, %v409_v56  ;;  %5016 = vmatprep.subr.bf16.mxu1 %v5467_v9 }
  0x99   : > { %391 = vst [vmem:[#allocation2 + $0x18] sm:$0x1] %v390_v52  ;;  %417 = vst [vmem:[#allocation2 + $0x1c] sm:$0x1] %v416_v54  ;;  %v418_v61 = vld [vmem:[#allocation2 + $0x24] sm:$0x1] }
  0x9a   : > { %v5462_v42 = vld [vmem:[#allocation3 + $0x68] ss:$36 sps:$4 sm:$0xff]   ;;  %v938_v43 = vsel %vm5930_vm2, %v933_v39, %v937_v36  ;;  %v947_v44 = vrot.slane %v946_v40, 4  ;;  %385 = vst [vmem:[#allocation2 + $0x8] sm:$0x1] %v384_v57  ;;  %v393_v62 = vsel %vm6192_vm5, 0, %v392_v60 }
  0x9b   : > { %967 = vst [vmem:[#allocation3 + $0xf8] sm:$0xf] %v938_v43  ;;  %5217 = vmatmul.mubr.bf16.vlgmr.msra.gmra.mxu0 %v5462_v42  ;;  %411 = vst [vmem:[#allocation2 + $0xc] sm:$0x1] %v410_v58  ;;  %v419_v63 = vsel %vm6199_vm7, 0, %v418_v61  ;;  %v5468_v10 = vld [vmem:[#allocation5 + $0xf0] sm:$0xff]  }
  0x9c   : > { %v952_v45 = vsel %vm5930_vm2, %v947_v44, %v951_v41  ;;  %394 = vst [vmem:[#allocation2 + $0x20] sm:$0x1] %v393_v62  ;;  %420 = vst [vmem:[#allocation2 + $0x24] sm:$0x1] %v419_v63  ;;  %v386_v0 = vld [vmem:[#allocation2 + $0x10] sm:$0x1]  ;;  %5057 = vmatpush3.bf16.msra.mxu0 %v5466_v3 }
  0x9d   : > { %968 = vst [vmem:[#allocation3 + $0x11c] sm:$0xf] %v952_v45  ;;  %v387_v1 = vsel %vm6192_vm5, 0, %v386_v0  ;;  %v412_v2 = vld [vmem:[#allocation2 + $0x14] sm:$0x1]  ;;  %v5469_v11 = vld [vmem:[#allocation5 + $0x38] sm:$0xff]   ;;  %5058 = vmatprep.subr.bf16.mxu0 %v5468_v10 }
  0x9e   : > { %388 = vst [vmem:[#allocation2 + $0x10] sm:$0x1] %v387_v1  ;;  %v413_v4 = vsel %vm6199_vm7, 0, %v412_v2  ;;  %v401_v5 = vld [vmem:[#allocation2 + $0x38] sm:$0x1]  ;;  %v5470_v14 = vld [vmem:[#allocation5 + $0xb0] sm:$0xff]   ;;  %5017 = vmatpush3.bf16.msra.mxu1 %v5469_v11 }
  0x9f   : > { %v5463_v46 = vld [vmem:[#allocation3 + $0xb0] ss:$36 sps:$4 sm:$0xff]   ;;  %v427_v6 = vld [vmem:[#allocation2 + $0x3c] sm:$0x1]  ;;  %414 = vst [vmem:[#allocation2 + $0x14] sm:$0x1] %v413_v4 }
  0xa0   : > { %5220 = vmatprep.mubr.bf16.mxu0 %v5463_v46  ;;  %v402_v7 = vsel %vm6192_vm5, 0, %v401_v5  ;;  %v428_v8 = vsel %vm6199_vm7, 0, %v427_v6  ;;  %v395_v12 = vld [vmem:[#allocation2 + $0x28] sm:$0x1]  ;;  %v421_v13 = vld [vmem:[#allocation2 + $0x2c] sm:$0x1]  ;;  %5059 = vmatpush3.bf16.msra.mxu0 %v5470_v14 }
  0xa1   : > { %403 = vst [vmem:[#allocation2 + $0x38] sm:$0x1] %v402_v7  ;;  %429 = vst [vmem:[#allocation2 + $0x3c] sm:$0x1] %v428_v8  ;;  %v396_v15 = vsel %vm6192_vm5, 0, %v395_v12  ;;  %v422_v16 = vsel %vm6199_vm7, 0, %v421_v13 }
  0xa2   : > { %397 = vst [vmem:[#allocation2 + $0x28] sm:$0x1] %v396_v15  ;;  %423 = vst [vmem:[#allocation2 + $0x2c] sm:$0x1] %v422_v16  ;;  %v404_v18 = vld [vmem:[#allocation2 + $0x40] sm:$0x1] }
  0xa3   : > { %v430_v19 = vld [vmem:[#allocation2 + $0x44] sm:$0x1]  ;;  %v405_v21 = vsel %vm6192_vm5, 0, %v404_v18  ;;  %v5472_v23 = vld [vmem:[#allocation5 + $0xe8] sm:$0xff]   ;;  %v5690_v25 = vmov 0   ;;  %v5476_v31 = vld [vmem:[#allocation5 + $0xe0] sm:$0xff]  }
  0xa4   : > { %v5464_v47 = vld [vmem:[#allocation3 + $0xf8] ss:$36 sps:$4 sm:$0xff]   ;;  %v5471_v20 = vld [vmem:[#allocation5 + $0x70] sm:$0xff]   ;;  %v431_v22 = vsel %vm6199_vm7, 0, %v430_v19  ;;  %374 = vst [vmem:[#allocation2] sm:$0xf] %v5690_v25  ;;  %5060 = vmatprep.subr.bf16.mxu0 %v5472_v23 }
  0xa5   : > { %5221 = vmatmul.mubr.bf16.gmra.mxu0 %v5464_v47  ;;  %v5473_v24 = vld [vmem:[#allocation5 + $0x30] sm:$0xff]   ;;  %375 = vst [vmem:[#allocation2 + $0x4] sm:$0x1] %v5690_v25  ;;  %377 = vst [vmem:[#allocation2 + $0x48] sm:$0xf] %v5690_v25  ;;  %5018 = vmatprep.subr.bf16.mxu1 %v5471_v20  ;;  %v5474_v26 = vld [vmem:[#allocation5 + $0xa8] sm:$0xff]  }
  0xa6   : > { %378 = vst [vmem:[#allocation2 + $0x4c] sm:$0x1] %v5690_v25  ;;  %406 = vst [vmem:[#allocation2 + $0x40] sm:$0x1] %v405_v21  ;;  %5019 = vmatpush3.bf16.msra.mxu1 %v5473_v24  ;;  %5061 = vmatpush3.bf16.msra.mxu0 %v5474_v26  ;;  %v5475_v30 = vld [vmem:[#allocation5 + $0x68] sm:$0xff]   ;;  %v5478_v37 = vld [vmem:[#allocation5 + $0xa0] sm:$0xff]  }
  0xa7   : > { %432 = vst [vmem:[#allocation2 + $0x44] sm:$0x1] %v431_v22  ;;  %v398_v32 = vld [vmem:[#allocation2 + $0x30] sm:$0x1]  ;;  %v424_v33 = vld [vmem:[#allocation2 + $0x34] sm:$0x1]  ;;  %5020 = vmatprep.subr.bf16.mxu1 %v5475_v30  ;;  %5062 = vmatprep.subr.bf16.mxu0 %v5476_v31 }
  0xa8   : > { %v399_v35 = vsel %vm6192_vm5, 0, %v398_v32  ;;  %v425_v27 = vsel %vm6199_vm7, 0, %v424_v33  ;;  %v5477_v36 = vld [vmem:[#allocation5 + $0x28] sm:$0xff]   ;;  %v5479_v39 = vld [vmem:[#allocation5 + $0x60] sm:$0xff]   ;;  %v5480_v40 = vld [vmem:[#allocation5 + $0xd8] sm:$0xff]  }
  0xa9   : > { %400 = vst [vmem:[#allocation2 + $0x30] sm:$0x1] %v399_v35  ;;  %426 = vst [vmem:[#allocation2 + $0x34] sm:$0x1] %v425_v27  ;;  %v5481_v42 = vld [vmem:[#allocation5 + $0x20] sm:$0xff]   ;;  %v5482_v43 = vld [vmem:[#allocation5 + $0x98] sm:$0xff]  }
  0xaa   : > { %5021 = vmatpush3.bf16.msra.mxu1 %v5477_v36  ;;  %5063 = vmatpush3.bf16.msra.mxu0 %v5478_v37  ;;  %v5483_v53 = vld [vmem:[#allocation5 + $0x58] sm:$0xff]   ;;  %v5484_v54 = vld [vmem:[#allocation5 + $0xd0] sm:$0xff]   ;;  %v5488_v2 = vld [vmem:[#allocation5 + $0xc8] sm:$0xff]  }
  0xab   : > { %v2454_v41 = vld [vmem:[#allocation2] sm:$0xe]  ;;  %5022 = vmatprep.subr.bf16.mxu1 %v5479_v39  ;;  %5064 = vmatprep.subr.bf16.mxu0 %v5480_v40  ;;  %v5485_v58 = vld [vmem:[#allocation5 + $0x18] sm:$0xff]   ;;  %v5490_v6 = vld [vmem:[#allocation5 + $0x88] sm:$0xff]  }
  0xac   : > { %v2455_v44 = vld [vmem:[#allocation2 + $0x4] sm:$0x1]  ;;  %v4674_v47 = vrot.slane %v2454_v41, 9  ;;  %v2310_v51 = vld [vmem:[#allocation2] sm:$0xf]  ;;  %v5491_v7 = vld [vmem:[#allocation5 + $0x48] sm:$0xff]  }
  0xad   : > { %v2491_v48 = vrot.slane %v2455_v44, 5  ;;  %v2327_v56 = vshrl.u32 %v2310_v51, 16  ;;  %v2330_v57 = vshll.u32 %v2310_v51, 16  ;;  %v5486_v59 = vld [vmem:[#allocation5 + $0x90] sm:$0xff]   ;;  %v5492_v8 = vld [vmem:[#allocation5 + $0xc0] sm:$0xff]   ;;  %v5493_v13 = vld [vmem:[#allocation5 + $0x8] sm:$0xff]  }
  0xae   : > { %5023 = vmatpush3.bf16.msra.mxu1 %v5481_v42  ;;  %5065 = vmatpush3.bf16.msra.mxu0 %v5482_v43  ;;  %v2311_v63 = vld [vmem:[#allocation2 + $0x4] sm:$0x1]  ;;  %v5494_v14 = vld [vmem:[#allocation5 + $0x80] sm:$0xff]   ;;  %v5499_v19 = vld [vmem:[#allocation5 + $0x1f8] sm:$0xff]  }
  0xaf   : > { %v2492_v55 = vsel %vm6245_vm10, %v4674_v47, %v2491_v48  ;;  %5024 = vmatprep.subr.bf16.mxu1 %v5483_v53  ;;  %5066 = vmatprep.subr.bf16.mxu0 %v5484_v54  ;;  %v2329_v61 = vrot.slane %v2327_v56, 4  ;;  %v2332_v62 = vrot.slane %v2330_v57, 5  ;;  %v5487_v1 = vld [vmem:[#allocation5 + $0x50] sm:$0xff]   ;;  %v2336_v5 = vshll.u32 %v2311_v63, 16  ;;  %v5498_v18 = vld [vmem:[#allocation5 + $0x40] sm:$0xff]   ;;  %v5507_v25 = vld [vmem:[#allocation5 + $0x178] sm:$0xff]  }
  0xb0   : > { %2529 = vst [vmem:[#allocation4 + $0x8] sm:$0xf] %v2492_v55  ;;  %v5489_v3 = vld [vmem:[#allocation5 + $0x10] sm:$0xff]   ;;  %v5500_v22 = vld [vmem:[#allocation5] sm:$0xff]  }
  0xb1   : > { %v2333_v4 = vor.u32 %v2332_v62, %v2329_v61  ;;  %v2338_v11 = vrot.slane %v2336_v5, 5  ;;  %v2294_v20 = vld [vmem:[#allocation2] sm:$0xf] }
  0xb2   : > { %5025 = vmatpush3.bf16.msra.mxu1 %v5485_v58  ;;  %5067 = vmatpush3.bf16.msra.mxu0 %v5486_v59  ;;  %2302 = vst [vmem:[#allocation4] sm:$0xf] %v2294_v20  ;;  %v5593_v46 = vld [vmem:[%s5913_s20 + $0xf8] ss:$8 sps:$4 sm:$0xff]  }
  0xb3   : > { %5026 = vmatprep.subr.bf16.mxu1 %v5487_v1  ;;  %5068 = vmatprep.subr.bf16.mxu0 %v5488_v2  ;;  %v2334_v10 = vrot.slane %v2333_v4, 4 }
  0xb5   : > { %v2339_v15 = vsel %vm5930_vm2, %v2334_v10, %v2338_v11 }
  0xb6   : > { %5027 = vmatpush3.bf16.msra.mxu1 %v5489_v3  ;;  %5069 = vmatpush3.bf16.msra.mxu0 %v5490_v6  ;;  %2446 = vst [vmem:[#allocation4 + $0x4] sm:$0xf] %v2339_v15  ;;  %v2808_v3 = vld [vmem:[#allocation2 + $0x48] sm:$0xf] }
  0xb7   : > { %5028 = vmatprep.subr.bf16.mxu1 %v5491_v7  ;;  %5070 = vmatprep.subr.bf16.mxu0 %v5492_v8  ;;  %v2909_v5 = vshrl.u32 %v2808_v3, 16  ;;  %v2912_v6 = vshll.u32 %v2808_v3, 16 }
  0xb9   : > { %v2911_v8 = vrot.slane %v2909_v5, 4  ;;  %v2914_v10 = vrot.slane %v2912_v6, 5 }
  0xba   : > { %5029 = vmatpush3.bf16.msra.mxu1 %v5493_v13  ;;  %5071 = vmatpush3.bf16.msra.mxu0 %v5494_v14  ;;  %v2809_v13 = vld [vmem:[#allocation2 + $0x4c] sm:$0x1] }
  0xbb   : > { %5030 = vmatprep.subr.bf16.mxu1 %v5498_v18  ;;  %5136 = vmatprep.subr.bf16.mxu0 %v5499_v19  ;;  %v2915_v14 = vor.u32 %v2914_v10, %v2911_v8  ;;  %v2918_v15 = vshll.u32 %v2809_v13, 16 }
  0xbd   : > { %v2916_v19 = vrot.slane %v2915_v14, 4  ;;  %v2920_v20 = vrot.slane %v2918_v15, 5 }
  0xbe   : > { %5031 = vmatpush3.bf16.msra.mxu1 %v5500_v22 }
  0xbf   : > { %5096 = vmatprep.subr.bf16.mxu1 %v5507_v25  ;;  %v2785_v25 = vld [vmem:[#allocation2 + $0x48] sm:$0xf]  ;;  %v2921_v49 = vsel %vm5930_vm2, %v2916_v19, %v2920_v20 }
  0xc0   : > { %2793 = vst [vmem:[#allocation4 + $0x114] sm:$0xf] %v2785_v25  ;;  %2937 = vst [vmem:[#allocation4 + $0x118] sm:$0xf] %v2921_v49 }
 0x106   : > { %v6225_v17 = vpop.f32.mrf.mxu0 }
 0x107   : > { %v6231_v28 = vpop.f32.mrf.mxu1 }
 0x108   : > { %v6233_v29 = vpop.f32.mrf.mxu0 }
 0x109   : > { %v6235_v34 = vpop.f32.mrf.mxu1  ;;  %v4862_v49 = vadd.f32 %v6233_v29, %v6225_v17 }
 0x10a   : > { %v6241_v38 = vpop.f32.mrf.mxu0  ;;  %v4902_v20 = vadd.f32 %v6235_v34, %v6231_v28 }
 0x10b   : > { %v6243_v45 = vpop.f32.mrf.mxu1 }
 0x10c   : > { %v6249_v52 = vpop.f32.mrf.mxu0  ;;  %v1869_v34 = vadd.f32 %v4902_v20, %v4862_v49 }
 0x10d   : > { %v6253_v60 = vpop.f32.mrf.mxu1 }
 0x10e   : > { %v6255_v0 = vpop.f32.mrf.mxu0  ;;  %v4905_v17 = vadd.f32 %v6253_v60, %v6243_v45 }
 0x10f   : > { %v6257_v9 = vpop.f32.mrf.mxu1 }
 0x110   : > { %v6259_v12 = vpop.f32.mrf.mxu0 }
 0x111   : > { %v6263_v16 = vpop.f32.mrf.mxu1  ;;  %v4868_v13 = vadd.f32 %v6259_v12, %v6255_v0 }
 0x112   : > { %v6265_v21 = vpop.f32.mrf.mxu0  ;;  %v4908_v14 = vadd.f32 %v6263_v16, %v6257_v9  ;;  %v2952_v16 = vld [vmem:[#allocation2 + $0x48] sm:$0xe] }
 0x113   : > { %v6267_v23 = vpop.f32.mrf.mxu1  ;;  %v4697_v28 = vrot.slane %v2952_v16, 9 }
 0x114   : > { %v6269_v24 = vpop.f32.mrf.mxu0 }
 0x115   : > { %v6271_v26 = vpop.f32.mrf.mxu1 }
 0x116   : > { %v6273_v30 = vpop.f32.mrf.mxu0  ;;  %v4911_v0 = vadd.f32 %v6271_v26, %v6267_v23 }
 0x118   : > { %v6277_v32 = vpop.f32.mrf.mxu0 }
 0x119   : > { %v4874_v45 = vadd.f32 %v6277_v32, %v6273_v30 }
 0x11a   : > { %v6275_v31 = vpop.f32.mrf.mxu1  ;;  %v6281_v35 = vpop.f32.mrf.mxu0 }
 0x11c   : > { %v6279_v33 = vpop.f32.mrf.mxu1  ;;  %v6285_v36 = vpop.f32.mrf.mxu0 }
 0x11d   : > { %v4914_v60 = vadd.f32 %v6279_v33, %v6275_v31  ;;  %v6369_v33 = vld [vmem:[%s6841_s2] ss:$0 sm:$0xff] }
 0x11e   : > { %v6283_v27 = vpop.f32.mrf.mxu1  ;;  %v6289_v39 = vpop.f32.mrf.mxu0 }
 0x120   : > { %v6287_v37 = vpop.f32.mrf.mxu1  ;;  %v6295_v42 = vpop.f32.mrf.mxu0 }
 0x122   : > { %v6299_v44 = vpop.f32.mrf.mxu0 }
 0x124   : > { %v6303_v48 = vpop.f32.mrf.mxu0 }
 0x125   : > { %v4883_v30 = vadd.f32 %v6303_v48, %v6299_v44 }
 0x126   : > { %v6291_v40 = vpop.f32.mrf.mxu1 }
 0x128   : > { %v6293_v41 = vpop.f32.mrf.mxu1 }
 0x12a   : > { %v6297_v43 = vpop.f32.mrf.mxu1 }
 0x12c   : > { %v6301_v47 = vpop.f32.mrf.mxu1 }
 0x12d   : > { %v4923_v31 = vadd.f32 %v6301_v47, %v6297_v43  ;;  %v6376_v43 = vld [vmem:[%s6842_s3] ss:$0 sm:$0xff] }
 0x12e   : > { %v6305_v51 = vpop.f32.mrf.mxu1 }
 0x130   : > { %v6307_v53 = vpop.f32.mrf.mxu1 }
 0x132   : > { %v4940_v54 = vpop.f32.mrf.mxu0  ;;  %v6309_v55 = vpop.f32.mrf.mxu1 }
 0x134   : > { %v4941_v56 = vpop.f32.mrf.mxu0  ;;  %v6311_v57 = vpop.f32.mrf.mxu1 }
 0x135   : > { %6867 = vst [vmem:[#allocation13_spill] sm:$0xff] %v6311_v57  ;;  %v4942_v12 = vadd.f32 %v4941_v56, %v4940_v54  ;;  %v4982_v54 = vadd.f32 %v6307_v53, %v6305_v51  ;;  %v4880_v53 = vadd.f32 %v6295_v42, %v6289_v39 }
 0x136   : > { %v4943_v58 = vpop.f32.mrf.mxu0  ;;  %v4986_v59 = vpop.f32.mrf.mxu1 }
 0x137   : > { %v1934_v26 = vadd.f32 %v4942_v12, %v1869_v34 }
 0x138   : > { %v4944_v61 = vpop.f32.mrf.mxu0  ;;  %v4987_v62 = vpop.f32.mrf.mxu1 }
 0x139   : > { %v4945_v56 = vadd.f32 %v4944_v61, %v4943_v58  ;;  %v4920_v58 = vadd.f32 %v6293_v41, %v6291_v40  ;;  %v1999_v42 = vadd.f32 %v4982_v54, %v1934_v26  ;;  %v1885_v40 = vadd.f32 %v4914_v60, %v4874_v45 }
 0x13a   : > { %v4946_v63 = vpop.f32.mrf.mxu0  ;;  %v6313_v2 = vpop.f32.mrf.mxu1 }
 0x13c   : > { %v4947_v1 = vpop.f32.mrf.mxu0  ;;  %v4990_v7 = vpop.f32.mrf.mxu1 }
 0x13d   : > { %v4948_v25 = vadd.f32 %v4947_v1, %v4946_v63  ;;  %v4988_v1 = vadd.f32 %v4987_v62, %v4986_v59  ;;  %v4877_v59 = vadd.f32 %v6285_v36, %v6281_v35  ;;  %v4917_v62 = vadd.f32 %v6287_v37, %v6283_v27  ;;  %v6872_v27 = vld [vmem:[#allocation13_spill] sm:$0xff] }
 0x13e   : > { %v4949_v4 = vpop.f32.mrf.mxu0  ;;  %v4985_v36 = vadd.f32 %v6872_v27, %v6309_v55  ;;  %v2261_v27 = vld [vmem:[#allocation2 + $0x1c] sm:$0x1] }
 0x13f   : > { %v1888_v47 = vadd.f32 %v4917_v62, %v4877_v59 }
 0x140   : > { %v4950_v11 = vpop.f32.mrf.mxu0  ;;  %v6315_v18 = vpop.f32.mrf.mxu1 }
 0x141   : > { %6868 = vst [vmem:[#allocation14_spill] sm:$0xff] %v6315_v18  ;;  %v4865_v18 = vadd.f32 %v6249_v52, %v6241_v38 }
 0x142   : > { %v6319_v3 = vpop.f32.mrf.mxu1 }
 0x143   : > { %6869 = vst [vmem:[#allocation15_spill] sm:$0xff] %v6319_v3  ;;  %v1877_v3 = vadd.f32 %v4908_v14, %v4868_v13  ;;  %v4951_v13 = vadd.f32 %v4950_v11, %v4949_v4  ;;  %v1872_v52 = vadd.f32 %v4905_v17, %v4865_v18  ;;  %v4991_v11 = vadd.f32 %v4990_v7, %v6313_v2 }
 0x144   : > { %v6325_v8 = vpop.f32.mrf.mxu1  ;;  %v1893_v18 = vadd.f32 %v4920_v58, %v4880_v53 }
 0x145   : > { %v4952_v22 = vpop.f32.mrf.mxu0  ;;  %6870 = vst [vmem:[#allocation16_spill] sm:$0xff] %v6325_v8  ;;  %v4871_v8 = vadd.f32 %v6269_v24, %v6265_v21  ;;  %v1942_v63 = vadd.f32 %v4948_v25, %v1877_v3  ;;  %v1937_v35 = vadd.f32 %v4945_v56, %v1872_v52  ;;  %v1896_v3 = vadd.f32 %v4923_v31, %v4883_v30 }
 0x146   : > { %v6331_v15 = vpop.f32.mrf.mxu1 }
 0x147   : > { %v4953_v57 = vpop.f32.mrf.mxu0  ;;  %6871 = vst [vmem:[#allocation17_spill] sm:$0xff] %v6331_v15  ;;  %v2953_v15 = vld [vmem:[#allocation2 + $0x4c] sm:$0x1]  ;;  %v1880_v24 = vadd.f32 %v4911_v0, %v4871_v8  ;;  %v2007_v51 = vadd.f32 %v4988_v1, %v1942_v63 }
 0x148   : > { %v3000_v29 = vrot.slane %v2953_v15, 5  ;;  %v4954_v41 = vadd.f32 %v4953_v57, %v4952_v22  ;;  %v6873_v20 = vld [vmem:[#allocation14_spill] sm:$0xff] }
 0x149   : > { %v6321_v5 = vpop.f32.mrf.mxu0  ;;  %v1945_v4 = vadd.f32 %v4951_v13, %v1880_v24 }
 0x14a   : > { %v4998_v9 = vpop.f32.mrf.mxu1  ;;  %v3001_v23 = vsel %vm6245_vm10, %v4697_v28, %v3000_v29  ;;  %v1950_v49 = vadd.f32 %v4954_v41, %v1885_v40  ;;  %v6874_v25 = vld [vmem:[#allocation15_spill] sm:$0xff] }
 0x14b   : > { %v6323_v6 = vpop.f32.mrf.mxu0  ;;  %3017 = vst [vmem:[#allocation4 + $0x11c] sm:$0xf] %v3001_v23  ;;  %v2010_v7 = vadd.f32 %v4991_v11, %v1945_v4  ;;  %v4994_v0 = vadd.f32 %v6874_v25, %v6873_v20 }
 0x14c   : > { %v4999_v38 = vpop.f32.mrf.mxu1  ;;  %v4957_v55 = vadd.f32 %v6323_v6, %v6321_v5  ;;  %v6875_v34 = vld [vmem:[#allocation16_spill] sm:$0xff] }
 0x14d   : > { %v5000_v16 = vadd.f32 %v4999_v38, %v4998_v9  ;;  %v2015_v60 = vadd.f32 %v4994_v0, %v1950_v49 }
 0x14e   : > { %v4958_v10 = vpop.f32.mrf.mxu0  ;;  %v5001_v37 = vpop.f32.mrf.mxu1  ;;  %v1953_v6 = vadd.f32 %v4957_v55, %v1888_v47  ;;  %v6876_v63 = vld [vmem:[#allocation17_spill] sm:$0xff] }
 0x14f   : > { %v4997_v1 = vadd.f32 %v6876_v63, %v6875_v34  ;;  %v2252_v63 = vld [vmem:[#allocation2 + $0x10] sm:$0xf] }
 0x150   : > { %v4959_v19 = vpop.f32.mrf.mxu0  ;;  %v5002_v57 = vpop.f32.mrf.mxu1 }
 0x151   : > { %v4960_v61 = vadd.f32 %v4959_v19, %v4958_v10  ;;  %v2002_v19 = vadd.f32 %v4985_v36, %v1937_v35  ;;  %v2258_v35 = vld [vmem:[#allocation2 + $0x18] sm:$0xf] }
 0x152   : > { %v4961_v50 = vpop.f32.mrf.mxu0 }
 0x153   : > { %v1958_v12 = vadd.f32 %v4960_v61, %v1893_v18 }
 0x154   : > { %v4962_v21 = vpop.f32.mrf.mxu0 }
 0x155   : > { %v4963_v8 = vadd.f32 %v4962_v21, %v4961_v50  ;;  %v5003_v21 = vadd.f32 %v5002_v57, %v5001_v37  ;;  %v2023_v9 = vadd.f32 %v5000_v16, %v1958_v12  ;;  %v2264_v16 = vld [vmem:[#allocation2 + $0x20] sm:$0xf] }
 0x157   : > { %v1961_v13 = vadd.f32 %v4963_v8, %v1896_v3 }
 0x159   : > { %v2026_v11 = vadd.f32 %v5003_v21, %v1961_v13 }
 0x15b   : > { %v5218_v32 = vpop.f32.mrf.mxu0 }
 0x15c   : > { %v2072_v39 = vadd.f32 %v5218_v32, %v2007_v51  ;;  %v2018_v51 = vadd.f32 %v4997_v1, %v1953_v6  ;;  %v2255_v1 = vld [vmem:[#allocation2 + $0x14] sm:$0x1] }
 0x15d   : > { %v2063_v44 = vpop.f32.mrf.mxu0 }
 0x15e   : > { %v2103_v48 = vmul.f32 %v6369_v33, %v2072_v39  ;;  %v2064_v2 = vadd.f32 %v2063_v44, %v1999_v42 }
 0x15f   : > { %v5219_v14 = vpop.f32.mrf.mxu0 }
 0x160   : > { %v2118_v22 = vadd.f32 %v6376_v43, %v2103_v48  ;;  %v2101_v10 = vmul.f32 %v6369_v33, %v2064_v2  ;;  %v2075_v15 = vadd.f32 %v5219_v14, %v2010_v7  ;;  %v2246_v48 = vld [vmem:[#allocation2 + $0x8] sm:$0xf]  ;;  %v2249_v2 = vld [vmem:[#allocation2 + $0xc] sm:$0x1] }
 0x161   : > { %v2066_v17 = vpop.f32.mrf.mxu0 }
 0x162   : > { %v2126_v28 = vmax.f32 %v2118_v22, 0.0  ;;  %v2116_v29 = vadd.f32 %v6376_v43, %v2101_v10  ;;  %v2104_v50 = vmul.f32 %v6369_v33, %v2075_v15  ;;  %v2067_v5 = vadd.f32 %v2066_v17, %v2002_v19  ;;  %v2267_v17 = vld [vmem:[#allocation2 + $0x24] sm:$0x1] }
 0x164   : > { %v4837_v23 = vpack.c.bf16 %v2126_v28, %v2126_v28  ;;  %v2124_v24 = vmax.f32 %v2116_v29, 0.0  ;;  %v2119_v26 = vadd.f32 %v6376_v43, %v2104_v50  ;;  %v2102_v54 = vmul.f32 %v6369_v33, %v2067_v5 }
 0x165   : > { %v5222_v56 = vpop.f32.mrf.mxu0 }
 0x166   : > { %v2181_v38 = vshrl.u32 %v4837_v23, 16  ;;  %v4835_v52 = vpack.c.bf16 %v2124_v24, %v2124_v24  ;;  %v2127_v45 = vmax.f32 %v2119_v26, 0.0  ;;  %v2117_v59 = vadd.f32 %v6376_v43, %v2102_v54 }
 0x167   : > { %v2088_v62 = vadd.f32 %v5222_v56, %v2023_v9  ;;  %v2079_v4 = vpop.f32.mrf.mxu0  ;;  %v2184_v58 = vshll.u32 %v4837_v23, 16 }
 0x168   : > { %v2183_v53 = vrot.slane %v2181_v38, 7  ;;  %v2165_v30 = vshrl.u32 %v4835_v52, 16  ;;  %v4838_v31 = vpack.c.bf16 %v2127_v45, %v2127_v45  ;;  %v2168_v36 = vshll.u32 %v4835_v52, 16 }
 0x169   : > { %v2125_v37 = vmax.f32 %v2117_v59, 0.0  ;;  %v2107_v39 = vmul.f32 %v6369_v33, %v2088_v62  ;;  %v2080_v42 = vadd.f32 %v2079_v4, %v2015_v60  ;;  %v5223_v40 = vpop.f32.mrf.mxu0  ;;  %v2282_v59 = vld [vmem:[#allocation2 + $0x38] sm:$0xf]  ;;  %v2285_v62 = vld [vmem:[#allocation2 + $0x3c] sm:$0x1] }
 0x16a   : > { %v2186_v41 = vor.u32 %v2184_v58, %v2183_v53  ;;  %v2187_v61 = vrot.slane %v2183_v53, 4  ;;  %v2167_v44 = vrot.slane %v2165_v30, 7  ;;  %v2189_v47 = vshrl.u32 %v4838_v31, 16 }
 0x16b   : > { %v2192_v7 = vshll.u32 %v4838_v31, 16  ;;  %v4836_v18 = vpack.c.bf16 %v2125_v37, %v2125_v37  ;;  %v2122_v3 = vadd.f32 %v6376_v43, %v2107_v39  ;;  %v2105_v55 = vmul.f32 %v6369_v33, %v2080_v42  ;;  %v2082_v25 = vpop.f32.mrf.mxu0 }
 0x16c   : > { %v2259_v8 = vsel %vm6394_vm12, %v2186_v41, %v2258_v35  ;;  %v2262_v57 = vsel %vm6192_vm5, %v2187_v61, %v2261_v27  ;;  %v2170_v22 = vor.u32 %v2168_v36, %v2167_v44  ;;  %v2171_v10 = vrot.slane %v2167_v44, 4  ;;  %v2270_v35 = vld [vmem:[#allocation2 + $0x28] sm:$0xf]  ;;  %v2273_v27 = vld [vmem:[#allocation2 + $0x2c] sm:$0x1] }
 0x16d   : > { %2260 = vst [vmem:[#allocation2 + $0x18] sm:$0xf] %v2259_v8  ;;  %2263 = vst [vmem:[#allocation2 + $0x1c] sm:$0x1] %v2262_v57  ;;  %v2191_v15 = vrot.slane %v2189_v47, 7  ;;  %v2173_v19 = vshrl.u32 %v4836_v18, 16  ;;  %v2120_v28 = vadd.f32 %v6376_v43, %v2105_v55  ;;  %v2091_v29 = vadd.f32 %v5223_v40, %v2026_v11 }
 0x16e   : > { %v2176_v49 = vshll.u32 %v4836_v18, 16  ;;  %v2130_v20 = vmax.f32 %v2122_v3, 0.0  ;;  %v2247_v0 = vsel %vm6394_vm12, %v2170_v22, %v2246_v48  ;;  %v2250_v12 = vsel %vm6192_vm5, %v2171_v10, %v2249_v2 }
 0x16f   : > { %2248 = vst [vmem:[#allocation2 + $0x8] sm:$0xf] %v2247_v0  ;;  %2251 = vst [vmem:[#allocation2 + $0xc] sm:$0x1] %v2250_v12  ;;  %v2194_v50 = vor.u32 %v2192_v7, %v2191_v15  ;;  %v2195_v5 = vrot.slane %v2191_v15, 4  ;;  %v2175_v6 = vrot.slane %v2173_v19, 7  ;;  %v2108_v21 = vmul.f32 %v6369_v33, %v2091_v29 }
 0x170   : > { %v4841_v34 = vpack.c.bf16 %v2130_v20, %v2130_v20  ;;  %v2128_v13 = vmax.f32 %v2120_v28, 0.0  ;;  %v2083_v23 = vadd.f32 %v2082_v25, %v2018_v51  ;;  %v2291_v28 = vld [vmem:[#allocation2 + $0x44] sm:$0x1] }
 0x171   : > { %v2265_v24 = vsel %vm6394_vm12, %v2194_v50, %v2264_v16  ;;  %v2268_v26 = vsel %vm6192_vm5, %v2195_v5, %v2267_v17  ;;  %v2178_v54 = vor.u32 %v2176_v49, %v2175_v6  ;;  %v2179_v9 = vrot.slane %v2175_v6, 4  ;;  %v2288_v17 = vld [vmem:[#allocation2 + $0x40] sm:$0xf] }
 0x172   : > { %2266 = vst [vmem:[#allocation2 + $0x20] sm:$0xf] %v2265_v24  ;;  %2269 = vst [vmem:[#allocation2 + $0x24] sm:$0x1] %v2268_v26  ;;  %v2213_v56 = vshrl.u32 %v4841_v34, 16  ;;  %v4839_v38 = vpack.c.bf16 %v2128_v13, %v2128_v13  ;;  %v2123_v52 = vadd.f32 %v6376_v43, %v2108_v21  ;;  %v2106_v4 = vmul.f32 %v6369_v33, %v2083_v23 }
 0x173   : > { %v2253_v45 = vsel %vm6394_vm12, %v2178_v54, %v2252_v63  ;;  %v2256_v60 = vsel %vm6192_vm5, %v2179_v9, %v2255_v1  ;;  %v2216_v51 = vshll.u32 %v4841_v34, 16  ;;  %v2276_v23 = vld [vmem:[#allocation2 + $0x30] sm:$0xf]  ;;  %v2279_v24 = vld [vmem:[#allocation2 + $0x34] sm:$0x1] }
 0x174   : > { %2254 = vst [vmem:[#allocation2 + $0x10] sm:$0xf] %v2253_v45  ;;  %2257 = vst [vmem:[#allocation2 + $0x14] sm:$0x1] %v2256_v60  ;;  %v2215_v11 = vrot.slane %v2213_v56, 7  ;;  %v2197_v53 = vshrl.u32 %v4839_v38, 16  ;;  %v2121_v36 = vadd.f32 %v6376_v43, %v2106_v4 }
 0x175   : > { %v2131_v58 = vmax.f32 %v2123_v52, 0.0  ;;  %v2460_v30 = vld [vmem:[#allocation2 + $0x18] sm:$0xe]  ;;  %v2200_v31 = vshll.u32 %v4839_v38, 16  ;;  %v2461_v37 = vld [vmem:[#allocation2 + $0x1c] sm:$0x1] }
 0x176   : > { %v4677_v39 = vrot.slane %v2460_v30, 9  ;;  %v2539_v42 = vld [vmem:[#allocation2 + $0x18] sm:$0xf]  ;;  %v2218_v40 = vor.u32 %v2216_v51, %v2215_v11  ;;  %v2219_v41 = vrot.slane %v2215_v11, 4  ;;  %v2199_v61 = vrot.slane %v2197_v53, 7 }
 0x177   : > { %v4842_v44 = vpack.c.bf16 %v2131_v58, %v2131_v58  ;;  %v2456_v33 = vld [vmem:[#allocation2 + $0x8] sm:$0xe]  ;;  %v2457_v47 = vld [vmem:[#allocation2 + $0xc] sm:$0x1]  ;;  %2547 = vst [vmem:[#allocation4 + $0x54] sm:$0xf] %v2539_v42 }
 0x178   : > { %v2129_v48 = vmax.f32 %v2121_v36, 0.0  ;;  %v4675_v2 = vrot.slane %v2456_v33, 9  ;;  %v2495_v7 = vrot.slane %v2457_v47, 5  ;;  %v2537_v18 = vld [vmem:[#allocation2 + $0x8] sm:$0xf]  ;;  %v2503_v3 = vrot.slane %v2461_v37, 5 }
 0x179   : > { %v2283_v55 = vsel %vm6394_vm12, %v2218_v40, %v2282_v59  ;;  %v2286_v43 = vsel %vm6192_vm5, %v2219_v41, %v2285_v62  ;;  %v2202_v8 = vor.u32 %v2200_v31, %v2199_v61  ;;  %v2203_v57 = vrot.slane %v2199_v61, 4  ;;  %2545 = vst [vmem:[#allocation4 + $0xc] sm:$0xf] %v2537_v18  ;;  %v2295_v22 = vld [vmem:[#allocation2 + $0x8] sm:$0xf] }
 0x17a   : > { %v2312_v10 = vld [vmem:[#allocation2 + $0x8] sm:$0xf]  ;;  %2284 = vst [vmem:[#allocation2 + $0x38] sm:$0xf] %v2283_v55  ;;  %2287 = vst [vmem:[#allocation2 + $0x3c] sm:$0x1] %v2286_v43  ;;  %v4840_v49 = vpack.c.bf16 %v2129_v48, %v2129_v48  ;;  %v2496_v20 = vsel %vm6245_vm10, %v4675_v2, %v2495_v7  ;;  %v2504_v29 = vsel %vm6245_vm10, %v4677_v39, %v2503_v3 }
 0x17b   : > { %v2221_v15 = vshrl.u32 %v4842_v44, 16  ;;  %v2224_v19 = vshll.u32 %v4842_v44, 16  ;;  %v2540_v25 = vld [vmem:[#allocation2 + $0x20] sm:$0xf]  ;;  %2303 = vst [vmem:[#allocation4 + $0x24] sm:$0xf] %v2295_v22  ;;  %v2271_v12 = vsel %vm6394_vm12, %v2202_v8, %v2270_v35  ;;  %v2274_v16 = vsel %vm6192_vm5, %v2203_v57, %v2273_v27 }
 0x17c   : > { %v2313_v0 = vld [vmem:[#allocation2 + $0xc] sm:$0x1]  ;;  %2530 = vst [vmem:[#allocation4 + $0x2c] sm:$0xf] %v2496_v20  ;;  %2548 = vst [vmem:[#allocation4 + $0x78] sm:$0xf] %v2540_v25 }
 0x17d   : > { %v2341_v50 = vshrl.u32 %v2312_v10, 16  ;;  %v2297_v5 = vld [vmem:[#allocation2 + $0x18] sm:$0xf]  ;;  %2272 = vst [vmem:[#allocation2 + $0x28] sm:$0xf] %v2271_v12  ;;  %v2223_v34 = vrot.slane %v2221_v15, 7 }
 0x17e   : > { %v6434_v6 = vld [vmem:[#allocation2 + $0x18] sm:$0xf]  ;;  %2275 = vst [vmem:[#allocation2 + $0x2c] sm:$0x1] %v2274_v16  ;;  %v2205_v63 = vshrl.u32 %v4840_v49, 16  ;;  %v2208_v1 = vshll.u32 %v4840_v49, 16 }
 0x17f   : > { %v2538_v13 = vld [vmem:[#allocation2 + $0x10] sm:$0xf]  ;;  %2532 = vst [vmem:[#allocation4 + $0x74] sm:$0xf] %v2504_v29  ;;  %v2344_v21 = vshll.u32 %v2312_v10, 16  ;;  %v2343_v9 = vrot.slane %v2341_v50, 4  ;;  %v2226_v38 = vor.u32 %v2224_v19, %v2223_v34 }
 0x180   : > { %2305 = vst [vmem:[#allocation4 + $0x6c] sm:$0xf] %v2297_v5  ;;  %2546 = vst [vmem:[#allocation4 + $0x30] sm:$0xf] %v2538_v13  ;;  %v2458_v26 = vld [vmem:[#allocation2 + $0x10] sm:$0xe] }
 0x181   : > { %v2459_v54 = vld [vmem:[#allocation2 + $0x14] sm:$0x1]  ;;  %v2350_v56 = vshll.u32 %v2313_v0, 16  ;;  %v2227_v52 = vrot.slane %v2223_v34, 4  ;;  %v2207_v45 = vrot.slane %v2205_v63, 7  ;;  %v4676_v60 = vrot.slane %v2458_v26, 9 }
 0x182   : > { %v2296_v59 = vld [vmem:[#allocation2 + $0x10] sm:$0xf]  ;;  %v2499_v62 = vrot.slane %v2459_v54, 5  ;;  %v2346_v4 = vrot.slane %v2344_v21, 5  ;;  %v2369_v53 = vshrl.u32 %v6434_v6, 16  ;;  %v2289_v58 = vsel %vm6394_vm12, %v2226_v38, %v2288_v17  ;;  %v5501_v33 = vld [vmem:[#allocation5 + $0x1b8] sm:$0xff]  }
 0x183   : > { %v2352_v11 = vrot.slane %v2350_v56, 5  ;;  %2304 = vst [vmem:[#allocation4 + $0x48] sm:$0xf] %v2296_v59  ;;  %v2314_v51 = vld [vmem:[#allocation2 + $0x10] sm:$0xf]  ;;  %v2292_v30 = vsel %vm6192_vm5, %v2227_v52, %v2291_v28  ;;  %v2210_v31 = vor.u32 %v2208_v1, %v2207_v45  ;;  %v2211_v35 = vrot.slane %v2207_v45, 4 }
 0x184   : > { %v2315_v27 = vld [vmem:[#allocation2 + $0x14] sm:$0x1]  ;;  %2290 = vst [vmem:[#allocation2 + $0x40] sm:$0xf] %v2289_v58  ;;  %2293 = vst [vmem:[#allocation2 + $0x44] sm:$0x1] %v2292_v30  ;;  %v2500_v36 = vsel %vm6245_vm10, %v4676_v60, %v2499_v62  ;;  %v2347_v37 = vor.u32 %v2346_v4, %v2343_v9 }
 0x185   : > { %v2317_v39 = vld [vmem:[#allocation2 + $0x1c] sm:$0x1]  ;;  %v2355_v42 = vshrl.u32 %v2314_v51, 16  ;;  %v2358_v40 = vshll.u32 %v2314_v51, 16  ;;  %v2462_v41 = vld [vmem:[#allocation2 + $0x20] sm:$0xe]  ;;  %v2277_v61 = vsel %vm6394_vm12, %v2210_v31, %v2276_v23  ;;  %v2280_v44 = vsel %vm6192_vm5, %v2211_v35, %v2279_v24 }
 0x186   : > { %2531 = vst [vmem:[#allocation4 + $0x50] sm:$0xf] %v2500_v36  ;;  %v2364_v47 = vshll.u32 %v2315_v27, 16  ;;  %v2371_v48 = vrot.slane %v2369_v53, 4  ;;  %v2463_v2 = vld [vmem:[#allocation2 + $0x24] sm:$0x1] }
 0x187   : > { %v2298_v7 = vld [vmem:[#allocation2 + $0x20] sm:$0xf]  ;;  %2278 = vst [vmem:[#allocation2 + $0x30] sm:$0xf] %v2277_v61  ;;  %2281 = vst [vmem:[#allocation2 + $0x34] sm:$0x1] %v2280_v44 }
 0x188   : > { %v2348_v18 = vrot.slane %v2347_v37, 4  ;;  %v5508_v3 = vld [vmem:[#allocation5 + $0x1f0] sm:$0xff]   ;;  %v2357_v55 = vrot.slane %v2355_v42, 4  ;;  %v2360_v43 = vrot.slane %v2358_v40, 5  ;;  %v2372_v8 = vshll.u32 %v6434_v6, 16  ;;  %v5514_v52 = vld [vmem:[#allocation5 + $0x1e8] sm:$0xff]  }
 0x189   : > { %2306 = vst [vmem:[#allocation4 + $0x90] sm:$0xf] %v2298_v7  ;;  %v2318_v32 = vld [vmem:[#allocation2 + $0x20] sm:$0xf]  ;;  %v5495_v57 = vld [vmem:[#allocation4 + $0x8] ss:$36 sps:$4 sm:$0xff]  }
 0x18a   : > { %v5497_v22 = vld [vmem:[#allocation4 + $0xc] ss:$36 sps:$4 sm:$0xff]   ;;  %v2366_v14 = vrot.slane %v2364_v47, 5  ;;  %v2353_v15 = vsel %vm5930_vm2, %v2348_v18, %v2352_v11  ;;  %v2361_v19 = vor.u32 %v2360_v43, %v2357_v55  ;;  %v2374_v49 = vrot.slane %v2372_v8, 5  ;;  %v2464_v25 = vld [vmem:[#allocation2 + $0x28] sm:$0xe] }
 0x18b   : > { %v2378_v20 = vshll.u32 %v2317_v39, 16  ;;  %v2465_v0 = vld [vmem:[#allocation2 + $0x2c] sm:$0x1]  ;;  %3915 = vmatprep.mubr.bf16.mxu0 %v5497_v22  ;;  %2447 = vst [vmem:[#allocation4 + $0x28] sm:$0xf] %v2353_v15  ;;  %v5510_v12 = vld [vmem:[#allocation5 + $0x1b0] sm:$0xff]  }
 0x18c   : > { %v4678_v16 = vrot.slane %v2462_v41, 9  ;;  %v2507_v17 = vrot.slane %v2463_v2, 5  ;;  %v4679_v28 = vrot.slane %v2464_v25, 9  ;;  %v2511_v29 = vrot.slane %v2465_v0, 5  ;;  %v2541_v50 = vld [vmem:[#allocation2 + $0x28] sm:$0xf]  ;;  %3916 = vmatmul.mubr.bf16.vlgmr.msra.gmra.mxu0 %v5495_v57 }
 0x18d   : > { %v2362_v5 = vrot.slane %v2361_v19, 4  ;;  %v2375_v6 = vor.u32 %v2374_v49, %v2371_v48  ;;  %v2380_v34 = vrot.slane %v2378_v20, 5  ;;  %2549 = vst [vmem:[#allocation4 + $0x9c] sm:$0xf] %v2541_v50  ;;  %v2299_v63 = vld [vmem:[#allocation2 + $0x28] sm:$0xf]  ;;  %5137 = vmatpush3.bf16.msra.mxu0 %v5501_v33 }
 0x18e   : > { %v2319_v1 = vld [vmem:[#allocation2 + $0x24] sm:$0x1]  ;;  %v2508_v13 = vsel %vm6245_vm10, %v4678_v16, %v2507_v17  ;;  %v2512_v21 = vsel %vm6245_vm10, %v4679_v28, %v2511_v29  ;;  %2307 = vst [vmem:[#allocation4 + $0xb4] sm:$0xf] %v2299_v63  ;;  %v2320_v23 = vld [vmem:[#allocation2 + $0x28] sm:$0xf]  ;;  %5138 = vmatprep.subr.bf16.mxu0 %v5508_v3 }
 0x18f   : > { %v2321_v24 = vld [vmem:[#allocation2 + $0x2c] sm:$0x1]  ;;  %v2383_v26 = vshrl.u32 %v2318_v32, 16  ;;  %v2386_v54 = vshll.u32 %v2318_v32, 16  ;;  %v5502_v9 = vld [vmem:[#allocation4 + $0x54] ss:$36 sps:$4 sm:$0xff]   ;;  %v2367_v56 = vsel %vm5930_vm2, %v2362_v5, %v2366_v14 }
 0x190   : > { %v2376_v38 = vrot.slane %v2375_v6, 4  ;;  %2533 = vst [vmem:[#allocation4 + $0x98] sm:$0xf] %v2508_v13  ;;  %2534 = vst [vmem:[#allocation4 + $0xbc] sm:$0xf] %v2512_v21  ;;  %v2392_v45 = vshll.u32 %v2319_v1, 16  ;;  %3923 = vmatprep.mubr.bf16.mxu0 %v5502_v9 }
 0x191   : > { %v2397_v60 = vshrl.u32 %v2320_v23, 16  ;;  %v3029_v59 = vld [vmem:[#allocation4 + $0x50] sm:$0xff]  ;;  %2448 = vst [vmem:[#allocation4 + $0x4c] sm:$0xf] %v2367_v56  ;;  %v2542_v62 = vld [vmem:[#allocation2 + $0x30] sm:$0xf]  ;;  %5139 = vmatpush3.bf16.msra.mxu0 %v5510_v12 }
 0x192   : > { %v5518_v4 = vld [vmem:[#allocation5 + $0x1a8] sm:$0xff]   ;;  %v2385_v11 = vrot.slane %v2383_v26, 4  ;;  %v2388_v51 = vrot.slane %v2386_v54, 5  ;;  %v2400_v53 = vshll.u32 %v2320_v23, 16  ;;  %v3034_v58 = vld [vmem:[#allocation4 + $0x74] sm:$0xff]  ;;  %v2381_v31 = vsel %vm5930_vm2, %v2376_v38, %v2380_v34  ;;  %v5520_v35 = vld [vmem:[#allocation5 + $0x1e0] sm:$0xff]   ;;  %5140 = vmatprep.subr.bf16.mxu0 %v5514_v52 }
 0x193   : > { %v5509_v30 = vld [vmem:[#allocation5 + $0x138] sm:$0xff]   ;;  %2550 = vst [vmem:[#allocation4 + $0xc0] sm:$0xf] %v2542_v62  ;;  %v2399_v27 = vrot.slane %v2397_v60, 4  ;;  %v2406_v36 = vshll.u32 %v2321_v24, 16  ;;  %v4709_v47 = vcombine.low %v3029_v59, %v3034_v58  ;;  %v2394_v48 = vrot.slane %v2392_v45, 5 }
 0x194   : > { %v2466_v37 = vld [vmem:[#allocation2 + $0x30] sm:$0xe]  ;;  %2449 = vst [vmem:[#allocation4 + $0x70] sm:$0xf] %v2381_v31  ;;  %v2389_v39 = vor.u32 %v2388_v51, %v2385_v11  ;;  %v2402_v42 = vrot.slane %v2400_v53, 5  ;;  %v5513_v2 = vld [vmem:[#allocation5 + $0x170] sm:$0xff]  }
 0x195   : > { %v2467_v40 = vld [vmem:[#allocation2 + $0x34] sm:$0x1]  ;;  %v2468_v41 = vld [vmem:[#allocation2 + $0x38] sm:$0xe]  ;;  %v4680_v61 = vrot.slane %v2466_v37, 9  ;;  %3924 = vmatmul.mubr.bf16.gmra.mxu0 %v4709_v47  ;;  %v5517_v8 = vld [vmem:[#allocation5 + $0x130] sm:$0xff]  }
 0x196   : > { %v5504_v44 = vld [vmem:[#allocation4] ss:$36 sps:$4 sm:$0xff]   ;;  %v2390_v7 = vrot.slane %v2389_v39, 4  ;;  %v2403_v18 = vor.u32 %v2402_v42, %v2399_v27  ;;  %v2469_v3 = vld [vmem:[#allocation2 + $0x3c] sm:$0x1]  ;;  %v2515_v55 = vrot.slane %v2467_v40, 5  ;;  %5141 = vmatpush3.bf16.msra.mxu0 %v5518_v4 }
 0x197   : > { %v5506_v33 = vld [vmem:[#allocation4 + $0x4] ss:$36 sps:$4 sm:$0xff]   ;;  %v4681_v43 = vrot.slane %v2468_v41, 9  ;;  %v2519_v57 = vrot.slane %v2469_v3, 5  ;;  %v2544_v14 = vld [vmem:[#allocation2 + $0x40] sm:$0xf]  ;;  %5142 = vmatprep.subr.bf16.mxu0 %v5520_v35 }
 0x198   : > { %3850 = vmatprep.mubr.bf16.mxu1 %v5506_v33  ;;  %v5523_v32 = vld [vmem:[#allocation5 + $0x1a0] sm:$0xff]   ;;  %v2543_v22 = vld [vmem:[#allocation2 + $0x38] sm:$0xf]  ;;  %v2395_v19 = vsel %vm5930_vm2, %v2390_v7, %v2394_v48  ;;  %v2404_v49 = vrot.slane %v2403_v18, 4  ;;  %v2408_v20 = vrot.slane %v2406_v36, 5  ;;  %v5527_v25 = vld [vmem:[#allocation5 + $0x1d8] sm:$0xff]   ;;  %v2516_v0 = vsel %vm6245_vm10, %v4680_v61, %v2515_v55 }
 0x199   : > { %3851 = vmatmul.mubr.bf16.vlgmr.msra.gmra.mxu1 %v5504_v44  ;;  %v5519_v15 = vld [vmem:[#allocation5 + $0x168] sm:$0xff]   ;;  %2551 = vst [vmem:[#allocation4 + $0xe4] sm:$0xf] %v2543_v22  ;;  %2552 = vst [vmem:[#allocation4 + $0x108] sm:$0xf] %v2544_v14  ;;  %v2520_v17 = vsel %vm6245_vm10, %v4681_v43, %v2519_v57  ;;  %v5531_v34 = vld [vmem:[#allocation5 + $0x198] sm:$0xff]  }
 0x19a   : > { %v2300_v12 = vld [vmem:[#allocation2 + $0x30] sm:$0xf]  ;;  %v2301_v16 = vld [vmem:[#allocation2 + $0x38] sm:$0xf]  ;;  %5097 = vmatpush3.bf16.msra.mxu1 %v5509_v30  ;;  %2450 = vst [vmem:[#allocation4 + $0x94] sm:$0xf] %v2395_v19  ;;  %v2409_v6 = vsel %vm5930_vm2, %v2404_v49, %v2408_v20  ;;  %5143 = vmatpush3.bf16.msra.mxu0 %v5523_v32 }
 0x19b   : > { %2535 = vst [vmem:[#allocation4 + $0xe0] sm:$0xf] %v2516_v0  ;;  %2308 = vst [vmem:[#allocation4 + $0xd8] sm:$0xf] %v2300_v12  ;;  %v2322_v28 = vld [vmem:[#allocation2 + $0x30] sm:$0xf]  ;;  %5098 = vmatprep.subr.bf16.mxu1 %v5513_v2  ;;  %5144 = vmatprep.subr.bf16.mxu0 %v5527_v25 }
 0x19c   : > { %2309 = vst [vmem:[#allocation4 + $0xfc] sm:$0xf] %v2301_v16  ;;  %v2323_v29 = vld [vmem:[#allocation2 + $0x34] sm:$0x1]  ;;  %v3044_v50 = vld [vmem:[#allocation4 + $0xbc] sm:$0xff]  ;;  %v2411_v1 = vshrl.u32 %v2322_v28, 16 }
 0x19d   : > { %v5515_v5 = vld [vmem:[#allocation4 + $0x9c] ss:$36 sps:$4 sm:$0xff]   ;;  %2536 = vst [vmem:[#allocation4 + $0x104] sm:$0xf] %v2520_v17  ;;  %v2324_v63 = vld [vmem:[#allocation2 + $0x38] sm:$0xf] }
 0x19e   : > { %v5511_v13 = vld [vmem:[#allocation4 + $0x4c] ss:$36 sps:$4 sm:$0xff]   ;;  %v3039_v21 = vld [vmem:[#allocation4 + $0x98] sm:$0xff]  ;;  %2451 = vst [vmem:[#allocation4 + $0xb8] sm:$0xf] %v2409_v6  ;;  %v2414_v24 = vshll.u32 %v2322_v28, 16  ;;  %3931 = vmatprep.mubr.bf16.mxu0 %v5515_v5  ;;  %5099 = vmatpush3.bf16.msra.mxu1 %v5517_v8 }
 0x19f   : > { %v5522_v23 = vld [vmem:[#allocation5 + $0x128] sm:$0xff]   ;;  %v5526_v54 = vld [vmem:[#allocation5 + $0x160] sm:$0xff]   ;;  %v2413_v56 = vrot.slane %v2411_v1, 4  ;;  %v2420_v38 = vshll.u32 %v2323_v29, 16  ;;  %v2425_v52 = vshrl.u32 %v2324_v63, 16  ;;  %v2428_v45 = vshll.u32 %v2324_v63, 16  ;;  %3858 = vmatprep.mubr.bf16.mxu1 %v5511_v13  ;;  %5100 = vmatprep.subr.bf16.mxu1 %v5519_v15 }
 0x1a0   : > { %v5521_v26 = vld [vmem:[#allocation4 + $0x48] ss:$36 sps:$4 sm:$0xff]   ;;  %v4718_v60 = vcombine.low %v3039_v21, %v3044_v50  ;;  %v5533_v59 = vld [vmem:[#allocation5 + $0x1d0] sm:$0xff]   ;;  %v2416_v62 = vrot.slane %v2414_v24, 5  ;;  %v2778_v4 = vld [vmem:[#allocation2 + $0x10] sm:$0xf]  ;;  %5145 = vmatpush3.bf16.msra.mxu0 %v5531_v34 }
 0x1a1   : > { %v2325_v9 = vld [vmem:[#allocation2 + $0x3c] sm:$0x1]  ;;  %v2779_v11 = vld [vmem:[#allocation2 + $0x18] sm:$0xf]  ;;  %v5536_v51 = vld [vmem:[#allocation5 + $0x190] sm:$0xff]   ;;  %v2427_v53 = vrot.slane %v2425_v52, 4  ;;  %3859 = vmatmul.mubr.bf16.gmra.mxu1 %v5521_v26  ;;  %5146 = vmatprep.subr.bf16.mxu0 %v5533_v59 }
 0x1a2   : > { %v2430_v58 = vrot.slane %v2428_v45, 5  ;;  %v2434_v30 = vshll.u32 %v2325_v9, 16  ;;  %2786 = vst [vmem:[#allocation4 + $0x18] sm:$0xf] %v2778_v4  ;;  %2787 = vst [vmem:[#allocation4 + $0x3c] sm:$0xf] %v2779_v11  ;;  %3932 = vmatmul.mubr.bf16.gmra.mxu0 %v4718_v60  ;;  %v2417_v27 = vor.u32 %v2416_v62, %v2413_v56  ;;  %5101 = vmatpush3.bf16.msra.mxu1 %v5522_v23 }
 0x1a3   : > { %v2794_v31 = vld [vmem:[#allocation2 + $0x10] sm:$0xf]  ;;  %v5540_v36 = vld [vmem:[#allocation5 + $0x1c8] sm:$0xff]   ;;  %v2795_v37 = vld [vmem:[#allocation2 + $0x14] sm:$0x1]  ;;  %v2422_v41 = vrot.slane %v2420_v38, 5  ;;  %5102 = vmatprep.subr.bf16.mxu1 %v5526_v54 }
 0x1a4   : > { %v5530_v35 = vld [vmem:[#allocation5 + $0x120] sm:$0xff]   ;;  %v2796_v39 = vld [vmem:[#allocation2 + $0x18] sm:$0xf]  ;;  %v2811_v42 = vshrl.u32 %v2794_v31, 16  ;;  %v2431_v61 = vor.u32 %v2430_v58, %v2427_v53  ;;  %v2797_v44 = vld [vmem:[#allocation2 + $0x1c] sm:$0x1]  ;;  %5147 = vmatpush3.bf16.msra.mxu0 %v5536_v51 }
 0x1a5   : > { %v3049_v40 = vld [vmem:[#allocation4 + $0xe0] sm:$0xff]  ;;  %v2814_v33 = vshll.u32 %v2794_v31, 16  ;;  %v2418_v48 = vrot.slane %v2417_v27, 4  ;;  %v2820_v7 = vshll.u32 %v2795_v37, 16  ;;  %v2825_v18 = vshrl.u32 %v2796_v39, 16  ;;  %v5532_v55 = vld [vmem:[#allocation5 + $0x158] sm:$0xff]   ;;  %5148 = vmatprep.subr.bf16.mxu0 %v5540_v36 }
 0x1a6   : > { %v5528_v47 = vld [vmem:[#allocation4 + $0xe4] ss:$36 sps:$4 sm:$0xff]   ;;  %v2813_v2 = vrot.slane %v2811_v42, 4  ;;  %v5524_v3 = vld [vmem:[#allocation4 + $0x94] ss:$36 sps:$4 sm:$0xff]   ;;  %v2432_v43 = vrot.slane %v2431_v61, 4  ;;  %5103 = vmatpush3.bf16.msra.mxu1 %v5530_v35 }
 0x1a7   : > { %v2436_v8 = vrot.slane %v2434_v30, 5  ;;  %v3054_v32 = vld [vmem:[#allocation4 + $0x104] sm:$0xff]  ;;  %3939 = vmatprep.mubr.bf16.mxu0 %v5528_v47  ;;  %v5535_v57 = vld [vmem:[#allocation5 + $0x118] sm:$0xff]   ;;  %v2423_v22 = vsel %vm5930_vm2, %v2418_v48, %v2422_v41  ;;  %v2816_v15 = vrot.slane %v2814_v33, 5  ;;  %v2827_v19 = vrot.slane %v2825_v18, 4  ;;  %3866 = vmatprep.mubr.bf16.mxu1 %v5524_v3  ;;  %v5539_v12 = vld [vmem:[#allocation5 + $0x150] sm:$0xff]  }
 0x1a8   : > { %v5542_v14 = vld [vmem:[#allocation5 + $0x188] sm:$0xff]   ;;  %v2553_v49 = vld [vmem:[#allocation2 + $0x8] sm:$0xf]  ;;  %v5534_v20 = vld [vmem:[#allocation4 + $0x90] ss:$36 sps:$4 sm:$0xff]   ;;  %v4727_v0 = vcombine.low %v3049_v40, %v3054_v32  ;;  %v2828_v16 = vshll.u32 %v2796_v39, 16  ;;  %5104 = vmatprep.subr.bf16.mxu1 %v5532_v55 }
 0x1a9   : > { %v2437_v25 = vsel %vm5930_vm2, %v2432_v43, %v2436_v8  ;;  %2452 = vst [vmem:[#allocation4 + $0xdc] sm:$0xf] %v2423_v22  ;;  %v2834_v17 = vshll.u32 %v2797_v44, 16  ;;  %v2554_v28 = vld [vmem:[#allocation2 + $0xc] sm:$0x1]  ;;  %v2817_v50 = vor.u32 %v2816_v15, %v2813_v2  ;;  %v2822_v5 = vrot.slane %v2820_v7, 5  ;;  %3867 = vmatmul.mubr.bf16.gmra.mxu1 %v5534_v20  ;;  %5149 = vmatpush3.bf16.msra.mxu0 %v5542_v14 }
 0x1aa   : > { %v2555_v29 = vld [vmem:[#allocation2 + $0x10] sm:$0xf]  ;;  %2453 = vst [vmem:[#allocation4 + $0x100] sm:$0xf] %v2437_v25  ;;  %v2556_v34 = vld [vmem:[#allocation2 + $0x14] sm:$0x1]  ;;  %3940 = vmatmul.mubr.bf16.gmra.mxu0 %v4727_v0  ;;  %5105 = vmatpush3.bf16.msra.mxu1 %v5535_v57 }
 0x1ab   : > { %v5547_v6 = vld [vmem:[#allocation5 + $0x1c0] sm:$0xff]   ;;  %v2570_v63 = vshrl.u32 %v2553_v49, 16  ;;  %v2573_v1 = vshll.u32 %v2553_v49, 16  ;;  %v2830_v13 = vrot.slane %v2828_v16, 5  ;;  %v2579_v23 = vshll.u32 %v2554_v28, 16  ;;  %v5541_v9 = vld [vmem:[#allocation5 + $0x110] sm:$0xff]   ;;  %5106 = vmatprep.subr.bf16.mxu1 %v5539_v12 }
 0x1ac   : > { %v5550_v21 = vld [vmem:[#allocation5 + $0x180] sm:$0xff]   ;;  %v2584_v24 = vshrl.u32 %v2555_v29, 16  ;;  %v2587_v26 = vshll.u32 %v2555_v29, 16  ;;  %v2697_v54 = vld [vmem:[#allocation2 + $0x8] sm:$0xe]  ;;  %v2818_v56 = vrot.slane %v2817_v50, 4  ;;  %5150 = vmatprep.subr.bf16.mxu0 %v5547_v6 }
 0x1ad   : > { %v2836_v38 = vrot.slane %v2834_v17, 5  ;;  %v2572_v52 = vrot.slane %v2570_v63, 4  ;;  %v2575_v45 = vrot.slane %v2573_v1, 5  ;;  %v2698_v60 = vld [vmem:[#allocation2 + $0xc] sm:$0x1]  ;;  %v2831_v59 = vor.u32 %v2830_v13, %v2827_v19  ;;  %v6473_v53 = vld [vmem:[%s6846_s7 + $0x38] sm:$0xff]   ;;  %5151 = vmatpush3.bf16.msra.mxu0 %v5550_v21 }
 0x1ae   : > { %v2586_v62 = vrot.slane %v2584_v24, 4  ;;  %v2589_v4 = vrot.slane %v2587_v26, 5  ;;  %v2593_v11 = vshll.u32 %v2556_v34, 16  ;;  %v2699_v51 = vld [vmem:[#allocation2 + $0x10] sm:$0xe]  ;;  %v2823_v58 = vsel %vm5930_vm2, %v2818_v56, %v2822_v5  ;;  %v5546_v39 = vld [vmem:[#allocation5 + $0x148] sm:$0xff]   ;;  %5107 = vmatpush3.bf16.msra.mxu1 %v5541_v9  ;;  %5248 = vmatprep.subr.bf16.mxu0 %v6473_v53 }
 0x1af   : > { %v2576_v30 = vor.u32 %v2575_v45, %v2572_v52  ;;  %v2700_v31 = vld [vmem:[#allocation2 + $0x14] sm:$0x1]  ;;  %v4682_v35 = vrot.slane %v2697_v54, 9  ;;  %v2731_v27 = vrot.slane %v2698_v60, 5  ;;  %v2780_v36 = vld [vmem:[#allocation2 + $0x20] sm:$0xf]  ;;  %5108 = vmatprep.subr.bf16.mxu1 %v5546_v39 }
 0x1b0   : > { %v2832_v37 = vrot.slane %v2831_v59, 4  ;;  %2930 = vst [vmem:[#allocation4 + $0x1c] sm:$0xf] %v2823_v58  ;;  %v2581_v42 = vrot.slane %v2579_v23, 5  ;;  %v2590_v40 = vor.u32 %v2589_v4, %v2586_v62  ;;  %v4683_v41 = vrot.slane %v2699_v51, 9  ;;  %v5549_v44 = vld [vmem:[#allocation5 + $0x108] sm:$0xff]  }
 0x1b1   : > { %v2781_v61 = vld [vmem:[#allocation2 + $0x28] sm:$0xf]  ;;  %2788 = vst [vmem:[#allocation4 + $0x60] sm:$0xf] %v2780_v36  ;;  %v2577_v33 = vrot.slane %v2576_v30, 4  ;;  %v2595_v47 = vrot.slane %v2593_v11, 5  ;;  %v2732_v48 = vsel %vm6245_vm10, %v4682_v35, %v2731_v27 }
 0x1b2   : > { %v2735_v2 = vrot.slane %v2700_v31, 5  ;;  %2789 = vst [vmem:[#allocation4 + $0x84] sm:$0xf] %v2781_v61  ;;  %v2798_v7 = vld [vmem:[#allocation2 + $0x20] sm:$0xf]  ;;  %v2837_v3 = vsel %vm5930_vm2, %v2832_v37, %v2836_v38  ;;  %v2591_v43 = vrot.slane %v2590_v40, 4  ;;  %5109 = vmatpush3.bf16.msra.mxu1 %v5549_v44 }
 0x1b3   : > { %v5537_v18 = vld [vmem:[#allocation4 + $0xdc] ss:$36 sps:$4 sm:$0xff]   ;;  %2769 = vst [vmem:[#allocation4 + $0x14] sm:$0xf] %v2732_v48  ;;  %2931 = vst [vmem:[#allocation4 + $0x40] sm:$0xf] %v2837_v3  ;;  %v2582_v8 = vsel %vm5930_vm2, %v2577_v33, %v2581_v42 }
 0x1b4   : > { %v5548_v55 = vld [vmem:[#allocation4 + $0xd8] ss:$36 sps:$4 sm:$0xff]   ;;  %v2736_v32 = vsel %vm6245_vm10, %v4683_v41, %v2735_v2  ;;  %v2799_v57 = vld [vmem:[#allocation2 + $0x24] sm:$0x1]  ;;  %3874 = vmatprep.mubr.bf16.mxu1 %v5537_v18  ;;  %v2596_v15 = vsel %vm5930_vm2, %v2591_v43, %v2595_v47  ;;  %2689 = vst [vmem:[#allocation4 + $0x10] sm:$0xf] %v2582_v8 }
 0x1b5   : > { %v2800_v22 = vld [vmem:[#allocation2 + $0x28] sm:$0xf]  ;;  %v2801_v14 = vld [vmem:[#allocation2 + $0x2c] sm:$0x1]  ;;  %2770 = vst [vmem:[#allocation4 + $0x38] sm:$0xf] %v2736_v32  ;;  %3875 = vmatmul.mubr.bf16.gmra.mxu1 %v5548_v55 }
 0x1b6   : > { %v5554_v19 = vld [vmem:[#allocation5 + $0x140] sm:$0xff]   ;;  %v2839_v49 = vshrl.u32 %v2798_v7, 16  ;;  %v2842_v20 = vshll.u32 %v2798_v7, 16  ;;  %v2848_v25 = vshll.u32 %v2799_v57, 16  ;;  %v2557_v0 = vld [vmem:[#allocation2 + $0x18] sm:$0xf] }
 0x1b7   : > { %2690 = vst [vmem:[#allocation4 + $0x34] sm:$0xf] %v2596_v15  ;;  %v5555_v12 = vld [vmem:[#allocation5 + $0x100] sm:$0xff]   ;;  %v2853_v16 = vshrl.u32 %v2800_v22, 16  ;;  %v2856_v17 = vshll.u32 %v2800_v22, 16  ;;  %v2862_v28 = vshll.u32 %v2801_v14, 16  ;;  %5110 = vmatprep.subr.bf16.mxu1 %v5554_v19 }
 0x1b8   : > { %v2558_v29 = vld [vmem:[#allocation2 + $0x1c] sm:$0x1]  ;;  %v2598_v50 = vshrl.u32 %v2557_v0, 16  ;;  %v2841_v5 = vrot.slane %v2839_v49, 4  ;;  %v2844_v6 = vrot.slane %v2842_v20, 5  ;;  %v2850_v34 = vrot.slane %v2848_v25, 5  ;;  %5111 = vmatpush3.bf16.msra.mxu1 %v5555_v12 }
 0x1b9   : > { %v2559_v63 = vld [vmem:[#allocation2 + $0x20] sm:$0xf]  ;;  %v2601_v1 = vshll.u32 %v2557_v0, 16  ;;  %v2855_v13 = vrot.slane %v2853_v16, 4  ;;  %v2858_v21 = vrot.slane %v2856_v17, 5  ;;  %v2864_v23 = vrot.slane %v2862_v28, 5 }
 0x1ba   : > { %v2560_v24 = vld [vmem:[#allocation2 + $0x24] sm:$0x1]  ;;  %v2845_v26 = vor.u32 %v2844_v6, %v2841_v5  ;;  %v5558_v54 = vld [vmem:[#allocation5 + $0x238] sm:$0xff]   ;;  %v2600_v9 = vrot.slane %v2598_v50, 4  ;;  %v2607_v38 = vshll.u32 %v2558_v29, 16  ;;  %v2612_v60 = vshrl.u32 %v2559_v63, 16 }
 0x1bb   : > { %v2603_v56 = vrot.slane %v2601_v1, 5  ;;  %v2701_v52 = vld [vmem:[#allocation2 + $0x18] sm:$0xe]  ;;  %v2859_v45 = vor.u32 %v2858_v21, %v2855_v13  ;;  %v2615_v59 = vshll.u32 %v2559_v63, 16  ;;  %v2621_v62 = vshll.u32 %v2560_v24, 16  ;;  %v6491_v37 = vld [vmem:[%s6846_s7 + $0x30] sm:$0xff]   ;;  %5224 = vmatprep.subr.bf16.mxu1 %v5558_v54 }
 0x1bc   : > { %v2702_v4 = vld [vmem:[#allocation2 + $0x1c] sm:$0x1]  ;;  %v5543_v11 = vld [vmem:[#allocation4 + $0x18] ss:$36 sps:$4 sm:$0xff]   ;;  %v2846_v58 = vrot.slane %v2845_v26, 4  ;;  %v2609_v35 = vrot.slane %v2607_v38, 5 }
 0x1bd   : > { %v5545_v51 = vld [vmem:[#allocation4 + $0x1c] ss:$36 sps:$4 sm:$0xff]   ;;  %v2604_v30 = vor.u32 %v2603_v56, %v2600_v9  ;;  %v2860_v31 = vrot.slane %v2859_v45, 4  ;;  %v2614_v27 = vrot.slane %v2612_v60, 4  ;;  %v2617_v36 = vrot.slane %v2615_v59, 5  ;;  %v5562_v2 = vld [vmem:[#allocation5 + $0x230] sm:$0xff]  }
 0x1be   : > { %4045 = vmatprep.mubr.bf16.mxu0 %v5545_v51  ;;  %v5551_v39 = vld [vmem:[#allocation4 + $0x10] ss:$36 sps:$4 sm:$0xff]   ;;  %v2851_v40 = vsel %vm5930_vm2, %v2846_v58, %v2850_v34  ;;  %v4684_v48 = vrot.slane %v2701_v52, 9  ;;  %v2739_v18 = vrot.slane %v2702_v4, 5  ;;  %v2782_v43 = vld [vmem:[#allocation2 + $0x30] sm:$0xf] }
 0x1bf   : > { %v5553_v42 = vld [vmem:[#allocation4 + $0x14] ss:$36 sps:$4 sm:$0xff]   ;;  %v2605_v41 = vrot.slane %v2604_v30, 4  ;;  %4046 = vmatmul.mubr.bf16.vlgmr.msra.gmra.mxu0 %v5543_v11  ;;  %v2865_v61 = vsel %vm5930_vm2, %v2860_v31, %v2864_v23  ;;  %2932 = vst [vmem:[#allocation4 + $0x64] sm:$0xf] %v2851_v40  ;;  %v2618_v44 = vor.u32 %v2617_v36, %v2614_v27  ;;  %v2623_v57 = vrot.slane %v2621_v62, 5 }
 0x1c0   : > { %v2703_v33 = vld [vmem:[#allocation2 + $0x20] sm:$0xe]  ;;  %v2704_v47 = vld [vmem:[#allocation2 + $0x24] sm:$0x1]  ;;  %3980 = vmatprep.mubr.bf16.mxu1 %v5553_v42  ;;  %2933 = vst [vmem:[#allocation4 + $0x88] sm:$0xf] %v2865_v61  ;;  %5249 = vmatpush3.bf16.msra.mxu0 %v6473_v53  ;;  %v2740_v19 = vsel %vm6245_vm10, %v4684_v48, %v2739_v18 }
 0x1c1   : > { %v2610_v7 = vsel %vm5930_vm2, %v2605_v41, %v2609_v35  ;;  %v4685_v3 = vrot.slane %v2703_v33, 9  ;;  %v2743_v55 = vrot.slane %v2704_v47, 5  ;;  %v6503_v8 = vld [vmem:[%s6846_s7 + $0x28] sm:$0xff]   ;;  %3981 = vmatmul.mubr.bf16.vlgmr.msra.gmra.mxu1 %v5551_v39  ;;  %v2619_v32 = vrot.slane %v2618_v44, 4  ;;  %v2783_v22 = vld [vmem:[#allocation2 + $0x38] sm:$0xf]  ;;  %5250 = vmatprep.subr.bf16.mxu0 %v6491_v37 }
 0x1c2   : > { %2691 = vst [vmem:[#allocation4 + $0x58] sm:$0xf] %v2610_v7  ;;  %2790 = vst [vmem:[#allocation4 + $0xa8] sm:$0xf] %v2782_v43  ;;  %v2802_v14 = vld [vmem:[#allocation2 + $0x30] sm:$0xf]  ;;  %5225 = vmatpush3.bf16.msra.mxu1 %v5558_v54 }
 0x1c3   : > { %v5566_v15 = vld [vmem:[#allocation5 + $0x228] sm:$0xff]   ;;  %v2744_v49 = vsel %vm6245_vm10, %v4685_v3, %v2743_v55  ;;  %2791 = vst [vmem:[#allocation4 + $0xcc] sm:$0xf] %v2783_v22  ;;  %v2803_v20 = vld [vmem:[#allocation2 + $0x34] sm:$0x1]  ;;  %v2624_v12 = vsel %vm5930_vm2, %v2619_v32, %v2623_v57  ;;  %5226 = vmatprep.subr.bf16.mxu1 %v5562_v2  ;;  %v2867_v16 = vshrl.u32 %v2802_v14, 16 }
 0x1c4   : > { %v2804_v25 = vld [vmem:[#allocation2 + $0x38] sm:$0xf]  ;;  %v2805_v0 = vld [vmem:[#allocation2 + $0x3c] sm:$0x1]  ;;  %2771 = vst [vmem:[#allocation4 + $0x5c] sm:$0xf] %v2740_v19  ;;  %5251 = vmatpush3.bf16.msra.mxu0 %v6491_v37 }
 0x1c5   : > { %2772 = vst [vmem:[#allocation4 + $0x80] sm:$0xf] %v2744_v49  ;;  %v2870_v17 = vshll.u32 %v2802_v14, 16  ;;  %v2876_v28 = vshll.u32 %v2803_v20, 16  ;;  %v2561_v29 = vld [vmem:[#allocation2 + $0x28] sm:$0xf]  ;;  %5252 = vmatprep.subr.bf16.mxu0 %v6503_v8 }
 0x1c6   : > { %v6515_v50 = vld [vmem:[%s6846_s7 + $0x20] sm:$0xff]   ;;  %2692 = vst [vmem:[#allocation4 + $0x7c] sm:$0xf] %v2624_v12  ;;  %v2881_v5 = vshrl.u32 %v2804_v25, 16  ;;  %v2884_v6 = vshll.u32 %v2804_v25, 16  ;;  %v2890_v34 = vshll.u32 %v2805_v0, 16  ;;  %5227 = vmatpush3.bf16.msra.mxu1 %v5562_v2 }
 0x1c7   : > { %v2562_v63 = vld [vmem:[#allocation2 + $0x2c] sm:$0x1]  ;;  %v2626_v1 = vshrl.u32 %v2561_v29, 16  ;;  %v2869_v13 = vrot.slane %v2867_v16, 4  ;;  %v2872_v21 = vrot.slane %v2870_v17, 5  ;;  %v2878_v23 = vrot.slane %v2876_v28, 5  ;;  %5228 = vmatprep.subr.bf16.mxu1 %v5566_v15 }
 0x1c8   : > { %v2563_v24 = vld [vmem:[#allocation2 + $0x30] sm:$0xf]  ;;  %v2629_v26 = vshll.u32 %v2561_v29, 16  ;;  %v2883_v56 = vrot.slane %v2881_v5, 4  ;;  %v2886_v38 = vrot.slane %v2884_v6, 5  ;;  %v2892_v52 = vrot.slane %v2890_v34, 5  ;;  %5253 = vmatpush3.bf16.msra.mxu0 %v6503_v8 }
 0x1c9   : > { %v6519_v54 = vld [vmem:[#allocation5 + $0x220] sm:$0xff]   ;;  %v2873_v62 = vor.u32 %v2872_v21, %v2869_v13  ;;  %v2628_v4 = vrot.slane %v2626_v1, 4  ;;  %v2635_v51 = vshll.u32 %v2562_v63, 16  ;;  %v2640_v31 = vshrl.u32 %v2563_v24, 16  ;;  %v2705_v27 = vld [vmem:[#allocation2 + $0x28] sm:$0xe]  ;;  %5254 = vmatprep.subr.bf16.mxu0 %v6515_v50 }
 0x1ca   : > { %v3031_v9 = vld [vmem:[#allocation4 + $0x60] sm:$0xff]  ;;  %v2631_v11 = vrot.slane %v2629_v26, 5  ;;  %v2887_v30 = vor.u32 %v2886_v38, %v2883_v56  ;;  %v2643_v35 = vshll.u32 %v2563_v24, 16  ;;  %v2706_v36 = vld [vmem:[#allocation2 + $0x2c] sm:$0x1]  ;;  %v6526_v44 = vld [vmem:[%s6846_s7 + $0x18] sm:$0xff]   ;;  %5229 = vmatpush3.bf16.msra.mxu1 %v5566_v15 }
 0x1cb   : > { %v2564_v45 = vld [vmem:[#allocation2 + $0x34] sm:$0x1]  ;;  %v2874_v39 = vrot.slane %v2873_v62, 4  ;;  %v2637_v40 = vrot.slane %v2635_v51, 5  ;;  %v2707_v61 = vld [vmem:[#allocation2 + $0x30] sm:$0xe]  ;;  %5230 = vmatprep.subr.bf16.mxu1 %v6519_v54 }
 0x1cc   : > { %v3036_v60 = vld [vmem:[#allocation4 + $0x84] sm:$0xff]  ;;  %v2632_v42 = vor.u32 %v2631_v11, %v2628_v4  ;;  %v2649_v41 = vshll.u32 %v2564_v45, 16  ;;  %v2888_v33 = vrot.slane %v2887_v30, 4  ;;  %v2642_v47 = vrot.slane %v2640_v31, 4  ;;  %v5575_v7 = vld [vmem:[#allocation5 + $0x218] sm:$0xff]   ;;  %5255 = vmatpush3.bf16.msra.mxu0 %v6515_v50  ;;  %v6542_v34 = vld [vmem:[#allocation5 + $0x210] sm:$0xff]  }
 0x1cd   : > { %v5556_v59 = vld [vmem:[#allocation4 + $0x64] ss:$36 sps:$4 sm:$0xff]   ;;  %v4713_v58 = vcombine.low %v3031_v9, %v3036_v60  ;;  %v2645_v48 = vrot.slane %v2643_v35, 5  ;;  %v5559_v18 = vld [vmem:[#allocation4 + $0x5c] ss:$36 sps:$4 sm:$0xff]   ;;  %v2879_v3 = vsel %vm5930_vm2, %v2874_v39, %v2878_v23  ;;  %v4686_v14 = vrot.slane %v2705_v27, 9  ;;  %5256 = vmatprep.subr.bf16.mxu0 %v6526_v44 }
 0x1ce   : > { %4053 = vmatprep.mubr.bf16.mxu0 %v5556_v59  ;;  %v2708_v2 = vld [vmem:[#allocation2 + $0x34] sm:$0x1]  ;;  %v5567_v55 = vld [vmem:[#allocation4 + $0x58] ss:$36 sps:$4 sm:$0xff]   ;;  %v2633_v43 = vrot.slane %v2632_v42, 4  ;;  %v2893_v32 = vsel %vm5930_vm2, %v2888_v33, %v2892_v52  ;;  %v2651_v22 = vrot.slane %v2649_v41, 5  ;;  %3988 = vmatprep.mubr.bf16.mxu1 %v5559_v18 }
 0x1cf   : > { %4054 = vmatmul.mubr.bf16.gmra.mxu0 %v4713_v58  ;;  %2934 = vst [vmem:[#allocation4 + $0xac] sm:$0xf] %v2879_v3  ;;  %v2646_v57 = vor.u32 %v2645_v48, %v2642_v47  ;;  %v2784_v15 = vld [vmem:[#allocation2 + $0x40] sm:$0xf]  ;;  %2935 = vst [vmem:[#allocation4 + $0xd0] sm:$0xf] %v2893_v32  ;;  %3989 = vmatmul.mubr.bf16.gmra.mxu1 %v5567_v55 }
 0x1d0   : > { %v2806_v19 = vld [vmem:[#allocation2 + $0x40] sm:$0xf]  ;;  %v2638_v49 = vsel %vm5930_vm2, %v2633_v43, %v2637_v40  ;;  %v2747_v20 = vrot.slane %v2706_v36, 5  ;;  %v4687_v25 = vrot.slane %v2707_v61, 9  ;;  %v2751_v0 = vrot.slane %v2708_v2, 5  ;;  %v6540_v16 = vld [vmem:[%s6846_s7 + $0x10] sm:$0xff]   ;;  %5231 = vmatpush3.bf16.msra.mxu1 %v6519_v54  ;;  %5257 = vmatpush3.bf16.msra.mxu0 %v6526_v44 }
 0x1d1   : > { %2792 = vst [vmem:[#allocation4 + $0xf0] sm:$0xf] %v2784_v15  ;;  %v2807_v12 = vld [vmem:[#allocation2 + $0x44] sm:$0x1]  ;;  %v2647_v17 = vrot.slane %v2646_v57, 4  ;;  %v2895_v28 = vshrl.u32 %v2806_v19, 16  ;;  %5232 = vmatprep.subr.bf16.mxu1 %v5575_v7  ;;  %5258 = vmatprep.subr.bf16.mxu0 %v6540_v16 }
 0x1d2   : > { %2693 = vst [vmem:[#allocation4 + $0xa0] sm:$0xf] %v2638_v49  ;;  %v2898_v29 = vshll.u32 %v2806_v19, 16  ;;  %v2904_v5 = vshll.u32 %v2807_v12, 16  ;;  %v2565_v6 = vld [vmem:[#allocation2 + $0x38] sm:$0xf]  ;;  %v2748_v63 = vsel %vm6245_vm10, %v4686_v14, %v2747_v20  ;;  %v2752_v1 = vsel %vm6245_vm10, %v4687_v25, %v2751_v0 }
 0x1d3   : > { %v2566_v13 = vld [vmem:[#allocation2 + $0x3c] sm:$0x1]  ;;  %v2567_v21 = vld [vmem:[#allocation2 + $0x40] sm:$0xf]  ;;  %v2568_v23 = vld [vmem:[#allocation2 + $0x44] sm:$0x1]  ;;  %v2652_v24 = vsel %vm5930_vm2, %v2647_v17, %v2651_v22 }
 0x1d4   : > { %2773 = vst [vmem:[#allocation4 + $0xa4] sm:$0xf] %v2748_v63  ;;  %2774 = vst [vmem:[#allocation4 + $0xc8] sm:$0xf] %v2752_v1  ;;  %v2897_v26 = vrot.slane %v2895_v28, 4  ;;  %v2900_v9 = vrot.slane %v2898_v29, 5  ;;  %5233 = vmatpush3.bf16.msra.mxu1 %v5575_v7  ;;  %5259 = vmatpush3.bf16.msra.mxu0 %v6540_v16 }
 0x1d5   : > { %v2906_v56 = vrot.slane %v2904_v5, 5  ;;  %v2709_v38 = vld [vmem:[#allocation2 + $0x38] sm:$0xe]  ;;  %v6555_v52 = vld [vmem:[%s6846_s7 + $0x8] sm:$0xff]   ;;  %2694 = vst [vmem:[#allocation4 + $0xc4] sm:$0xf] %v2652_v24  ;;  %5234 = vmatprep.subr.bf16.mxu1 %v6542_v34 }
 0x1d6   : > { %v2654_v54 = vshrl.u32 %v2565_v6, 16  ;;  %v2657_v45 = vshll.u32 %v2565_v6, 16  ;;  %v2663_v60 = vshll.u32 %v2566_v13, 16  ;;  %v2668_v59 = vshrl.u32 %v2567_v21, 16  ;;  %v2710_v62 = vld [vmem:[#allocation2 + $0x3c] sm:$0x1]  ;;  %5260 = vmatprep.subr.bf16.mxu0 %v6555_v52 }
 0x1d7   : > { %v2901_v4 = vor.u32 %v2900_v9, %v2897_v26  ;;  %v2671_v11 = vshll.u32 %v2567_v21, 16  ;;  %v2677_v51 = vshll.u32 %v2568_v23, 16  ;;  %v2711_v58 = vld [vmem:[#allocation2 + $0x40] sm:$0xe]  ;;  %v2712_v30 = vld [vmem:[#allocation2 + $0x44] sm:$0x1] }
 0x1d8   : > { %v6558_v31 = vld [vmem:[#allocation5 + $0x208] sm:$0xff]   ;;  %v2656_v27 = vrot.slane %v2654_v54, 4  ;;  %v2659_v36 = vrot.slane %v2657_v45, 5  ;;  %v2665_v39 = vrot.slane %v2663_v60, 5  ;;  %v2670_v42 = vrot.slane %v2668_v59, 4  ;;  %v6563_v40 = vld [vmem:[%s6846_s7] sm:$0xff]   ;;  %5235 = vmatpush3.bf16.msra.mxu1 %v6542_v34  ;;  %5261 = vmatpush3.bf16.msra.mxu0 %v6555_v52 }
 0x1d9   : > { %v3041_v35 = vld [vmem:[#allocation4 + $0xa8] sm:$0xff]  ;;  %v2902_v33 = vrot.slane %v2901_v4, 4  ;;  %v2673_v47 = vrot.slane %v2671_v11, 5  ;;  %v2679_v48 = vrot.slane %v2677_v51, 5  ;;  %v4688_v18 = vrot.slane %v2709_v38, 9  ;;  %v5586_v12 = vld [vmem:[#allocation5 + $0x200] sm:$0xff]   ;;  %5236 = vmatprep.subr.bf16.mxu1 %v6558_v31  ;;  %5262 = vmatprep.subr.bf16.mxu0 %v6563_v40 }
 0x1da   : > { %v3046_v41 = vld [vmem:[#allocation4 + $0xcc] sm:$0xff]  ;;  %v2660_v7 = vor.u32 %v2659_v36, %v2656_v27  ;;  %v2755_v3 = vrot.slane %v2710_v62, 5  ;;  %v2938_v55 = vld [vmem:[#allocation2 + $0x10] sm:$0xe]  ;;  %v2939_v43 = vld [vmem:[#allocation2 + $0x14] sm:$0x1] }
 0x1db   : > { %v5563_v61 = vld [vmem:[#allocation4 + $0xac] ss:$36 sps:$4 sm:$0xff]   ;;  %v4722_v2 = vcombine.low %v3041_v35, %v3046_v41  ;;  %v2907_v32 = vsel %vm5930_vm2, %v2902_v33, %v2906_v56  ;;  %v2674_v57 = vor.u32 %v2673_v47, %v2670_v42  ;;  %v4689_v22 = vrot.slane %v2711_v58, 9  ;;  %v2940_v15 = vld [vmem:[#allocation2 + $0x18] sm:$0xe]  ;;  %v3056_v54 = vld [vmem:[#allocation4 + $0x114] sm:$0xff] }
 0x1dc   : > { %4061 = vmatprep.mubr.bf16.mxu0 %v5563_v61  ;;  %v2759_v14 = vrot.slane %v2712_v30, 5  ;;  %v2941_v19 = vld [vmem:[#allocation2 + $0x1c] sm:$0x1]  ;;  %2936 = vst [vmem:[#allocation4 + $0xf4] sm:$0xf] %v2907_v32  ;;  %v2661_v49 = vrot.slane %v2660_v7, 4  ;;  %v2756_v20 = vsel %vm6245_vm10, %v4688_v18, %v2755_v3  ;;  %5237 = vmatpush3.bf16.msra.mxu1 %v6558_v31 }
 0x1dd   : > { %4062 = vmatmul.mubr.bf16.gmra.mxu0 %v4722_v2  ;;  %v4690_v25 = vrot.slane %v2938_v55, 9  ;;  %v2972_v0 = vrot.slane %v2939_v43, 5  ;;  %v2942_v17 = vld [vmem:[#allocation2 + $0x20] sm:$0xe]  ;;  %v5568_v28 = vld [vmem:[#allocation4 + $0xa4] ss:$36 sps:$4 sm:$0xff]   ;;  %5238 = vmatprep.subr.bf16.mxu1 %v5586_v12 }
 0x1de   : > { %v5576_v29 = vld [vmem:[#allocation4 + $0xa0] ss:$36 sps:$4 sm:$0xff]   ;;  %v2675_v5 = vrot.slane %v2674_v57, 4  ;;  %v2760_v6 = vsel %vm6245_vm10, %v4689_v22, %v2759_v14  ;;  %2775 = vst [vmem:[#allocation4 + $0xec] sm:$0xf] %v2756_v20  ;;  %v2666_v63 = vsel %vm5930_vm2, %v2661_v49, %v2665_v39  ;;  %v4691_v1 = vrot.slane %v2940_v15, 9  ;;  %3996 = vmatprep.mubr.bf16.mxu1 %v5568_v28  ;;  %5263 = vmatpush3.bf16.msra.mxu0 %v6563_v40 }
 0x1df   : > { %2776 = vst [vmem:[#allocation4 + $0x110] sm:$0xf] %v2760_v6  ;;  %v2973_v34 = vsel %vm6245_vm10, %v4690_v25, %v2972_v0  ;;  %v2976_v13 = vrot.slane %v2941_v19, 5  ;;  %v2943_v21 = vld [vmem:[#allocation2 + $0x24] sm:$0x1]  ;;  %v4692_v9 = vrot.slane %v2942_v17, 9  ;;  %3997 = vmatmul.mubr.bf16.gmra.mxu1 %v5576_v29 }
 0x1e0   : > { %v2944_v23 = vld [vmem:[#allocation2 + $0x28] sm:$0xe]  ;;  %v2680_v24 = vsel %vm5930_vm2, %v2675_v5, %v2679_v48  ;;  %2695 = vst [vmem:[#allocation4 + $0xe8] sm:$0xf] %v2666_v63  ;;  %3010 = vst [vmem:[#allocation4 + $0x20] sm:$0xf] %v2973_v34  ;;  %5239 = vmatpush3.bf16.msra.mxu1 %v5586_v12 }
 0x1e1   : > { %v2945_v26 = vld [vmem:[#allocation2 + $0x2c] sm:$0x1]  ;;  %v2980_v56 = vrot.slane %v2943_v21, 5  ;;  %v4693_v38 = vrot.slane %v2944_v23, 9  ;;  %2696 = vst [vmem:[#allocation4 + $0x10c] sm:$0xf] %v2680_v24  ;;  %v2977_v45 = vsel %vm6245_vm10, %v4691_v1, %v2976_v13  ;;  %5272 = vmatprep.subr.bf16.mxu1 %v6473_v53 }
 0x1e2   : > { %v2984_v60 = vrot.slane %v2945_v26, 5  ;;  %v2946_v59 = vld [vmem:[#allocation2 + $0x30] sm:$0xe]  ;;  %v2947_v62 = vld [vmem:[#allocation2 + $0x34] sm:$0x1] }
 0x1e3   : > { %3011 = vst [vmem:[#allocation4 + $0x44] sm:$0xf] %v2977_v45  ;;  %v2981_v10 = vsel %vm6245_vm10, %v4692_v9, %v2980_v56  ;;  %v2948_v4 = vld [vmem:[#allocation2 + $0x38] sm:$0xe]  ;;  %v2949_v11 = vld [vmem:[#allocation2 + $0x3c] sm:$0x1] }
 0x1e4   : > { %v4694_v51 = vrot.slane %v2946_v59, 9  ;;  %v2988_v58 = vrot.slane %v2947_v62, 5  ;;  %v5590_v30 = vld [vmem:[%s5913_s20 + $0xd8] ss:$8 sps:$4 sm:$0xff]   ;;  %v2985_v35 = vsel %vm6245_vm10, %v4693_v38, %v2984_v60  ;;  %3012 = vst [vmem:[#allocation4 + $0x68] sm:$0xf] %v2981_v10 }
 0x1e5   : > { %v4695_v27 = vrot.slane %v2948_v4, 9  ;;  %v2992_v36 = vrot.slane %v2949_v11, 5  ;;  %v2950_v39 = vld [vmem:[#allocation2 + $0x40] sm:$0xe]  ;;  %v2951_v31 = vld [vmem:[#allocation2 + $0x44] sm:$0x1] }
 0x1e6   : > { %v3051_v42 = vld [vmem:[#allocation4 + $0xf0] sm:$0xff]  ;;  %3013 = vst [vmem:[#allocation4 + $0x8c] sm:$0xf] %v2985_v35  ;;  %v2989_v61 = vsel %vm6245_vm10, %v4694_v51, %v2988_v58  ;;  %v4696_v33 = vrot.slane %v2950_v39, 9  ;;  %v2996_v47 = vrot.slane %v2951_v31, 5 }
 0x1e7   : > { %v5572_v41 = vld [vmem:[#allocation4 + $0xf4] ss:$36 sps:$4 sm:$0xff]   ;;  %v4731_v48 = vcombine.low %v3051_v42, %v3056_v54  ;;  %v2993_v2 = vsel %vm6245_vm10, %v4695_v27, %v2992_v36  ;;  %3014 = vst [vmem:[#allocation4 + $0xb0] sm:$0xf] %v2989_v61  ;;  %v5577_v18 = vld [vmem:[#allocation4 + $0xec] ss:$36 sps:$4 sm:$0xff]  }
 0x1e8   : > { %4069 = vmatprep.mubr.bf16.mxu0 %v5572_v41  ;;  %3015 = vst [vmem:[#allocation4 + $0xd4] sm:$0xf] %v2993_v2  ;;  %v2997_v7 = vsel %vm6245_vm10, %v4696_v33, %v2996_v47  ;;  %v5583_v3 = vld [vmem:[#allocation4 + $0xe8] ss:$36 sps:$4 sm:$0xff]   ;;  %4004 = vmatprep.mubr.bf16.mxu1 %v5577_v18  ;;  %v5591_v43 = vld [vmem:[%s5913_s20 + $0xe8] ss:$8 sps:$4 sm:$0xff]  }
 0x1e9   : > { %4070 = vmatmul.mubr.bf16.gmra.mxu0 %v4731_v48  ;;  %3016 = vst [vmem:[#allocation4 + $0xf8] sm:$0xf] %v2997_v7  ;;  %4005 = vmatmul.mubr.bf16.gmra.mxu1 %v5583_v3 }
 0x1ea   : > { %5264 = vmatprep.mubr.bf16.mxu0 %v5590_v30  ;;  %v5584_v55 = vld [vmem:[#allocation4 + $0x20] ss:$36 sps:$4 sm:$0xff]  }
 0x1eb   : > { %5240 = vmatprep.mubr.bf16.mxu1 %v5584_v55 }
 0x1ed   : > { %v5588_v32 = vld [vmem:[#allocation4 + $0x68] ss:$36 sps:$4 sm:$0xff]  }
 0x1ef   : > { %v5589_v57 = vld [vmem:[#allocation4 + $0xb0] ss:$36 sps:$4 sm:$0xff]  }
 0x1f0   : > { %v5592_v22 = vld [vmem:[#allocation4 + $0xf8] ss:$36 sps:$4 sm:$0xff]  }
 0x1f1   : > { %5265 = vmatmul.mubr.bf16.vlgmr.msra.gmra.mxu0 %v5591_v43  ;;  %5241 = vmatmul.mubr.bf16.vlgmr.msra.gmra.mxu1 %v5588_v32 }
 0x1f2   : > { %5280 = vmatpush3.bf16.msra.mxu1 %v6473_v53  ;;  %5244 = vmatprep.mubr.bf16.mxu1 %v5589_v57  ;;  %v5594_v53 = vld [vmem:[%s5913_s20 + $0x108] ss:$8 sps:$4 sm:$0xff]   ;;  %s4843_s20 = sshll.u32 %s5770_s17, 10  ;;  %s5621_s17 = scalar_lea.vmem %s6793_s18, 1024 }
 0x1f3   : > { %5273 = vmatprep.subr.bf16.mxu1 %v6491_v37  ;;  %s6791_s29 = scalar_lea.hbm %s6849_s10, %s4843_s20  ;;  %p5622_p8 = scmp.ne.s32.totalorder %s6793_s18, %s5621_s17 }
 0x1f4   : > { %p5629_p12 = scmp.lt.s32.totalorder %s5627_s26, %s5621_s17 }
 0x1f5   : > { %p5623_p9 = pnand %p5622_p8, %p5787_p5 }
 0x1f6   : > { %5281 = vmatpush3.bf16.msra.mxu1 %v6491_v37  ;;  %p5630_p13 = por %p5629_p12, %p5628_p11 }
 0x1f7   : > { %5274 = vmatprep.subr.bf16.mxu1 %v6503_v8  ;;  %p5624_p10 = pneg %p5623_p9 }
 0x1f9   : > { %5245 = vmatmul.mubr.bf16.gmra.mxu1 %v5592_v22  ;;  %p5631_p0 = pnand %p5630_p13, %p5624_p10 }
 0x1fa   : > { %5282 = vmatpush3.bf16.msra.mxu1 %v6503_v8  ;;  %5268 = vmatprep.mubr.bf16.mxu1 %v5593_v46 }
 0x1fb   : > { %5275 = vmatprep.subr.bf16.mxu1 %v6515_v50 }
 0x1fe   : > { %5283 = vmatpush3.bf16.msra.mxu1 %v6515_v50 }
 0x1ff   : > { %5276 = vmatprep.subr.bf16.mxu1 %v6526_v44 }
 0x202   : > { %5284 = vmatpush3.bf16.msra.mxu1 %v6526_v44 }
 0x203   : > { %5277 = vmatprep.subr.bf16.mxu1 %v6540_v16 }
 0x206   : > { %5285 = vmatpush3.bf16.msra.mxu1 %v6540_v16 }
 0x207   : > { %5278 = vmatprep.subr.bf16.mxu1 %v6555_v52 }
 0x20a   : > { %5286 = vmatpush3.bf16.msra.mxu1 %v6555_v52 }
 0x20b   : > { %5279 = vmatprep.subr.bf16.mxu1 %v6563_v40 }
 0x20e   : > { %5287 = vmatpush3.bf16.msra.mxu1 %v6563_v40 }
 0x211   : > { %5269 = vmatmul.mubr.bf16.vlgmr.msra.gmra.mxu1 %v5594_v53 }
 0x24c   : > { %v6618_v37 = vpop.f32.mrf.mxu0 }
 0x24e   : > { %v6620_v8 = vpop.f32.mrf.mxu0 }
 0x250   : > { %v6622_v50 = vpop.f32.mrf.mxu0 }
 0x252   : > { %v6624_v44 = vpop.f32.mrf.mxu0 }
 0x255   : > { %v5078_v14 = vpop.f32.mrf.mxu0 }
 0x257   : > { %v5079_v15 = vpop.f32.mrf.mxu0 }
 0x259   : > { %v5032_v16 = vpop.f32.mrf.mxu1  ;;  %v6626_v49 = vpop.f32.mrf.mxu0 }
 0x25b   : > { %v5033_v19 = vpop.f32.mrf.mxu1  ;;  %v6630_v20 = vpop.f32.mrf.mxu0 }
 0x25d   : > { %v6628_v52 = vpop.f32.mrf.mxu1 }
 0x25f   : > { %v6632_v40 = vpop.f32.mrf.mxu1 }
 0x261   : > { %v5038_v0 = vpop.f32.mrf.mxu1 }
 0x262   : > { %v5084_v25 = vpop.f32.mrf.mxu0 }
 0x263   : > { %v5039_v17 = vpop.f32.mrf.mxu1 }
 0x264   : > { %v5085_v12 = vpop.f32.mrf.mxu0  ;;  %v5040_v53 = vadd.f32 %v5039_v17, %v5038_v0  ;;  %v5077_v17 = vadd.f32 %v6624_v44, %v6622_v50 }
 0x265   : > { %v5086_v28 = vadd.f32 %v5085_v12, %v5084_v25  ;;  %v5041_v5 = vpop.f32.mrf.mxu1  ;;  %v5034_v12 = vadd.f32 %v5033_v19, %v5032_v16 }
 0x266   : > { %v5087_v29 = vpop.f32.mrf.mxu0 }
 0x267   : > { %v5042_v63 = vpop.f32.mrf.mxu1 }
 0x268   : > { %v5088_v6 = vpop.f32.mrf.mxu0 }
 0x269   : > { %v5089_v34 = vadd.f32 %v5088_v6, %v5087_v29  ;;  %v5044_v13 = vpop.f32.mrf.mxu1 }
 0x26a   : > { %v6634_v1 = vpop.f32.mrf.mxu0 }
 0x26b   : > { %v5045_v21 = vpop.f32.mrf.mxu1 }
 0x26c   : > { %v5046_v23 = vadd.f32 %v5045_v21, %v5044_v13  ;;  %v6636_v24 = vpop.f32.mrf.mxu0  ;;  %v5074_v13 = vadd.f32 %v6620_v8, %v6618_v37 }
 0x26d   : > { %v5047_v26 = vpop.f32.mrf.mxu1 }
 0x26e   : > { %v6638_v9 = vadd.f32 %v5086_v28, %v5046_v23  ;;  %v6640_v54 = vpop.f32.mrf.mxu0  ;;  %v5080_v28 = vadd.f32 %v5079_v15, %v5078_v14  ;;  %v5043_v23 = vadd.f32 %v5042_v63, %v5041_v5  ;;  %v3918_v16 = vadd.f32 %v5074_v13, %v5034_v12 }
 0x26f   : > { %v5048_v56 = vpop.f32.mrf.mxu1  ;;  %v5083_v14 = vadd.f32 %v6630_v20, %v6626_v49 }
 0x270   : > { %v5049_v38 = vadd.f32 %v5048_v56, %v5047_v26  ;;  %v6648_v62 = vpop.f32.mrf.mxu0  ;;  %v3926_v21 = vadd.f32 %v5080_v28, %v5040_v53  ;;  %v5037_v56 = vadd.f32 %v6632_v40, %v6628_v52  ;;  %v6697_v52 = vld [vmem:[%s6847_s8] ss:$0 sm:$0xff] }
 0x271   : > { %v3929_v40 = vadd.f32 %v5083_v14, %v5043_v23  ;;  %v6717_v28 = vld [vmem:[%s6845_s6] ss:$0 sm:$0xff] }
 0x272   : > { %v6644_v60 = vadd.f32 %v5089_v34, %v5049_v38 }
 0x275   : > { %v6642_v45 = vpop.f32.mrf.mxu1 }
 0x277   : > { %v6646_v59 = vpop.f32.mrf.mxu1 }
 0x279   : > { %v6650_v10 = vpop.f32.mrf.mxu1 }
 0x27b   : > { %v6652_v4 = vpop.f32.mrf.mxu1 }
 0x27f   : > { %v5152_v11 = vpop.f32.mrf.mxu0 }
 0x281   : > { %v5153_v51 = vpop.f32.mrf.mxu0  ;;  %v5112_v58 = vpop.f32.mrf.mxu1 }
 0x282   : > { %v5154_v20 = vadd.f32 %v5153_v51, %v5152_v11 }
 0x283   : > { %v6654_v30 = vpop.f32.mrf.mxu0  ;;  %v5113_v35 = vpop.f32.mrf.mxu1 }
 0x284   : > { %v5114_v26 = vadd.f32 %v5113_v35, %v5112_v58  ;;  %v3921_v35 = vadd.f32 %v5077_v17, %v5037_v56 }
 0x285   : > { %v5156_v27 = vpop.f32.mrf.mxu0  ;;  %v5115_v36 = vpop.f32.mrf.mxu1 }
 0x286   : > { %v3983_v63 = vadd.f32 %v5114_v26, %v3918_v16  ;;  %v5157_v12 = vadd.f32 %v5156_v27, %v6654_v30 }
 0x287   : > { %v5116_v31 = vpop.f32.mrf.mxu1 }
 0x288   : > { %v5117_v37 = vadd.f32 %v5116_v31, %v5115_v36  ;;  %v4048_v51 = vadd.f32 %v5154_v20, %v3983_v63 }
 0x28a   : > { %v3986_v36 = vadd.f32 %v5117_v37, %v3921_v35 }
 0x28c   : > { %v4051_v16 = vadd.f32 %v5157_v12, %v3986_v36 }
 0x28f   : > { %v5158_v39 = vpop.f32.mrf.mxu0  ;;  %v5118_v41 = vpop.f32.mrf.mxu1 }
 0x291   : > { %v5159_v42 = vpop.f32.mrf.mxu0  ;;  %v5119_v33 = vpop.f32.mrf.mxu1 }
 0x292   : > { %v5120_v29 = vadd.f32 %v5119_v33, %v5118_v41  ;;  %v5160_v58 = vadd.f32 %v5159_v42, %v5158_v39  ;;  %v6710_v39 = vld [vmem:[%s6848_s9] ss:$0 sm:$0xff] }
 0x293   : > { %v5161_v61 = vpop.f32.mrf.mxu0  ;;  %v5121_v48 = vpop.f32.mrf.mxu1 }
 0x294   : > { %v3991_v15 = vadd.f32 %v5120_v29, %v3926_v21 }
 0x295   : > { %v5162_v47 = vpop.f32.mrf.mxu0  ;;  %v5122_v7 = vpop.f32.mrf.mxu1 }
 0x296   : > { %v5123_v19 = vadd.f32 %v5122_v7, %v5121_v48  ;;  %v4056_v50 = vadd.f32 %v5160_v58, %v3991_v15  ;;  %v6705_v48 = vld [vmem:[%s6844_s5] ss:$0 sm:$0xff]  ;;  %v5163_v7 = vadd.f32 %v5162_v47, %v5161_v61 }
 0x298   : > { %v3994_v33 = vadd.f32 %v5123_v19, %v3929_v40 }
 0x29a   : > { %v4059_v26 = vadd.f32 %v5163_v7, %v3994_v33 }
 0x29d   : > { %v6656_v2 = vpop.f32.mrf.mxu0 }
 0x29f   : > { %v6658_v18 = vpop.f32.mrf.mxu0  ;;  %v6662_v55 = vpop.f32.mrf.mxu1 }
 0x2a1   : > { %v6660_v3 = vpop.f32.mrf.mxu0  ;;  %v6666_v32 = vpop.f32.mrf.mxu1 }
 0x2a3   : > { %v6664_v43 = vpop.f32.mrf.mxu0  ;;  %v6668_v57 = vpop.f32.mrf.mxu1 }
 0x2a5   : > { %v6672_v22 = vpop.f32.mrf.mxu1 }
 0x2a9   : > { %v6670_v46 = vpop.f32.mrf.mxu0  ;;  %v6678_v34 = vpop.f32.mrf.mxu1 }
 0x2ab   : > { %v6674_v25 = vpop.f32.mrf.mxu0  ;;  %v6686_v0 = vpop.f32.mrf.mxu1 }
 0x2ac   : > { %v5132_v12 = vadd.f32 %v6686_v0, %v6678_v34  ;;  %v5172_v0 = vadd.f32 %v6674_v25, %v6670_v46  ;;  %v5169_v46 = vadd.f32 %v6664_v43, %v6660_v3 }
 0x2ad   : > { %v6676_v6 = vpop.f32.mrf.mxu0  ;;  %v6692_v8 = vpop.f32.mrf.mxu1 }
 0x2af   : > { %v6684_v38 = vpop.f32.mrf.mxu0  ;;  %v6699_v41 = vpop.f32.mrf.mxu1 }
 0x2b1   : > { %v5266_v5 = vpop.f32.mrf.mxu0  ;;  %v5242_v31 = vpop.f32.mrf.mxu1 }
 0x2b2   : > { %v4343_v44 = vmul.f32 %v5266_v5, %v6697_v52  ;;  %v4121_v11 = vadd.f32 %v5242_v31, %v4056_v50 }
 0x2b3   : > { %v4303_v49 = vpop.f32.mrf.mxu0  ;;  %v4112_v29 = vpop.f32.mrf.mxu1 }
 0x2b4   : > { %v4341_v53 = vmul.f32 %v6697_v52, %v4303_v49  ;;  %v4152_v23 = vmul.f32 %v6705_v48, %v4121_v11  ;;  %v4113_v61 = vadd.f32 %v4112_v29, %v4048_v51  ;;  %v4358_v47 = vadd.f32 %v6710_v39, %v4343_v44 }
 0x2b5   : > { %v5267_v42 = vpop.f32.mrf.mxu0  ;;  %v5243_v56 = vpop.f32.mrf.mxu1  ;;  %v5052_v11 = vadd.f32 %v6646_v59, %v6642_v45  ;;  %v5055_v29 = vadd.f32 %v6652_v4, %v6650_v10  ;;  %v5095_v45 = vadd.f32 %v6648_v62, %v6640_v54  ;;  %v5135_v59 = vadd.f32 %v6699_v41, %v6692_v8 }
 0x2b6   : > { %v4344_v13 = vmul.f32 %v5267_v42, %v6697_v52  ;;  %v4167_v27 = vadd.f32 %v6717_v28, %v4152_v23  ;;  %v4150_v14 = vmul.f32 %v6705_v48, %v4113_v61  ;;  %v4124_v15 = vadd.f32 %v5243_v56, %v4059_v26 }
 0x2b7   : > { %v4306_v21 = vpop.f32.mrf.mxu0  ;;  %v4356_v19 = vadd.f32 %v6710_v39, %v4341_v53  ;;  %v4115_v17 = vpop.f32.mrf.mxu1  ;;  %v5092_v53 = vadd.f32 %v6636_v24, %v6634_v1  ;;  %v3945_v1 = vadd.f32 %v5095_v45, %v5055_v29  ;;  %v5129_v10 = vadd.f32 %v6672_v22, %v6668_v57 }
 0x2b8   : > { %v4342_v30 = vmul.f32 %v6697_v52, %v4306_v21  ;;  %v4359_v37 = vadd.f32 %v6710_v39, %v4344_v13  ;;  %v4165_v5 = vadd.f32 %v6717_v28, %v4150_v14  ;;  %v4366_v40 = vadd.f32 %v4358_v47, %v4167_v27 }
 0x2b9   : > { %v4153_v63 = vmul.f32 %v6705_v48, %v4124_v15  ;;  %v4116_v58 = vadd.f32 %v4115_v17, %v4051_v16  ;;  %v5126_v13 = vadd.f32 %v6666_v32, %v6662_v55  ;;  %v5246_v21 = vpop.f32.mrf.mxu1  ;;  %v3942_v23 = vadd.f32 %v5092_v53, %v5052_v11 }
 0x2ba   : > { %v4357_v35 = vadd.f32 %v6710_v39, %v4342_v30  ;;  %v4374_v49 = vmax.f32 %v4366_v40, 0.0  ;;  %v4364_v33 = vadd.f32 %v4356_v19, %v4165_v5  ;;  %v5166_v4 = vadd.f32 %v6658_v18, %v6656_v2 }
 0x2bb   : > { %v4168_v20 = vadd.f32 %v6717_v28, %v4153_v63  ;;  %v4151_v50 = vmul.f32 %v6705_v48, %v4116_v58  ;;  %v4007_v61 = vadd.f32 %v5132_v12, %v3942_v23  ;;  %v3999_v24 = vadd.f32 %v5126_v13, %v6638_v9  ;;  %v4128_v34 = vpop.f32.mrf.mxu1 }
 0x2bc   : > { %4382 = vst [vmem:[%s6735_s28 + $0x10] sm:$0xff] %v4374_v49  ;;  %v4372_v44 = vmax.f32 %v4364_v33, 0.0  ;;  %v4010_v55 = vadd.f32 %v5135_v59, %v3945_v1  ;;  %v5175_v54 = vadd.f32 %v6684_v38, %v6676_v6  ;;  %v4002_v41 = vadd.f32 %v5129_v10, %v6644_v60 }
 0x2bd   : > { %v4166_v36 = vadd.f32 %v6717_v28, %v4151_v50  ;;  %v4367_v31 = vadd.f32 %v4359_v37, %v4168_v20  ;;  %v4072_v32 = vadd.f32 %v5172_v0, %v4007_v61  ;;  %v4064_v62 = vadd.f32 %v5166_v4, %v3999_v24  ;;  %v5247_v8 = vpop.f32.mrf.mxu1 }
 0x2be   : > { %4380 = vst [vmem:[%s6735_s28] sm:$0xff] %v4372_v44  ;;  %v4075_v26 = vadd.f32 %v5175_v54, %v4010_v55  ;;  %v4067_v2 = vadd.f32 %v5169_v46, %v4002_v41 }
 0x2bf   : > { %v4375_v42 = vmax.f32 %v4367_v31, 0.0  ;;  %v4365_v7 = vadd.f32 %v4357_v35, %v4166_v36  ;;  %v4137_v9 = vadd.f32 %v5246_v21, %v4072_v32  ;;  %v4129_v47 = vadd.f32 %v4128_v34, %v4064_v62  ;;  %v4131_v57 = vpop.f32.mrf.mxu1 }
 0x2c0   : > { %v4140_v25 = vadd.f32 %v5247_v8, %v4075_v26  ;;  %v4132_v16 = vadd.f32 %v4131_v57, %v4067_v2 }
 0x2c1   : > { %4383 = vst [vmem:[%s6735_s28 + $0x18] sm:$0xff] %v4375_v42  ;;  %v4373_v51 = vmax.f32 %v4365_v7, 0.0  ;;  %v4156_v22 = vmul.f32 %v6705_v48, %v4137_v9  ;;  %v4154_v18 = vmul.f32 %v6705_v48, %v4129_v47 }
 0x2c2   : > { %v4157_v38 = vmul.f32 %v6705_v48, %v4140_v25  ;;  %v4155_v15 = vmul.f32 %v6705_v48, %v4132_v16 }
 0x2c3   : > { %4381 = vst [vmem:[%s6735_s28 + $0x8] sm:$0xff] %v4373_v51  ;;  %v4171_v30 = vadd.f32 %v6717_v28, %v4156_v22  ;;  %v4169_v43 = vadd.f32 %v6717_v28, %v4154_v18 }
 0x2c4   : > { %v4172_v5 = vadd.f32 %v6717_v28, %v4157_v38  ;;  %v4170_v48 = vadd.f32 %v6717_v28, %v4155_v15 }
 0x2d1   : > { %v5270_v56 = vpop.f32.mrf.mxu1 }
 0x2d2   : > { %v4347_v6 = vmul.f32 %v5270_v56, %v6697_v52 }
 0x2d3   : > { %v4319_v60 = vpop.f32.mrf.mxu1 }
 0x2d4   : > { %v4362_v27 = vadd.f32 %v6710_v39, %v4347_v6  ;;  %v4345_v3 = vmul.f32 %v6697_v52, %v4319_v60 }
 0x2d5   : > { %v5271_v14 = vpop.f32.mrf.mxu1 }
 0x2d6   : > { %v4370_v19 = vadd.f32 %v4362_v27, %v4171_v30  ;;  %v4360_v17 = vadd.f32 %v6710_v39, %v4345_v3  ;;  %v4348_v37 = vmul.f32 %v5271_v14, %v6697_v52 }
 0x2d7   : > { %v4322_v40 = vpop.f32.mrf.mxu1 }
 0x2d8   : > { %v4378_v63 = vmax.f32 %v4370_v19, 0.0  ;;  %v4368_v58 = vadd.f32 %v4360_v17, %v4169_v43  ;;  %v4363_v35 = vadd.f32 %v6710_v39, %v4348_v37  ;;  %v4346_v49 = vmul.f32 %v6697_v52, %v4322_v40 }
 0x2da   : > { %4386 = vst [vmem:[%s6735_s28 + $0x30] sm:$0xff] %v4378_v63  ;;  %v4376_v20 = vmax.f32 %v4368_v58, 0.0  ;;  %v4371_v33 = vadd.f32 %v4363_v35, %v4172_v5  ;;  %v4361_v50 = vadd.f32 %v6710_v39, %v4346_v49 }
 0x2dc   : > { %4384 = vst [vmem:[%s6735_s28 + $0x20] sm:$0xff] %v4376_v20  ;;  %v4379_v44 = vmax.f32 %v4371_v33, 0.0  ;;  %v4369_v36 = vadd.f32 %v4361_v50, %v4170_v48 }
 0x2de   : > { %4387 = vst [vmem:[%s6735_s28 + $0x38] sm:$0xff] %v4379_v44  ;;  %v4377_v52 = vmax.f32 %v4369_v36, 0.0 }
 0x2e0   : > { %4385 = vst [vmem:[%s6735_s28 + $0x28] sm:$0xff] %v4377_v52 }
 0x2e1   : > { %5634 = shalt.err (!%p5631_p0)
}
 0x2e2   : > { %s5635_s12 = scalar_lea.hbm %s6791_s29, 1024  ;;  %s5639_s27 = scalar_lea.hbm %s6849_s10, 2048 }
 0x2e3   : > { %p5636_p1 = scmp.ne.s32.totalorder %s6791_s29, %s5635_s12  ;;  %p5640_p4 = scmp.lt.s32.totalorder %s6791_s29, %s6849_s10 }
 0x2e4   : > { %p5641_p7 = scmp.lt.s32.totalorder %s5639_s27, %s5635_s12 }
 0x2e5   : > { %p5637_p2 = pnand %p5636_p1, %p5787_p5 }
 0x2e6   : > { %p5642_p6 = por %p5641_p7, %p5640_p4 }
 0x2e7   : > { %p5638_p3 = pneg %p5637_p2 }
 0x2e9   : > { %p5643_p8 = pnand %p5642_p6, %p5638_p3 }
 0x2eb   : > { %5646 = shalt.err (!%p5643_p8)
}
 0x2ec   : > { %s5692_s17 = smov 128   ;;  %s5693_s11 = smov 8  }
 0x2ed   : > { %5293 = dma.vmem_to_hbm [thread:$0]  (%p5787_p5), %s6793_s18, 1024, %s6791_s29, %s6799_s30, %s5692_s17, %s5692_s17, %s5693_s11  }
 0x2ee PF: > { %p5305_p9 = scmp.ge.s32.totalorder %s5685_s16, 2  ;;  %s4417_s26 = sand.u32 1, %s5673_s13  }
 0x2ef   : > { %p6881_p10 = scmp.ne.s32.totalorder %s6855_s24, 0  ;;  %s4418_s12 = scalar_lea.sflag [#allocation7], %s4417_s26 }
 0x2f1   : > { %p5300_p11 = pnand %p5305_p9, %p6881_p10 }
 0x2f3   : > { %p5301_p12 = pneg %p5300_p11 }
 0x2f5   : > { %5668 = dma.done.wait (%p5301_p12), %s4418_s12, 1024  }
 0x2f6   : > { %5670 = vsyncadd (%p5301_p12), %s4418_s12, 4294966272  ;;  %p21_p13 = scmp.ge.s32.totalorder %s5774_s19, 4   ;;  %s6882_s13 = smov %s5677_s14 }
 0x2f7   : > { %s6883_s14 = smov %s5681_s15  ;;  %s6884_s15 = smov %s5785_s22 }
 0x2f8   : > { %s6885_s16 = smov %s5774_s19  ;;  %23 = sbr.rel (!%p21_p13) target bundleno = 4 (0x4), region = 108 }
 0x2fd   :  { %4423 = vsyncpa [#allocation6], 1 }
 0x2fe   :  { %4425 = vsyncpa [#allocation6 + $0x1], 1 }
 0x2ff   :  { %4426 = vsyncpa [#allocation7], 1 }
 0x300   :  { %4428 = vsyncpa [#allocation7 + $0x1], 1 }

</bundles_post_ra>
